<compile_context>
chip_gen: v6e
topology: v6e:2x2x1
jax: 0.10.0
libtpu: 0.0.40
codegen_flags: <defaults>
</compile_context>

<pallas_src>
import functools
import math

import numpy as np
import jax
import jax.numpy as jnp
from jax.experimental import pallas as pl
from jax.experimental.pallas import tpu as pltpu

_BN_EPS = 1e-5
_NEG_SLOPE = 0.3

# Conv metadata, in kernel execution order: (name, cin, cout, kh, kw).
_CONVS = (
    ("p1_conv3x3", 2, 7, 3, 3),
    ("p1_conv1x9", 7, 7, 1, 9),
    ("p1_conv9x1", 7, 7, 9, 1),
    ("p2_conv1x5", 2, 7, 1, 5),
    ("p2_conv5x1", 7, 7, 5, 1),
)
_TAP_STRIDE = 8        # patch rows per kernel tap (sublane-aligned staging)
_WSEG = 128            # lane-aligned weight-slab segment per conv
_N_SEG = 6             # 5 spatial convs + the final 1x1
_PATCH_ROWS = 80       # >= 9 taps * 8 rows, multiple of 16 (bf16 tiling)


def _leaky(v):
    return jnp.where(v > 0, v, _NEG_SLOPE * v)


# ----------------------------------------------------------------------------
# Fused CRBlock kernel (one image per grid step)
# ----------------------------------------------------------------------------
def _crblock_kernel(x_ref, w_ref, b_ref, o_ref,
                    pad_ref, patch_ref, mask_ref, *, img_h, img_w, halo):
    """x_ref/o_ref: (2, H*W).  pad_ref: (8, H*W + 2*halo) f32 shift buffer.
    patch_ref: (80, H*W) bf16 im2col patch.  mask_ref: (8, H*W) f32 w-masks."""
    hw = img_h * img_w

    # ---- per-step init (cheap; kept per-step so megacore sharding is safe) --
    # Halo strips implement zero padding in the h direction; never overwritten.
    pad_ref[:, 0:halo] = jnp.zeros((8, halo), jnp.float32)
    pad_ref[:, halo + hw:halo + hw + halo] = jnp.zeros((8, halo), jnp.float32)
    # Weight-padded patch rows must hold finite values (stale VMEM may be NaN).
    patch_ref[...] = jnp.zeros_like(patch_ref)
    # 8 w-direction validity masks, rows = dw in (-4,-3,-2,-1, 1, 2, 3, 4).
    r = jax.lax.broadcasted_iota(jnp.int32, (8, hw), 0)
    col = jax.lax.broadcasted_iota(jnp.int32, (8, hw), 1) % img_w
    dw_of_row = r - 4 + jnp.where(r >= 4, 1, 0)
    shifted = col + dw_of_row
    mask_ref[...] = ((shifted >= 0) & (shifted < img_w)).astype(jnp.float32)

    def mask_row(dw):
        return dw + 4 if dw < 0 else dw + 3

    def stage_patch(a, cin, kh, kw):
        """im2col: write every (statically shifted, w-masked) tap of `a` into
        the packed-contraction patch at sublane-aligned row offsets."""
        assert cin <= _TAP_STRIDE
        ph, pw = (kh - 1) // 2, (kw - 1) // 2
        pad_ref[0:cin, halo:halo + hw] = a
        for i in range(kh):
            for j in range(kw):
                dh, dw = i - ph, j - pw
                assert abs(dh) * img_w + abs(dw) <= halo and abs(dw) <= 4
                off = dh * img_w + dw
                tap = pad_ref[0:cin, halo + off:halo + off + hw]
                if dw != 0:   # h direction needs no mask: halo columns are 0
                    m = mask_row(dw)
                    tap = tap * mask_ref[m:m + 1, :]
                t = (i * kw + j) * _TAP_STRIDE
                patch_ref[t:t + cin, :] = tap.astype(jnp.bfloat16)

    def convbn(a, idx, cin, cout, kh, kw, act):
        stage_patch(a, cin, kh, kw)
        k = kh * kw * _TAP_STRIDE
        w = w_ref[0:cout, idx * _WSEG:idx * _WSEG + k]              # bf16
        out = jnp.dot(w, patch_ref[0:k, :],
                      preferred_element_type=jnp.float32)           # MXU
        out = out + b_ref[0:cout, idx:idx + 1]                      # folded BN
        return _leaky(out) if act else out

    x = x_ref[...]                                                  # (2, H*W)

    # path1: ConvBN3x3 + LReLU -> ConvBN1x9 + LReLU -> ConvBN9x1
    p1 = convbn(x, 0, 2, 7, 3, 3, act=True)
    p1 = convbn(p1, 1, 7, 7, 1, 9, act=True)
    p1 = convbn(p1, 2, 7, 7, 9, 1, act=False)
    # path2: ConvBN1x5 + LReLU -> ConvBN5x1
    p2 = convbn(x, 3, 2, 7, 1, 5, act=True)
    p2 = convbn(p2, 4, 7, 7, 5, 1, act=False)

    # LeakyReLU(cat(p1, p2)) == cat(LeakyReLU(p1), LeakyReLU(p2)).  Stage the
    # 14-channel concat into patch rows {0..6, 8..14} (rows 7/15 are zero and
    # weight-padded) and do one (2,16) @ (16,H*W) dot.
    patch_ref[0:7, :] = _leaky(p1).astype(jnp.bfloat16)
    patch_ref[8:15, :] = _leaky(p2).astype(jnp.bfloat16)
    w11 = w_ref[0:2, 5 * _WSEG:5 * _WSEG + 2 * _TAP_STRIDE]
    out = jnp.dot(w11, patch_ref[0:2 * _TAP_STRIDE, :],
                  preferred_element_type=jnp.float32)
    out = out + b_ref[0:2, 5:6]

    # residual add + final LeakyReLU (lane-dense (2, H*W) store)
    o_ref[...] = _leaky(out + x)


# ----------------------------------------------------------------------------
# Host-side parameters (deterministic init) and BN folding / slab packing
# ----------------------------------------------------------------------------
def _make_convbn(key, cin, cout, kh, kw):
    fan_in = cin * kh * kw
    fan_out = cout * kh * kw
    limit = math.sqrt(6.0 / (fan_in + fan_out))
    w = jax.random.uniform(key, (cout, cin, kh, kw), jnp.float32, -limit, limit)
    return {
        "w": w,                                        # torch layout (O,I,kh,kw)
        "gamma": jnp.ones((cout,), jnp.float32),
        "beta": jnp.zeros((cout,), jnp.float32),
        "mean": jnp.zeros((cout,), jnp.float32),       # fresh BN running stats
        "var": jnp.ones((cout,), jnp.float32),         # (eval-mode BN)
    }


def init_params(key):
    k = jax.random.split(key, 6)
    return {
        "p1_conv3x3": _make_convbn(k[0], 2, 7, 3, 3),
        "p1_conv1x9": _make_convbn(k[1], 7, 7, 1, 9),
        "p1_conv9x1": _make_convbn(k[2], 7, 7, 9, 1),
        "p2_conv1x5": _make_convbn(k[3], 2, 7, 1, 5),
        "p2_conv5x1": _make_convbn(k[4], 7, 7, 5, 1),
        "conv1x1":    _make_convbn(k[5], 14, 2, 1, 1),
    }


def _fold_convbn(cb):
    """Fold eval-mode BN into the conv: returns scaled (O,I,kh,kw) weight and
    (O,) bias so the kernel epilogue is just bias + activation."""
    scale = cb["gamma"] / jnp.sqrt(cb["var"] + _BN_EPS)
    w = cb["w"] * scale[:, None, None, None]
    b = cb["beta"] - cb["mean"] * scale
    return w, b


def _pack_params(params):
    """Pack every folded conv into one bf16 weight slab (8, 6*128) laid out for
    the packed-contraction patch (row = tap*8 + channel, zero padding for
    channel >= cin), plus one f32 bias slab (8, 8) with one column per conv."""
    w_slab = jnp.zeros((8, _N_SEG * _WSEG), jnp.float32)
    b_slab = jnp.zeros((8, 8), jnp.float32)
    for idx, (name, cin, cout, kh, kw) in enumerate(_CONVS):
        w, b = _fold_convbn(params[name])                  # (cout,cin,kh,kw)
        w_taps = jnp.transpose(w, (0, 2, 3, 1)).reshape(cout, kh * kw, cin)
        wp = jnp.zeros((cout, kh * kw, _TAP_STRIDE), jnp.float32)
        wp = wp.at[:, :, :cin].set(w_taps)
        wp = wp.reshape(cout, kh * kw * _TAP_STRIDE)
        w_slab = w_slab.at[0:cout, idx * _WSEG:idx * _WSEG + wp.shape[1]].set(wp)
        b_slab = b_slab.at[0:cout, idx].set(b)
    # 1x1 conv over the 14-channel concat: patch rows {0..6}=path1, {8..14}=path2.
    w11, b11 = _fold_convbn(params["conv1x1"])             # (2,14,1,1)
    w11 = w11.reshape(2, 14)
    wp = jnp.zeros((2, 2 * _TAP_STRIDE), jnp.float32)
    wp = wp.at[:, 0:7].set(w11[:, 0:7])
    wp = wp.at[:, 8:15].set(w11[:, 7:14])
    w_slab = w_slab.at[0:2, 5 * _WSEG:5 * _WSEG + 2 * _TAP_STRIDE].set(wp)
    b_slab = b_slab.at[0:2, 5].set(b11)
    return w_slab.astype(jnp.bfloat16), b_slab


# ----------------------------------------------------------------------------
# Forward
# ----------------------------------------------------------------------------
def crblock_forward(params, x_nchw):
    n, c, h, w = x_nchw.shape
    hw = h * w
    # Halo covers the largest flat shift (9x1 kernel: 4*W + 4), lane aligned.
    halo = -(-(4 * w + 4) // 128) * 128
    assert 4 * w + 4 <= halo

    w_slab, b_slab = _pack_params(params)
    x2 = x_nchw.reshape(n, c, hw).astype(jnp.float32)      # NCHW -> (N, C, H*W)

    out = pl.pallas_call(
        functools.partial(_crblock_kernel, img_h=h, img_w=w, halo=halo),
        out_shape=jax.ShapeDtypeStruct((n, c, hw), jnp.float32),
        grid=(n,),
        in_specs=[
            pl.BlockSpec((None, c, hw), lambda i: (i, 0, 0)),
            pl.BlockSpec(w_slab.shape, lambda i: (0, 0)),   # one slab, one DMA
            pl.BlockSpec(b_slab.shape, lambda i: (0, 0)),
        ],
        out_specs=pl.BlockSpec((None, c, hw), lambda i: (i, 0, 0)),
        scratch_shapes=[
            pltpu.VMEM((8, hw + 2 * halo), jnp.float32),     # halo shift buffer
            pltpu.VMEM((_PATCH_ROWS, hw), jnp.bfloat16),     # im2col patch
            pltpu.VMEM((8, hw), jnp.float32),                # w-direction masks
        ],
        compiler_params=pltpu.CompilerParams(
            dimension_semantics=("parallel",)),
    )(x2, w_slab, b_slab)

    return out.reshape(n, c, h, w)


# ----------------------------------------------------------------------------
# Plain-JAX reference of the same CRBlock (correctness cross-check)
# ----------------------------------------------------------------------------
def _convbn_ref(x, cb):
    cout, cin, kh, kw = cb["w"].shape
    ph, pw = (kh - 1) // 2, (kw - 1) // 2
    scale = cb["gamma"] / jnp.sqrt(cb["var"] + _BN_EPS)
    bias = cb["beta"] - cb["mean"] * scale
    y = jax.lax.conv_general_dilated(
        x, cb["w"], window_strides=(1, 1), padding=((ph, ph), (pw, pw)),
        dimension_numbers=("NCHW", "OIHW", "NCHW"),
        precision=jax.lax.Precision.HIGHEST)
    return y * scale[None, :, None, None] + bias[None, :, None, None]


def crblock_reference(params, x):
    p1 = _leaky(_convbn_ref(x, params["p1_conv3x3"]))
    p1 = _leaky(_convbn_ref(p1, params["p1_conv1x9"]))
    p1 = _convbn_ref(p1, params["p1_conv9x1"])
    p2 = _leaky(_convbn_ref(x, params["p2_conv1x5"]))
    p2 = _convbn_ref(p2, params["p2_conv5x1"])
    out = _leaky(jnp.concatenate([p1, p2], axis=1))
    out = _convbn_ref(out, params["conv1x1"])
    return _leaky(out + x)


# ----------------------------------------------------------------------------
if __name__ == "__main__":
    key = jax.random.PRNGKey(0)
    pkey, xkey = jax.random.split(key)
    params = init_params(pkey)

    # CRBlock operates on 2-channel feature maps; CRNet uses 32x32 spatial.
    x = jax.random.uniform(xkey, (2, 2, 32, 32), jnp.float32)

    out = jax.jit(crblock_forward)(params, x)
    out = jax.block_until_ready(out)

    assert out.shape == (2, 2, 32, 32)
    assert out.dtype == jnp.float32

    # Cross-check the fused Pallas kernel against the XLA f32 conv reference.
    # The kernel uses bf16 MXU operands (per perf review), so the tolerance is
    # set for bf16 operand rounding; structure/padding/BN-fold errors would be
    # orders of magnitude larger than this.
    ref = jax.block_until_ready(jax.jit(crblock_reference)(params, x))
    np.testing.assert_allclose(np.asarray(out), np.asarray(ref),
                               rtol=2e-2, atol=2e-2)

    print("KERNEL_OK")
</pallas_src>

<mosaic_0001>
module attributes {stable_mosaic.version = 11 : i64} {
  func.func @_crblock_kernel(%arg0: i32, %arg1: memref<1x2x1024xf32, #tpu.memory_space<vmem>>, %arg2: memref<8x768xbf16, #tpu.memory_space<vmem>>, %arg3: memref<8x8xf32, #tpu.memory_space<vmem>>, %arg4: memref<1x2x1024xf32, #tpu.memory_space<vmem>>, %arg5: memref<8x1536xf32, #tpu.memory_space<vmem>>, %arg6: memref<80x1024xbf16, #tpu.memory_space<vmem>>, %arg7: memref<8x1024xf32, #tpu.memory_space<vmem>>) attributes {dimension_semantics = [#tpu.dimension_semantics<parallel>], iteration_bounds = array<i64: 2>, scalar_prefetch = 0 : i64, scratch_operands = 3 : i64, tpu.core_type = #tpu.core_type<tc>, window_params = [{transform_indices = @transform_0, window_bounds = array<i64: 1, 2, 1024>}, {pipeline_mode = #tpu.pipeline_mode<synchronous>, transform_indices = @transform_1, window_bounds = array<i64: 8, 768>}, {pipeline_mode = #tpu.pipeline_mode<synchronous>, transform_indices = @transform_2, window_bounds = array<i64: 8, 8>}, {transform_indices = @transform_3, window_bounds = array<i64: 1, 2, 1024>}]} {
    %cst = arith.constant 0.000000e+00 : f32
    %0 = vector.broadcast %cst : f32 to vector<8x256xf32>
    %c0 = arith.constant 0 : index
    %c0_0 = arith.constant 0 : index
    %1 = vector.load %arg5[%c0, %c0_0] : memref<8x1536xf32, #tpu.memory_space<vmem>>, vector<8x256xf32>
    tpu.vector_store %arg5[%c0, %c0_0], %0 {strides = array<i32>} : memref<8x1536xf32, #tpu.memory_space<vmem>>, vector<8x256xf32>,
    %cst_1 = arith.constant 0.000000e+00 : f32
    %2 = vector.broadcast %cst_1 : f32 to vector<8x256xf32>
    %c0_2 = arith.constant 0 : index
    %c1280 = arith.constant 1280 : index
    %3 = vector.load %arg5[%c0_2, %c1280] : memref<8x1536xf32, #tpu.memory_space<vmem>>, vector<8x256xf32>
    tpu.vector_store %arg5[%c0_2, %c1280], %2 {strides = array<i32>} : memref<8x1536xf32, #tpu.memory_space<vmem>>, vector<8x256xf32>,
    %cst_3 = arith.constant 0.000000e+00 : bf16
    %4 = vector.broadcast %cst_3 : bf16 to vector<80x1024xbf16>
    %c0_4 = arith.constant 0 : index
    %c0_5 = arith.constant 0 : index
    %5 = vector.load %arg6[%c0_4, %c0_5] : memref<80x1024xbf16, #tpu.memory_space<vmem>>, vector<80x1024xbf16>
    tpu.vector_store %arg6[%c0_4, %c0_5], %4 {strides = array<i32>} : memref<80x1024xbf16, #tpu.memory_space<vmem>>, vector<80x1024xbf16>,
    %6 = tpu.iota {dimensions = array<i32: 0>} : vector<8x1024xi32>
    %7 = tpu.iota {dimensions = array<i32: 1>} : vector<8x1024xi32>
    %c32_i32 = arith.constant 32 : i32
    %c0_i32 = arith.constant 0 : i32
    %8 = arith.cmpi eq, %c32_i32, %c0_i32 : i32
    %c1_i32 = arith.constant 1 : i32
    %9 = arith.select %8, %c1_i32, %c32_i32 : i32
    %10 = vector.broadcast %9 : i32 to vector<8x1024xi32>
    %11 = arith.remsi %7, %10 : vector<8x1024xi32>
    %c0_i32_6 = arith.constant 0 : i32
    %12 = vector.broadcast %c0_i32_6 : i32 to vector<8x1024xi32>
    %13 = arith.cmpi ne, %11, %12 : vector<8x1024xi32>
    %c0_i32_7 = arith.constant 0 : i32
    %14 = vector.broadcast %c0_i32_7 : i32 to vector<8x1024xi32>
    %15 = arith.cmpi slt, %11, %14 : vector<8x1024xi32>
    %c0_i32_8 = arith.constant 0 : i32
    %16 = arith.cmpi slt, %9, %c0_i32_8 : i32
    %17 = vector.broadcast %16 : i1 to vector<8x1024xi1>
    %18 = vector.broadcast %17 : vector<8x1024xi1> to vector<8x1024xi1>
    %19 = arith.xori %15, %18 : vector<8x1024xi1>
    %20 = arith.andi %19, %13 : vector<8x1024xi1>
    %21 = vector.broadcast %9 : i32 to vector<8x1024xi32>
    %22 = arith.addi %11, %21 : vector<8x1024xi32>
    %23 = arith.select %20, %22, %11 : vector<8x1024xi1>, vector<8x1024xi32>
    %c4_i32 = arith.constant 4 : i32
    %24 = vector.broadcast %c4_i32 : i32 to vector<8x1024xi32>
    %25 = arith.subi %6, %24 : vector<8x1024xi32>
    %c4_i32_9 = arith.constant 4 : i32
    %26 = vector.broadcast %c4_i32_9 : i32 to vector<8x1024xi32>
    %27 = arith.cmpi sge, %6, %26 : vector<8x1024xi32>
    %c1_i32_10 = arith.constant 1 : i32
    %c0_i32_11 = arith.constant 0 : i32
    %28 = vector.broadcast %c1_i32_10 : i32 to vector<8x1024xi32>
    %29 = vector.broadcast %c0_i32_11 : i32 to vector<8x1024xi32>
    %30 = arith.select %27, %28, %29 : vector<8x1024xi1>, vector<8x1024xi32>
    %31 = arith.addi %25, %30 : vector<8x1024xi32>
    %32 = arith.addi %23, %31 : vector<8x1024xi32>
    %c0_i32_12 = arith.constant 0 : i32
    %33 = vector.broadcast %c0_i32_12 : i32 to vector<8x1024xi32>
    %34 = arith.cmpi sge, %32, %33 : vector<8x1024xi32>
    %c32_i32_13 = arith.constant 32 : i32
    %35 = vector.broadcast %c32_i32_13 : i32 to vector<8x1024xi32>
    %36 = arith.cmpi slt, %32, %35 : vector<8x1024xi32>
    %37 = arith.andi %34, %36 : vector<8x1024xi1>
    %38 = arith.extui %37 : vector<8x1024xi1> to vector<8x1024xi32>
    %39 = arith.sitofp %38 : vector<8x1024xi32> to vector<8x1024xf32>
    %c0_14 = arith.constant 0 : index
    %c0_15 = arith.constant 0 : index
    %40 = vector.load %arg7[%c0_14, %c0_15] : memref<8x1024xf32, #tpu.memory_space<vmem>>, vector<8x1024xf32>
    tpu.vector_store %arg7[%c0_14, %c0_15], %39 {strides = array<i32>} : memref<8x1024xf32, #tpu.memory_space<vmem>>, vector<8x1024xf32>,
    %c0_16 = arith.constant 0 : index
    %c0_17 = arith.constant 0 : index
    %c0_18 = arith.constant 0 : index
    %41 = vector.load %arg1[%c0_16, %c0_17, %c0_18] : memref<1x2x1024xf32, #tpu.memory_space<vmem>>, vector<1x2x1024xf32>
    %42 = vector.shape_cast %41 : vector<1x2x1024xf32> to vector<2x1024xf32>
    %c0_19 = arith.constant 0 : index
    %c256 = arith.constant 256 : index
    %43 = vector.load %arg5[%c0_19, %c256] : memref<8x1536xf32, #tpu.memory_space<vmem>>, vector<2x1024xf32>
    tpu.vector_store %arg5[%c0_19, %c256], %42 {strides = array<i32>} : memref<8x1536xf32, #tpu.memory_space<vmem>>, vector<2x1024xf32>,
    %c0_20 = arith.constant 0 : index
    %c223 = arith.constant 223 : index
    %44 = vector.load %arg5[%c0_20, %c223] : memref<8x1536xf32, #tpu.memory_space<vmem>>, vector<2x1024xf32>
    %c3 = arith.constant 3 : index
    %c0_21 = arith.constant 0 : index
    %45 = vector.load %arg7[%c3, %c0_21] : memref<8x1024xf32, #tpu.memory_space<vmem>>, vector<1x1024xf32>
    %46 = vector.broadcast %45 : vector<1x1024xf32> to vector<2x1024xf32>
    %47 = arith.mulf %44, %46 : vector<2x1024xf32>
    %48 = arith.truncf %47 : vector<2x1024xf32> to vector<2x1024xbf16>
    %c0_22 = arith.constant 0 : index
    %c0_23 = arith.constant 0 : index
    %49 = vector.load %arg6[%c0_22, %c0_23] : memref<80x1024xbf16, #tpu.memory_space<vmem>>, vector<2x1024xbf16>
    tpu.vector_store %arg6[%c0_22, %c0_23], %48 {strides = array<i32>} : memref<80x1024xbf16, #tpu.memory_space<vmem>>, vector<2x1024xbf16>,
    %c0_24 = arith.constant 0 : index
    %c224 = arith.constant 224 : index
    %50 = vector.load %arg5[%c0_24, %c224] : memref<8x1536xf32, #tpu.memory_space<vmem>>, vector<2x1024xf32>
    %51 = arith.truncf %50 : vector<2x1024xf32> to vector<2x1024xbf16>
    %c8 = arith.constant 8 : index
    %c0_25 = arith.constant 0 : index
    %52 = vector.load %arg6[%c8, %c0_25] : memref<80x1024xbf16, #tpu.memory_space<vmem>>, vector<2x1024xbf16>
    tpu.vector_store %arg6[%c8, %c0_25], %51 {strides = array<i32>} : memref<80x1024xbf16, #tpu.memory_space<vmem>>, vector<2x1024xbf16>,
    %c0_26 = arith.constant 0 : index
    %c225 = arith.constant 225 : index
    %53 = vector.load %arg5[%c0_26, %c225] : memref<8x1536xf32, #tpu.memory_space<vmem>>, vector<2x1024xf32>
    %c4 = arith.constant 4 : index
    %c0_27 = arith.constant 0 : index
    %54 = vector.load %arg7[%c4, %c0_27] : memref<8x1024xf32, #tpu.memory_space<vmem>>, vector<1x1024xf32>
    %55 = vector.broadcast %54 : vector<1x1024xf32> to vector<2x1024xf32>
    %56 = arith.mulf %53, %55 : vector<2x1024xf32>
    %57 = arith.truncf %56 : vector<2x1024xf32> to vector<2x1024xbf16>
    %c16 = arith.constant 16 : index
    %c0_28 = arith.constant 0 : index
    %58 = vector.load %arg6[%c16, %c0_28] : memref<80x1024xbf16, #tpu.memory_space<vmem>>, vector<2x1024xbf16>
    tpu.vector_store %arg6[%c16, %c0_28], %57 {strides = array<i32>} : memref<80x1024xbf16, #tpu.memory_space<vmem>>, vector<2x1024xbf16>,
    %c0_29 = arith.constant 0 : index
    %c255 = arith.constant 255 : index
    %59 = vector.load %arg5[%c0_29, %c255] : memref<8x1536xf32, #tpu.memory_space<vmem>>, vector<2x1024xf32>
    %c3_30 = arith.constant 3 : index
    %c0_31 = arith.constant 0 : index
    %60 = vector.load %arg7[%c3_30, %c0_31] : memref<8x1024xf32, #tpu.memory_space<vmem>>, vector<1x1024xf32>
    %61 = vector.broadcast %60 : vector<1x1024xf32> to vector<2x1024xf32>
    %62 = arith.mulf %59, %61 : vector<2x1024xf32>
    %63 = arith.truncf %62 : vector<2x1024xf32> to vector<2x1024xbf16>
    %c24 = arith.constant 24 : index
    %c0_32 = arith.constant 0 : index
    %64 = vector.load %arg6[%c24, %c0_32] : memref<80x1024xbf16, #tpu.memory_space<vmem>>, vector<2x1024xbf16>
    tpu.vector_store %arg6[%c24, %c0_32], %63 {strides = array<i32>} : memref<80x1024xbf16, #tpu.memory_space<vmem>>, vector<2x1024xbf16>,
    %c0_33 = arith.constant 0 : index
    %c256_34 = arith.constant 256 : index
    %65 = vector.load %arg5[%c0_33, %c256_34] : memref<8x1536xf32, #tpu.memory_space<vmem>>, vector<2x1024xf32>
    %66 = arith.truncf %65 : vector<2x1024xf32> to vector<2x1024xbf16>
    %c32 = arith.constant 32 : index
    %c0_35 = arith.constant 0 : index
    %67 = vector.load %arg6[%c32, %c0_35] : memref<80x1024xbf16, #tpu.memory_space<vmem>>, vector<2x1024xbf16>
    tpu.vector_store %arg6[%c32, %c0_35], %66 {strides = array<i32>} : memref<80x1024xbf16, #tpu.memory_space<vmem>>, vector<2x1024xbf16>,
    %c0_36 = arith.constant 0 : index
    %c257 = arith.constant 257 : index
    %68 = vector.load %arg5[%c0_36, %c257] : memref<8x1536xf32, #tpu.memory_space<vmem>>, vector<2x1024xf32>
    %c4_37 = arith.constant 4 : index
    %c0_38 = arith.constant 0 : index
    %69 = vector.load %arg7[%c4_37, %c0_38] : memref<8x1024xf32, #tpu.memory_space<vmem>>, vector<1x1024xf32>
    %70 = vector.broadcast %69 : vector<1x1024xf32> to vector<2x1024xf32>
    %71 = arith.mulf %68, %70 : vector<2x1024xf32>
    %72 = arith.truncf %71 : vector<2x1024xf32> to vector<2x1024xbf16>
    %c40 = arith.constant 40 : index
    %c0_39 = arith.constant 0 : index
    %73 = vector.load %arg6[%c40, %c0_39] : memref<80x1024xbf16, #tpu.memory_space<vmem>>, vector<2x1024xbf16>
    tpu.vector_store %arg6[%c40, %c0_39], %72 {strides = array<i32>} : memref<80x1024xbf16, #tpu.memory_space<vmem>>, vector<2x1024xbf16>,
    %c0_40 = arith.constant 0 : index
    %c287 = arith.constant 287 : index
    %74 = vector.load %arg5[%c0_40, %c287] : memref<8x1536xf32, #tpu.memory_space<vmem>>, vector<2x1024xf32>
    %c3_41 = arith.constant 3 : index
    %c0_42 = arith.constant 0 : index
    %75 = vector.load %arg7[%c3_41, %c0_42] : memref<8x1024xf32, #tpu.memory_space<vmem>>, vector<1x1024xf32>
    %76 = vector.broadcast %75 : vector<1x1024xf32> to vector<2x1024xf32>
    %77 = arith.mulf %74, %76 : vector<2x1024xf32>
    %78 = arith.truncf %77 : vector<2x1024xf32> to vector<2x1024xbf16>
    %c48 = arith.constant 48 : index
    %c0_43 = arith.constant 0 : index
    %79 = vector.load %arg6[%c48, %c0_43] : memref<80x1024xbf16, #tpu.memory_space<vmem>>, vector<2x1024xbf16>
    tpu.vector_store %arg6[%c48, %c0_43], %78 {strides = array<i32>} : memref<80x1024xbf16, #tpu.memory_space<vmem>>, vector<2x1024xbf16>,
    %c0_44 = arith.constant 0 : index
    %c288 = arith.constant 288 : index
    %80 = vector.load %arg5[%c0_44, %c288] : memref<8x1536xf32, #tpu.memory_space<vmem>>, vector<2x1024xf32>
    %81 = arith.truncf %80 : vector<2x1024xf32> to vector<2x1024xbf16>
    %c56 = arith.constant 56 : index
    %c0_45 = arith.constant 0 : index
    %82 = vector.load %arg6[%c56, %c0_45] : memref<80x1024xbf16, #tpu.memory_space<vmem>>, vector<2x1024xbf16>
    tpu.vector_store %arg6[%c56, %c0_45], %81 {strides = array<i32>} : memref<80x1024xbf16, #tpu.memory_space<vmem>>, vector<2x1024xbf16>,
    %c0_46 = arith.constant 0 : index
    %c289 = arith.constant 289 : index
    %83 = vector.load %arg5[%c0_46, %c289] : memref<8x1536xf32, #tpu.memory_space<vmem>>, vector<2x1024xf32>
    %c4_47 = arith.constant 4 : index
    %c0_48 = arith.constant 0 : index
    %84 = vector.load %arg7[%c4_47, %c0_48] : memref<8x1024xf32, #tpu.memory_space<vmem>>, vector<1x1024xf32>
    %85 = vector.broadcast %84 : vector<1x1024xf32> to vector<2x1024xf32>
    %86 = arith.mulf %83, %85 : vector<2x1024xf32>
    %87 = arith.truncf %86 : vector<2x1024xf32> to vector<2x1024xbf16>
    %c64 = arith.constant 64 : index
    %c0_49 = arith.constant 0 : index
    %88 = vector.load %arg6[%c64, %c0_49] : memref<80x1024xbf16, #tpu.memory_space<vmem>>, vector<2x1024xbf16>
    tpu.vector_store %arg6[%c64, %c0_49], %87 {strides = array<i32>} : memref<80x1024xbf16, #tpu.memory_space<vmem>>, vector<2x1024xbf16>,
    %c0_50 = arith.constant 0 : index
    %c0_51 = arith.constant 0 : index
    %89 = vector.load %arg2[%c0_50, %c0_51] : memref<8x768xbf16, #tpu.memory_space<vmem>>, vector<7x72xbf16>
    %c0_52 = arith.constant 0 : index
    %c0_53 = arith.constant 0 : index
    %90 = vector.load %arg6[%c0_52, %c0_53] : memref<80x1024xbf16, #tpu.memory_space<vmem>>, vector<72x1024xbf16>
    %cst_54 = arith.constant dense<0.000000e+00> : vector<7x1024xf32>
    %91 = tpu.matmul %89, %90, %cst_54 {dimension_numbers = #tpu.dot_dimension_numbers<[1], [0], [0], [1], [0, 0, 1, 1], [], []>} : vector<7x72xbf16>, vector<72x1024xbf16>, vector<7x1024xf32> -> vector<7x1024xf32>
    %c0_55 = arith.constant 0 : index
    %c0_56 = arith.constant 0 : index
    %92 = vector.load %arg3[%c0_55, %c0_56] : memref<8x8xf32, #tpu.memory_space<vmem>>, vector<7x1xf32>
    %93 = vector.broadcast %92 : vector<7x1xf32> to vector<7x1024xf32>
    %94 = arith.addf %91, %93 : vector<7x1024xf32>
    %cst_57 = arith.constant 0.000000e+00 : f32
    %95 = vector.broadcast %cst_57 : f32 to vector<7x1024xf32>
    %96 = arith.cmpf ogt, %94, %95 : vector<7x1024xf32>
    %cst_58 = arith.constant 3.000000e-01 : f32
    %97 = vector.broadcast %cst_58 : f32 to vector<7x1024xf32>
    %98 = arith.mulf %97, %94 : vector<7x1024xf32>
    %99 = arith.select %96, %94, %98 : vector<7x1024xi1>, vector<7x1024xf32>
    %c0_59 = arith.constant 0 : index
    %c256_60 = arith.constant 256 : index
    %100 = vector.load %arg5[%c0_59, %c256_60] : memref<8x1536xf32, #tpu.memory_space<vmem>>, vector<7x1024xf32>
    tpu.vector_store %arg5[%c0_59, %c256_60], %99 {strides = array<i32>} : memref<8x1536xf32, #tpu.memory_space<vmem>>, vector<7x1024xf32>,
    %c0_61 = arith.constant 0 : index
    %c252 = arith.constant 252 : index
    %101 = vector.load %arg5[%c0_61, %c252] : memref<8x1536xf32, #tpu.memory_space<vmem>>, vector<7x1024xf32>
    %c0_62 = arith.constant 0 : index
    %c0_63 = arith.constant 0 : index
    %102 = vector.load %arg7[%c0_62, %c0_63] : memref<8x1024xf32, #tpu.memory_space<vmem>>, vector<1x1024xf32>
    %103 = vector.broadcast %102 : vector<1x1024xf32> to vector<7x1024xf32>
    %104 = arith.mulf %101, %103 : vector<7x1024xf32>
    %105 = arith.truncf %104 : vector<7x1024xf32> to vector<7x1024xbf16>
    %c0_64 = arith.constant 0 : index
    %c0_65 = arith.constant 0 : index
    %106 = vector.load %arg6[%c0_64, %c0_65] : memref<80x1024xbf16, #tpu.memory_space<vmem>>, vector<7x1024xbf16>
    tpu.vector_store %arg6[%c0_64, %c0_65], %105 {strides = array<i32>} : memref<80x1024xbf16, #tpu.memory_space<vmem>>, vector<7x1024xbf16>,
    %c0_66 = arith.constant 0 : index
    %c253 = arith.constant 253 : index
    %107 = vector.load %arg5[%c0_66, %c253] : memref<8x1536xf32, #tpu.memory_space<vmem>>, vector<7x1024xf32>
    %c1 = arith.constant 1 : index
    %c0_67 = arith.constant 0 : index
    %108 = vector.load %arg7[%c1, %c0_67] : memref<8x1024xf32, #tpu.memory_space<vmem>>, vector<1x1024xf32>
    %109 = vector.broadcast %108 : vector<1x1024xf32> to vector<7x1024xf32>
    %110 = arith.mulf %107, %109 : vector<7x1024xf32>
    %111 = arith.truncf %110 : vector<7x1024xf32> to vector<7x1024xbf16>
    %c8_68 = arith.constant 8 : index
    %c0_69 = arith.constant 0 : index
    %112 = vector.load %arg6[%c8_68, %c0_69] : memref<80x1024xbf16, #tpu.memory_space<vmem>>, vector<7x1024xbf16>
    tpu.vector_store %arg6[%c8_68, %c0_69], %111 {strides = array<i32>} : memref<80x1024xbf16, #tpu.memory_space<vmem>>, vector<7x1024xbf16>,
    %c0_70 = arith.constant 0 : index
    %c254 = arith.constant 254 : index
    %113 = vector.load %arg5[%c0_70, %c254] : memref<8x1536xf32, #tpu.memory_space<vmem>>, vector<7x1024xf32>
    %c2 = arith.constant 2 : index
    %c0_71 = arith.constant 0 : index
    %114 = vector.load %arg7[%c2, %c0_71] : memref<8x1024xf32, #tpu.memory_space<vmem>>, vector<1x1024xf32>
    %115 = vector.broadcast %114 : vector<1x1024xf32> to vector<7x1024xf32>
    %116 = arith.mulf %113, %115 : vector<7x1024xf32>
    %117 = arith.truncf %116 : vector<7x1024xf32> to vector<7x1024xbf16>
    %c16_72 = arith.constant 16 : index
    %c0_73 = arith.constant 0 : index
    %118 = vector.load %arg6[%c16_72, %c0_73] : memref<80x1024xbf16, #tpu.memory_space<vmem>>, vector<7x1024xbf16>
    tpu.vector_store %arg6[%c16_72, %c0_73], %117 {strides = array<i32>} : memref<80x1024xbf16, #tpu.memory_space<vmem>>, vector<7x1024xbf16>,
    %c0_74 = arith.constant 0 : index
    %c255_75 = arith.constant 255 : index
    %119 = vector.load %arg5[%c0_74, %c255_75] : memref<8x1536xf32, #tpu.memory_space<vmem>>, vector<7x1024xf32>
    %c3_76 = arith.constant 3 : index
    %c0_77 = arith.constant 0 : index
    %120 = vector.load %arg7[%c3_76, %c0_77] : memref<8x1024xf32, #tpu.memory_space<vmem>>, vector<1x1024xf32>
    %121 = vector.broadcast %120 : vector<1x1024xf32> to vector<7x1024xf32>
    %122 = arith.mulf %119, %121 : vector<7x1024xf32>
    %123 = arith.truncf %122 : vector<7x1024xf32> to vector<7x1024xbf16>
    %c24_78 = arith.constant 24 : index
    %c0_79 = arith.constant 0 : index
    %124 = vector.load %arg6[%c24_78, %c0_79] : memref<80x1024xbf16, #tpu.memory_space<vmem>>, vector<7x1024xbf16>
    tpu.vector_store %arg6[%c24_78, %c0_79], %123 {strides = array<i32>} : memref<80x1024xbf16, #tpu.memory_space<vmem>>, vector<7x1024xbf16>,
    %c0_80 = arith.constant 0 : index
    %c256_81 = arith.constant 256 : index
    %125 = vector.load %arg5[%c0_80, %c256_81] : memref<8x1536xf32, #tpu.memory_space<vmem>>, vector<7x1024xf32>
    %126 = arith.truncf %125 : vector<7x1024xf32> to vector<7x1024xbf16>
    %c32_82 = arith.constant 32 : index
    %c0_83 = arith.constant 0 : index
    %127 = vector.load %arg6[%c32_82, %c0_83] : memref<80x1024xbf16, #tpu.memory_space<vmem>>, vector<7x1024xbf16>
    tpu.vector_store %arg6[%c32_82, %c0_83], %126 {strides = array<i32>} : memref<80x1024xbf16, #tpu.memory_space<vmem>>, vector<7x1024xbf16>,
    %c0_84 = arith.constant 0 : index
    %c257_85 = arith.constant 257 : index
    %128 = vector.load %arg5[%c0_84, %c257_85] : memref<8x1536xf32, #tpu.memory_space<vmem>>, vector<7x1024xf32>
    %c4_86 = arith.constant 4 : index
    %c0_87 = arith.constant 0 : index
    %129 = vector.load %arg7[%c4_86, %c0_87] : memref<8x1024xf32, #tpu.memory_space<vmem>>, vector<1x1024xf32>
    %130 = vector.broadcast %129 : vector<1x1024xf32> to vector<7x1024xf32>
    %131 = arith.mulf %128, %130 : vector<7x1024xf32>
    %132 = arith.truncf %131 : vector<7x1024xf32> to vector<7x1024xbf16>
    %c40_88 = arith.constant 40 : index
    %c0_89 = arith.constant 0 : index
    %133 = vector.load %arg6[%c40_88, %c0_89] : memref<80x1024xbf16, #tpu.memory_space<vmem>>, vector<7x1024xbf16>
    tpu.vector_store %arg6[%c40_88, %c0_89], %132 {strides = array<i32>} : memref<80x1024xbf16, #tpu.memory_space<vmem>>, vector<7x1024xbf16>,
    %c0_90 = arith.constant 0 : index
    %c258 = arith.constant 258 : index
    %134 = vector.load %arg5[%c0_90, %c258] : memref<8x1536xf32, #tpu.memory_space<vmem>>, vector<7x1024xf32>
    %c5 = arith.constant 5 : index
    %c0_91 = arith.constant 0 : index
    %135 = vector.load %arg7[%c5, %c0_91] : memref<8x1024xf32, #tpu.memory_space<vmem>>, vector<1x1024xf32>
    %136 = vector.broadcast %135 : vector<1x1024xf32> to vector<7x1024xf32>
    %137 = arith.mulf %134, %136 : vector<7x1024xf32>
    %138 = arith.truncf %137 : vector<7x1024xf32> to vector<7x1024xbf16>
    %c48_92 = arith.constant 48 : index
    %c0_93 = arith.constant 0 : index
    %139 = vector.load %arg6[%c48_92, %c0_93] : memref<80x1024xbf16, #tpu.memory_space<vmem>>, vector<7x1024xbf16>
    tpu.vector_store %arg6[%c48_92, %c0_93], %138 {strides = array<i32>} : memref<80x1024xbf16, #tpu.memory_space<vmem>>, vector<7x1024xbf16>,
    %c0_94 = arith.constant 0 : index
    %c259 = arith.constant 259 : index
    %140 = vector.load %arg5[%c0_94, %c259] : memref<8x1536xf32, #tpu.memory_space<vmem>>, vector<7x1024xf32>
    %c6 = arith.constant 6 : index
    %c0_95 = arith.constant 0 : index
    %141 = vector.load %arg7[%c6, %c0_95] : memref<8x1024xf32, #tpu.memory_space<vmem>>, vector<1x1024xf32>
    %142 = vector.broadcast %141 : vector<1x1024xf32> to vector<7x1024xf32>
    %143 = arith.mulf %140, %142 : vector<7x1024xf32>
    %144 = arith.truncf %143 : vector<7x1024xf32> to vector<7x1024xbf16>
    %c56_96 = arith.constant 56 : index
    %c0_97 = arith.constant 0 : index
    %145 = vector.load %arg6[%c56_96, %c0_97] : memref<80x1024xbf16, #tpu.memory_space<vmem>>, vector<7x1024xbf16>
    tpu.vector_store %arg6[%c56_96, %c0_97], %144 {strides = array<i32>} : memref<80x1024xbf16, #tpu.memory_space<vmem>>, vector<7x1024xbf16>,
    %c0_98 = arith.constant 0 : index
    %c260 = arith.constant 260 : index
    %146 = vector.load %arg5[%c0_98, %c260] : memref<8x1536xf32, #tpu.memory_space<vmem>>, vector<7x1024xf32>
    %c7 = arith.constant 7 : index
    %c0_99 = arith.constant 0 : index
    %147 = vector.load %arg7[%c7, %c0_99] : memref<8x1024xf32, #tpu.memory_space<vmem>>, vector<1x1024xf32>
    %148 = vector.broadcast %147 : vector<1x1024xf32> to vector<7x1024xf32>
    %149 = arith.mulf %146, %148 : vector<7x1024xf32>
    %150 = arith.truncf %149 : vector<7x1024xf32> to vector<7x1024xbf16>
    %c64_100 = arith.constant 64 : index
    %c0_101 = arith.constant 0 : index
    %151 = vector.load %arg6[%c64_100, %c0_101] : memref<80x1024xbf16, #tpu.memory_space<vmem>>, vector<7x1024xbf16>
    tpu.vector_store %arg6[%c64_100, %c0_101], %150 {strides = array<i32>} : memref<80x1024xbf16, #tpu.memory_space<vmem>>, vector<7x1024xbf16>,
    %c0_102 = arith.constant 0 : index
    %c128 = arith.constant 128 : index
    %152 = vector.load %arg2[%c0_102, %c128] : memref<8x768xbf16, #tpu.memory_space<vmem>>, vector<7x72xbf16>
    %c0_103 = arith.constant 0 : index
    %c0_104 = arith.constant 0 : index
    %153 = vector.load %arg6[%c0_103, %c0_104] : memref<80x1024xbf16, #tpu.memory_space<vmem>>, vector<72x1024xbf16>
    %cst_105 = arith.constant dense<0.000000e+00> : vector<7x1024xf32>
    %154 = tpu.matmul %152, %153, %cst_105 {dimension_numbers = #tpu.dot_dimension_numbers<[1], [0], [0], [1], [0, 0, 1, 1], [], []>} : vector<7x72xbf16>, vector<72x1024xbf16>, vector<7x1024xf32> -> vector<7x1024xf32>
    %c0_106 = arith.constant 0 : index
    %c1_107 = arith.constant 1 : index
    %155 = vector.load %arg3[%c0_106, %c1_107] : memref<8x8xf32, #tpu.memory_space<vmem>>, vector<7x1xf32>
    %156 = vector.broadcast %155 : vector<7x1xf32> to vector<7x1024xf32>
    %157 = arith.addf %154, %156 : vector<7x1024xf32>
    %cst_108 = arith.constant 0.000000e+00 : f32
    %158 = vector.broadcast %cst_108 : f32 to vector<7x1024xf32>
    %159 = arith.cmpf ogt, %157, %158 : vector<7x1024xf32>
    %cst_109 = arith.constant 3.000000e-01 : f32
    %160 = vector.broadcast %cst_109 : f32 to vector<7x1024xf32>
    %161 = arith.mulf %160, %157 : vector<7x1024xf32>
    %162 = arith.select %159, %157, %161 : vector<7x1024xi1>, vector<7x1024xf32>
    %c0_110 = arith.constant 0 : index
    %c256_111 = arith.constant 256 : index
    %163 = vector.load %arg5[%c0_110, %c256_111] : memref<8x1536xf32, #tpu.memory_space<vmem>>, vector<7x1024xf32>
    tpu.vector_store %arg5[%c0_110, %c256_111], %162 {strides = array<i32>} : memref<8x1536xf32, #tpu.memory_space<vmem>>, vector<7x1024xf32>,
    %c0_112 = arith.constant 0 : index
    %c128_113 = arith.constant 128 : index
    %164 = vector.load %arg5[%c0_112, %c128_113] : memref<8x1536xf32, #tpu.memory_space<vmem>>, vector<7x1024xf32>
    %165 = arith.truncf %164 : vector<7x1024xf32> to vector<7x1024xbf16>
    %c0_114 = arith.constant 0 : index
    %c0_115 = arith.constant 0 : index
    %166 = vector.load %arg6[%c0_114, %c0_115] : memref<80x1024xbf16, #tpu.memory_space<vmem>>, vector<7x1024xbf16>
    tpu.vector_store %arg6[%c0_114, %c0_115], %165 {strides = array<i32>} : memref<80x1024xbf16, #tpu.memory_space<vmem>>, vector<7x1024xbf16>,
    %c0_116 = arith.constant 0 : index
    %c160 = arith.constant 160 : index
    %167 = vector.load %arg5[%c0_116, %c160] : memref<8x1536xf32, #tpu.memory_space<vmem>>, vector<7x1024xf32>
    %168 = arith.truncf %167 : vector<7x1024xf32> to vector<7x1024xbf16>
    %c8_117 = arith.constant 8 : index
    %c0_118 = arith.constant 0 : index
    %169 = vector.load %arg6[%c8_117, %c0_118] : memref<80x1024xbf16, #tpu.memory_space<vmem>>, vector<7x1024xbf16>
    tpu.vector_store %arg6[%c8_117, %c0_118], %168 {strides = array<i32>} : memref<80x1024xbf16, #tpu.memory_space<vmem>>, vector<7x1024xbf16>,
    %c0_119 = arith.constant 0 : index
    %c192 = arith.constant 192 : index
    %170 = vector.load %arg5[%c0_119, %c192] : memref<8x1536xf32, #tpu.memory_space<vmem>>, vector<7x1024xf32>
    %171 = arith.truncf %170 : vector<7x1024xf32> to vector<7x1024xbf16>
    %c16_120 = arith.constant 16 : index
    %c0_121 = arith.constant 0 : index
    %172 = vector.load %arg6[%c16_120, %c0_121] : memref<80x1024xbf16, #tpu.memory_space<vmem>>, vector<7x1024xbf16>
    tpu.vector_store %arg6[%c16_120, %c0_121], %171 {strides = array<i32>} : memref<80x1024xbf16, #tpu.memory_space<vmem>>, vector<7x1024xbf16>,
    %c0_122 = arith.constant 0 : index
    %c224_123 = arith.constant 224 : index
    %173 = vector.load %arg5[%c0_122, %c224_123] : memref<8x1536xf32, #tpu.memory_space<vmem>>, vector<7x1024xf32>
    %174 = arith.truncf %173 : vector<7x1024xf32> to vector<7x1024xbf16>
    %c24_124 = arith.constant 24 : index
    %c0_125 = arith.constant 0 : index
    %175 = vector.load %arg6[%c24_124, %c0_125] : memref<80x1024xbf16, #tpu.memory_space<vmem>>, vector<7x1024xbf16>
    tpu.vector_store %arg6[%c24_124, %c0_125], %174 {strides = array<i32>} : memref<80x1024xbf16, #tpu.memory_space<vmem>>, vector<7x1024xbf16>,
    %c0_126 = arith.constant 0 : index
    %c256_127 = arith.constant 256 : index
    %176 = vector.load %arg5[%c0_126, %c256_127] : memref<8x1536xf32, #tpu.memory_space<vmem>>, vector<7x1024xf32>
    %177 = arith.truncf %176 : vector<7x1024xf32> to vector<7x1024xbf16>
    %c32_128 = arith.constant 32 : index
    %c0_129 = arith.constant 0 : index
    %178 = vector.load %arg6[%c32_128, %c0_129] : memref<80x1024xbf16, #tpu.memory_space<vmem>>, vector<7x1024xbf16>
    tpu.vector_store %arg6[%c32_128, %c0_129], %177 {strides = array<i32>} : memref<80x1024xbf16, #tpu.memory_space<vmem>>, vector<7x1024xbf16>,
    %c0_130 = arith.constant 0 : index
    %c288_131 = arith.constant 288 : index
    %179 = vector.load %arg5[%c0_130, %c288_131] : memref<8x1536xf32, #tpu.memory_space<vmem>>, vector<7x1024xf32>
    %180 = arith.truncf %179 : vector<7x1024xf32> to vector<7x1024xbf16>
    %c40_132 = arith.constant 40 : index
    %c0_133 = arith.constant 0 : index
    %181 = vector.load %arg6[%c40_132, %c0_133] : memref<80x1024xbf16, #tpu.memory_space<vmem>>, vector<7x1024xbf16>
    tpu.vector_store %arg6[%c40_132, %c0_133], %180 {strides = array<i32>} : memref<80x1024xbf16, #tpu.memory_space<vmem>>, vector<7x1024xbf16>,
    %c0_134 = arith.constant 0 : index
    %c320 = arith.constant 320 : index
    %182 = vector.load %arg5[%c0_134, %c320] : memref<8x1536xf32, #tpu.memory_space<vmem>>, vector<7x1024xf32>
    %183 = arith.truncf %182 : vector<7x1024xf32> to vector<7x1024xbf16>
    %c48_135 = arith.constant 48 : index
    %c0_136 = arith.constant 0 : index
    %184 = vector.load %arg6[%c48_135, %c0_136] : memref<80x1024xbf16, #tpu.memory_space<vmem>>, vector<7x1024xbf16>
    tpu.vector_store %arg6[%c48_135, %c0_136], %183 {strides = array<i32>} : memref<80x1024xbf16, #tpu.memory_space<vmem>>, vector<7x1024xbf16>,
    %c0_137 = arith.constant 0 : index
    %c352 = arith.constant 352 : index
    %185 = vector.load %arg5[%c0_137, %c352] : memref<8x1536xf32, #tpu.memory_space<vmem>>, vector<7x1024xf32>
    %186 = arith.truncf %185 : vector<7x1024xf32> to vector<7x1024xbf16>
    %c56_138 = arith.constant 56 : index
    %c0_139 = arith.constant 0 : index
    %187 = vector.load %arg6[%c56_138, %c0_139] : memref<80x1024xbf16, #tpu.memory_space<vmem>>, vector<7x1024xbf16>
    tpu.vector_store %arg6[%c56_138, %c0_139], %186 {strides = array<i32>} : memref<80x1024xbf16, #tpu.memory_space<vmem>>, vector<7x1024xbf16>,
    %c0_140 = arith.constant 0 : index
    %c384 = arith.constant 384 : index
    %188 = vector.load %arg5[%c0_140, %c384] : memref<8x1536xf32, #tpu.memory_space<vmem>>, vector<7x1024xf32>
    %189 = arith.truncf %188 : vector<7x1024xf32> to vector<7x1024xbf16>
    %c64_141 = arith.constant 64 : index
    %c0_142 = arith.constant 0 : index
    %190 = vector.load %arg6[%c64_141, %c0_142] : memref<80x1024xbf16, #tpu.memory_space<vmem>>, vector<7x1024xbf16>
    tpu.vector_store %arg6[%c64_141, %c0_142], %189 {strides = array<i32>} : memref<80x1024xbf16, #tpu.memory_space<vmem>>, vector<7x1024xbf16>,
    %c0_143 = arith.constant 0 : index
    %c256_144 = arith.constant 256 : index
    %191 = vector.load %arg2[%c0_143, %c256_144] : memref<8x768xbf16, #tpu.memory_space<vmem>>, vector<7x72xbf16>
    %c0_145 = arith.constant 0 : index
    %c0_146 = arith.constant 0 : index
    %192 = vector.load %arg6[%c0_145, %c0_146] : memref<80x1024xbf16, #tpu.memory_space<vmem>>, vector<72x1024xbf16>
    %cst_147 = arith.constant dense<0.000000e+00> : vector<7x1024xf32>
    %193 = tpu.matmul %191, %192, %cst_147 {dimension_numbers = #tpu.dot_dimension_numbers<[1], [0], [0], [1], [0, 0, 1, 1], [], []>} : vector<7x72xbf16>, vector<72x1024xbf16>, vector<7x1024xf32> -> vector<7x1024xf32>
    %c0_148 = arith.constant 0 : index
    %c2_149 = arith.constant 2 : index
    %194 = vector.load %arg3[%c0_148, %c2_149] : memref<8x8xf32, #tpu.memory_space<vmem>>, vector<7x1xf32>
    %195 = vector.broadcast %194 : vector<7x1xf32> to vector<7x1024xf32>
    %196 = arith.addf %193, %195 : vector<7x1024xf32>
    %c0_150 = arith.constant 0 : index
    %c256_151 = arith.constant 256 : index
    %197 = vector.load %arg5[%c0_150, %c256_151] : memref<8x1536xf32, #tpu.memory_space<vmem>>, vector<2x1024xf32>
    tpu.vector_store %arg5[%c0_150, %c256_151], %42 {strides = array<i32>} : memref<8x1536xf32, #tpu.memory_space<vmem>>, vector<2x1024xf32>,
    %c0_152 = arith.constant 0 : index
    %c254_153 = arith.constant 254 : index
    %198 = vector.load %arg5[%c0_152, %c254_153] : memref<8x1536xf32, #tpu.memory_space<vmem>>, vector<2x1024xf32>
    %c2_154 = arith.constant 2 : index
    %c0_155 = arith.constant 0 : index
    %199 = vector.load %arg7[%c2_154, %c0_155] : memref<8x1024xf32, #tpu.memory_space<vmem>>, vector<1x1024xf32>
    %200 = vector.broadcast %199 : vector<1x1024xf32> to vector<2x1024xf32>
    %201 = arith.mulf %198, %200 : vector<2x1024xf32>
    %202 = arith.truncf %201 : vector<2x1024xf32> to vector<2x1024xbf16>
    %c0_156 = arith.constant 0 : index
    %c0_157 = arith.constant 0 : index
    %203 = vector.load %arg6[%c0_156, %c0_157] : memref<80x1024xbf16, #tpu.memory_space<vmem>>, vector<2x1024xbf16>
    tpu.vector_store %arg6[%c0_156, %c0_157], %202 {strides = array<i32>} : memref<80x1024xbf16, #tpu.memory_space<vmem>>, vector<2x1024xbf16>,
    %c0_158 = arith.constant 0 : index
    %c255_159 = arith.constant 255 : index
    %204 = vector.load %arg5[%c0_158, %c255_159] : memref<8x1536xf32, #tpu.memory_space<vmem>>, vector<2x1024xf32>
    %c3_160 = arith.constant 3 : index
    %c0_161 = arith.constant 0 : index
    %205 = vector.load %arg7[%c3_160, %c0_161] : memref<8x1024xf32, #tpu.memory_space<vmem>>, vector<1x1024xf32>
    %206 = vector.broadcast %205 : vector<1x1024xf32> to vector<2x1024xf32>
    %207 = arith.mulf %204, %206 : vector<2x1024xf32>
    %208 = arith.truncf %207 : vector<2x1024xf32> to vector<2x1024xbf16>
    %c8_162 = arith.constant 8 : index
    %c0_163 = arith.constant 0 : index
    %209 = vector.load %arg6[%c8_162, %c0_163] : memref<80x1024xbf16, #tpu.memory_space<vmem>>, vector<2x1024xbf16>
    tpu.vector_store %arg6[%c8_162, %c0_163], %208 {strides = array<i32>} : memref<80x1024xbf16, #tpu.memory_space<vmem>>, vector<2x1024xbf16>,
    %c0_164 = arith.constant 0 : index
    %c256_165 = arith.constant 256 : index
    %210 = vector.load %arg5[%c0_164, %c256_165] : memref<8x1536xf32, #tpu.memory_space<vmem>>, vector<2x1024xf32>
    %211 = arith.truncf %210 : vector<2x1024xf32> to vector<2x1024xbf16>
    %c16_166 = arith.constant 16 : index
    %c0_167 = arith.constant 0 : index
    %212 = vector.load %arg6[%c16_166, %c0_167] : memref<80x1024xbf16, #tpu.memory_space<vmem>>, vector<2x1024xbf16>
    tpu.vector_store %arg6[%c16_166, %c0_167], %211 {strides = array<i32>} : memref<80x1024xbf16, #tpu.memory_space<vmem>>, vector<2x1024xbf16>,
    %c0_168 = arith.constant 0 : index
    %c257_169 = arith.constant 257 : index
    %213 = vector.load %arg5[%c0_168, %c257_169] : memref<8x1536xf32, #tpu.memory_space<vmem>>, vector<2x1024xf32>
    %c4_170 = arith.constant 4 : index
    %c0_171 = arith.constant 0 : index
    %214 = vector.load %arg7[%c4_170, %c0_171] : memref<8x1024xf32, #tpu.memory_space<vmem>>, vector<1x1024xf32>
    %215 = vector.broadcast %214 : vector<1x1024xf32> to vector<2x1024xf32>
    %216 = arith.mulf %213, %215 : vector<2x1024xf32>
    %217 = arith.truncf %216 : vector<2x1024xf32> to vector<2x1024xbf16>
    %c24_172 = arith.constant 24 : index
    %c0_173 = arith.constant 0 : index
    %218 = vector.load %arg6[%c24_172, %c0_173] : memref<80x1024xbf16, #tpu.memory_space<vmem>>, vector<2x1024xbf16>
    tpu.vector_store %arg6[%c24_172, %c0_173], %217 {strides = array<i32>} : memref<80x1024xbf16, #tpu.memory_space<vmem>>, vector<2x1024xbf16>,
    %c0_174 = arith.constant 0 : index
    %c258_175 = arith.constant 258 : index
    %219 = vector.load %arg5[%c0_174, %c258_175] : memref<8x1536xf32, #tpu.memory_space<vmem>>, vector<2x1024xf32>
    %c5_176 = arith.constant 5 : index
    %c0_177 = arith.constant 0 : index
    %220 = vector.load %arg7[%c5_176, %c0_177] : memref<8x1024xf32, #tpu.memory_space<vmem>>, vector<1x1024xf32>
    %221 = vector.broadcast %220 : vector<1x1024xf32> to vector<2x1024xf32>
    %222 = arith.mulf %219, %221 : vector<2x1024xf32>
    %223 = arith.truncf %222 : vector<2x1024xf32> to vector<2x1024xbf16>
    %c32_178 = arith.constant 32 : index
    %c0_179 = arith.constant 0 : index
    %224 = vector.load %arg6[%c32_178, %c0_179] : memref<80x1024xbf16, #tpu.memory_space<vmem>>, vector<2x1024xbf16>
    tpu.vector_store %arg6[%c32_178, %c0_179], %223 {strides = array<i32>} : memref<80x1024xbf16, #tpu.memory_space<vmem>>, vector<2x1024xbf16>,
    %c0_180 = arith.constant 0 : index
    %c384_181 = arith.constant 384 : index
    %225 = vector.load %arg2[%c0_180, %c384_181] : memref<8x768xbf16, #tpu.memory_space<vmem>>, vector<7x40xbf16>
    %c0_182 = arith.constant 0 : index
    %c0_183 = arith.constant 0 : index
    %226 = vector.load %arg6[%c0_182, %c0_183] : memref<80x1024xbf16, #tpu.memory_space<vmem>>, vector<40x1024xbf16>
    %cst_184 = arith.constant dense<0.000000e+00> : vector<7x1024xf32>
    %227 = tpu.matmul %225, %226, %cst_184 {dimension_numbers = #tpu.dot_dimension_numbers<[1], [0], [0], [1], [0, 0, 1, 1], [], []>} : vector<7x40xbf16>, vector<40x1024xbf16>, vector<7x1024xf32> -> vector<7x1024xf32>
    %c0_185 = arith.constant 0 : index
    %c3_186 = arith.constant 3 : index
    %228 = vector.load %arg3[%c0_185, %c3_186] : memref<8x8xf32, #tpu.memory_space<vmem>>, vector<7x1xf32>
    %229 = vector.broadcast %228 : vector<7x1xf32> to vector<7x1024xf32>
    %230 = arith.addf %227, %229 : vector<7x1024xf32>
    %cst_187 = arith.constant 0.000000e+00 : f32
    %231 = vector.broadcast %cst_187 : f32 to vector<7x1024xf32>
    %232 = arith.cmpf ogt, %230, %231 : vector<7x1024xf32>
    %cst_188 = arith.constant 3.000000e-01 : f32
    %233 = vector.broadcast %cst_188 : f32 to vector<7x1024xf32>
    %234 = arith.mulf %233, %230 : vector<7x1024xf32>
    %235 = arith.select %232, %230, %234 : vector<7x1024xi1>, vector<7x1024xf32>
    %c0_189 = arith.constant 0 : index
    %c256_190 = arith.constant 256 : index
    %236 = vector.load %arg5[%c0_189, %c256_190] : memref<8x1536xf32, #tpu.memory_space<vmem>>, vector<7x1024xf32>
    tpu.vector_store %arg5[%c0_189, %c256_190], %235 {strides = array<i32>} : memref<8x1536xf32, #tpu.memory_space<vmem>>, vector<7x1024xf32>,
    %c0_191 = arith.constant 0 : index
    %c192_192 = arith.constant 192 : index
    %237 = vector.load %arg5[%c0_191, %c192_192] : memref<8x1536xf32, #tpu.memory_space<vmem>>, vector<7x1024xf32>
    %238 = arith.truncf %237 : vector<7x1024xf32> to vector<7x1024xbf16>
    %c0_193 = arith.constant 0 : index
    %c0_194 = arith.constant 0 : index
    %239 = vector.load %arg6[%c0_193, %c0_194] : memref<80x1024xbf16, #tpu.memory_space<vmem>>, vector<7x1024xbf16>
    tpu.vector_store %arg6[%c0_193, %c0_194], %238 {strides = array<i32>} : memref<80x1024xbf16, #tpu.memory_space<vmem>>, vector<7x1024xbf16>,
    %c0_195 = arith.constant 0 : index
    %c224_196 = arith.constant 224 : index
    %240 = vector.load %arg5[%c0_195, %c224_196] : memref<8x1536xf32, #tpu.memory_space<vmem>>, vector<7x1024xf32>
    %241 = arith.truncf %240 : vector<7x1024xf32> to vector<7x1024xbf16>
    %c8_197 = arith.constant 8 : index
    %c0_198 = arith.constant 0 : index
    %242 = vector.load %arg6[%c8_197, %c0_198] : memref<80x1024xbf16, #tpu.memory_space<vmem>>, vector<7x1024xbf16>
    tpu.vector_store %arg6[%c8_197, %c0_198], %241 {strides = array<i32>} : memref<80x1024xbf16, #tpu.memory_space<vmem>>, vector<7x1024xbf16>,
    %c0_199 = arith.constant 0 : index
    %c256_200 = arith.constant 256 : index
    %243 = vector.load %arg5[%c0_199, %c256_200] : memref<8x1536xf32, #tpu.memory_space<vmem>>, vector<7x1024xf32>
    %244 = arith.truncf %243 : vector<7x1024xf32> to vector<7x1024xbf16>
    %c16_201 = arith.constant 16 : index
    %c0_202 = arith.constant 0 : index
    %245 = vector.load %arg6[%c16_201, %c0_202] : memref<80x1024xbf16, #tpu.memory_space<vmem>>, vector<7x1024xbf16>
    tpu.vector_store %arg6[%c16_201, %c0_202], %244 {strides = array<i32>} : memref<80x1024xbf16, #tpu.memory_space<vmem>>, vector<7x1024xbf16>,
    %c0_203 = arith.constant 0 : index
    %c288_204 = arith.constant 288 : index
    %246 = vector.load %arg5[%c0_203, %c288_204] : memref<8x1536xf32, #tpu.memory_space<vmem>>, vector<7x1024xf32>
    %247 = arith.truncf %246 : vector<7x1024xf32> to vector<7x1024xbf16>
    %c24_205 = arith.constant 24 : index
    %c0_206 = arith.constant 0 : index
    %248 = vector.load %arg6[%c24_205, %c0_206] : memref<80x1024xbf16, #tpu.memory_space<vmem>>, vector<7x1024xbf16>
    tpu.vector_store %arg6[%c24_205, %c0_206], %247 {strides = array<i32>} : memref<80x1024xbf16, #tpu.memory_space<vmem>>, vector<7x1024xbf16>,
    %c0_207 = arith.constant 0 : index
    %c320_208 = arith.constant 320 : index
    %249 = vector.load %arg5[%c0_207, %c320_208] : memref<8x1536xf32, #tpu.memory_space<vmem>>, vector<7x1024xf32>
    %250 = arith.truncf %249 : vector<7x1024xf32> to vector<7x1024xbf16>
    %c32_209 = arith.constant 32 : index
    %c0_210 = arith.constant 0 : index
    %251 = vector.load %arg6[%c32_209, %c0_210] : memref<80x1024xbf16, #tpu.memory_space<vmem>>, vector<7x1024xbf16>
    tpu.vector_store %arg6[%c32_209, %c0_210], %250 {strides = array<i32>} : memref<80x1024xbf16, #tpu.memory_space<vmem>>, vector<7x1024xbf16>,
    %c0_211 = arith.constant 0 : index
    %c512 = arith.constant 512 : index
    %252 = vector.load %arg2[%c0_211, %c512] : memref<8x768xbf16, #tpu.memory_space<vmem>>, vector<7x40xbf16>
    %c0_212 = arith.constant 0 : index
    %c0_213 = arith.constant 0 : index
    %253 = vector.load %arg6[%c0_212, %c0_213] : memref<80x1024xbf16, #tpu.memory_space<vmem>>, vector<40x1024xbf16>
    %cst_214 = arith.constant dense<0.000000e+00> : vector<7x1024xf32>
    %254 = tpu.matmul %252, %253, %cst_214 {dimension_numbers = #tpu.dot_dimension_numbers<[1], [0], [0], [1], [0, 0, 1, 1], [], []>} : vector<7x40xbf16>, vector<40x1024xbf16>, vector<7x1024xf32> -> vector<7x1024xf32>
    %c0_215 = arith.constant 0 : index
    %c4_216 = arith.constant 4 : index
    %255 = vector.load %arg3[%c0_215, %c4_216] : memref<8x8xf32, #tpu.memory_space<vmem>>, vector<7x1xf32>
    %256 = vector.broadcast %255 : vector<7x1xf32> to vector<7x1024xf32>
    %257 = arith.addf %254, %256 : vector<7x1024xf32>
    %cst_217 = arith.constant 0.000000e+00 : f32
    %258 = vector.broadcast %cst_217 : f32 to vector<7x1024xf32>
    %259 = arith.cmpf ogt, %196, %258 : vector<7x1024xf32>
    %cst_218 = arith.constant 3.000000e-01 : f32
    %260 = vector.broadcast %cst_218 : f32 to vector<7x1024xf32>
    %261 = arith.mulf %260, %196 : vector<7x1024xf32>
    %262 = arith.select %259, %196, %261 : vector<7x1024xi1>, vector<7x1024xf32>
    %263 = arith.truncf %262 : vector<7x1024xf32> to vector<7x1024xbf16>
    %c0_219 = arith.constant 0 : index
    %c0_220 = arith.constant 0 : index
    %264 = vector.load %arg6[%c0_219, %c0_220] : memref<80x1024xbf16, #tpu.memory_space<vmem>>, vector<7x1024xbf16>
    tpu.vector_store %arg6[%c0_219, %c0_220], %263 {strides = array<i32>} : memref<80x1024xbf16, #tpu.memory_space<vmem>>, vector<7x1024xbf16>,
    %cst_221 = arith.constant 0.000000e+00 : f32
    %265 = vector.broadcast %cst_221 : f32 to vector<7x1024xf32>
    %266 = arith.cmpf ogt, %257, %265 : vector<7x1024xf32>
    %cst_222 = arith.constant 3.000000e-01 : f32
    %267 = vector.broadcast %cst_222 : f32 to vector<7x1024xf32>
    %268 = arith.mulf %267, %257 : vector<7x1024xf32>
    %269 = arith.select %266, %257, %268 : vector<7x1024xi1>, vector<7x1024xf32>
    %270 = arith.truncf %269 : vector<7x1024xf32> to vector<7x1024xbf16>
    %c8_223 = arith.constant 8 : index
    %c0_224 = arith.constant 0 : index
    %271 = vector.load %arg6[%c8_223, %c0_224] : memref<80x1024xbf16, #tpu.memory_space<vmem>>, vector<7x1024xbf16>
    tpu.vector_store %arg6[%c8_223, %c0_224], %270 {strides = array<i32>} : memref<80x1024xbf16, #tpu.memory_space<vmem>>, vector<7x1024xbf16>,
    %c0_225 = arith.constant 0 : index
    %c640 = arith.constant 640 : index
    %272 = vector.load %arg2[%c0_225, %c640] : memref<8x768xbf16, #tpu.memory_space<vmem>>, vector<2x16xbf16>
    %c0_226 = arith.constant 0 : index
    %c0_227 = arith.constant 0 : index
    %273 = vector.load %arg6[%c0_226, %c0_227] : memref<80x1024xbf16, #tpu.memory_space<vmem>>, vector<16x1024xbf16>
    %cst_228 = arith.constant dense<0.000000e+00> : vector<2x1024xf32>
    %274 = tpu.matmul %272, %273, %cst_228 {dimension_numbers = #tpu.dot_dimension_numbers<[1], [0], [0], [1], [0, 0, 1, 1], [], []>} : vector<2x16xbf16>, vector<16x1024xbf16>, vector<2x1024xf32> -> vector<2x1024xf32>
    %c0_229 = arith.constant 0 : index
    %c5_230 = arith.constant 5 : index
    %275 = vector.load %arg3[%c0_229, %c5_230] : memref<8x8xf32, #tpu.memory_space<vmem>>, vector<2x1xf32>
    %276 = vector.broadcast %275 : vector<2x1xf32> to vector<2x1024xf32>
    %277 = arith.addf %274, %276 : vector<2x1024xf32>
    %278 = arith.addf %277, %42 : vector<2x1024xf32>
    %cst_231 = arith.constant 0.000000e+00 : f32
    %279 = vector.broadcast %cst_231 : f32 to vector<2x1024xf32>
    %280 = arith.cmpf ogt, %278, %279 : vector<2x1024xf32>
    %cst_232 = arith.constant 3.000000e-01 : f32
    %281 = vector.broadcast %cst_232 : f32 to vector<2x1024xf32>
    %282 = arith.mulf %281, %278 : vector<2x1024xf32>
    %283 = arith.select %280, %278, %282 : vector<2x1024xi1>, vector<2x1024xf32>
    %c0_233 = arith.constant 0 : index
    %c0_234 = arith.constant 0 : index
    %c0_235 = arith.constant 0 : index
    %284 = vector.load %arg4[%c0_233, %c0_234, %c0_235] : memref<1x2x1024xf32, #tpu.memory_space<vmem>>, vector<1x2x1024xf32>
    %285 = vector.shape_cast %284 : vector<1x2x1024xf32> to vector<2x1024xf32>
    %286 = vector.shape_cast %283 : vector<2x1024xf32> to vector<1x2x1024xf32>
    tpu.vector_store %arg4[%c0_233, %c0_234, %c0_235], %286 {strides = array<i32>} : memref<1x2x1024xf32, #tpu.memory_space<vmem>>, vector<1x2x1024xf32>,
    return
  }
  func.func @transform_0(%arg0: i32) -> (i32, i32, i32) {
    %c0_i32 = arith.constant 0 : i32
    %c0_i32_0 = arith.constant 0 : i32
    %c0_i32_1 = arith.constant 0 : i32
    return %arg0, %c0_i32, %c0_i32_0 : i32, i32, i32
  }
  func.func @transform_1(%arg0: i32) -> (i32, i32) {
    %c0_i32 = arith.constant 0 : i32
    %c0_i32_0 = arith.constant 0 : i32
    %c0_i32_1 = arith.constant 0 : i32
    return %c0_i32, %c0_i32_0 : i32, i32
  }
  func.func @transform_2(%arg0: i32) -> (i32, i32) {
    %c0_i32 = arith.constant 0 : i32
    %c0_i32_0 = arith.constant 0 : i32
    %c0_i32_1 = arith.constant 0 : i32
    return %c0_i32, %c0_i32_0 : i32, i32
  }
  func.func @transform_3(%arg0: i32) -> (i32, i32, i32) {
    %c0_i32 = arith.constant 0 : i32
    %c0_i32_0 = arith.constant 0 : i32
    %c0_i32_1 = arith.constant 0 : i32
    return %arg0, %c0_i32, %c0_i32_0 : i32, i32, i32
  }
}

</mosaic_0001>

<bundles_post_ra>
// kernel: crblock_forward.1
= control target key start
LH: loop header
LB: loop body
LE: loop exit
PB: predicated region body
PF: predicated region fallthrough
CT: control target
= control target key end

     0   :  { %s7773_s12 = smov 0   ;;  %s10656_s0 = inlined_call_operand.vmem [shape: f32[2,2,1024], index: 0, kind: input, shape index: {}]   ;;  %s10657_s1 = inlined_call_operand.vmem [shape: bf16[8,768], index: 1, kind: input, shape index: {}]   ;;  %s10658_s2 = inlined_call_operand.vmem [shape: f32[8,8], index: 2, kind: input, shape index: {}]   ;;  %s10659_s3 = inlined_call_operand.vmem [shape: f32[2,2,1024], index: 3, kind: output, shape index: {}]  }
   0x1 LB: > { %s6993_s13 = sadd.s32 4294967295, %s7728_s12   ;;  %p6997_p0 = scmp.ge.s32.totalorder %s7728_s12, 1  ;;  %s7728_s12 = sphi %s7773_s12, %s13_s12  }
   0x2   : > { %p137_p1 = scmp.lt.s32.totalorder %s7728_s12, 3 }
   0x4   : > { %p138_p2 = pnand %p6997_p0, %p137_p1 }
   0x6   : > { %141 = sbr.rel (%p138_p2) target bundleno = 1974 (0x7b6), region = 32 }
   0xb   : > { %v216_v0 = vlaneseq  ;;  %v7730_v1 = vmov 0.0   ;;  %v7731_v2 = vmov 0   ;;  %p161_p3 = scmp.lt.s32.totalorder %s6993_s13, 1  ;;  %v7732_v11 = vmov 1983009808   ;;  %s7733_s18 = smov 33  }
   0xc   : > { %173 = vst [vmem:[#allocation2 + $0x8] sm:$0xff] %v7730_v1  ;;  %174 = vst [vmem:[#allocation2 + $0x50] sm:$0xff] %v7730_v1  ;;  %7646 = vset.pattern.permute.xlu0 %v7731_v2  ;;  %1820 = vmatprep.mubr.bf16.mxu0 %v7731_v2  ;;  %v389_v12 = vunpack.c.l.s4 %v7732_v11  ;;  %s7734_s19 = smov 31   ;;  %s7735_s20 = smov 1  }
   0xd   : > { %176 = vst [vmem:[#allocation3 + $0xb0] sm:$0xff] %v7731_v2  ;;  %177 = vst [vmem:[#allocation3 + $0xd0] sm:$0xff] %v7731_v2  ;;  %v219_v3 = vand.u32 127, %v216_v0  ;;  %1861 = vmatprep.mubr.bf16.mxu1 %v7731_v2  ;;  %v7823_v4 = vshrl.u32 %v216_v0, 7  ;;  %s10736_s13 = smov (!%p161_p3, %s6993_s13), 1  ;;  %s7736_s21 = smov 97  }
   0xe   : > { %178 = vst [vmem:[#allocation3 + $0x10] sm:$0xff] %v7731_v2  ;;  %179 = vst [vmem:[#allocation3 + $0x48] sm:$0xff] %v7731_v2  ;;  %s7427_s14 = sshll.u32 %s10736_s13, 4  ;;  %v390_v25 = vunpack.c.0.s8 %v389_v12  ;;  %s7737_s22 = smov 127  }
   0xf   : > { %180 = vst [vmem:[#allocation3 + $0x120] sm:$0xff] %v7731_v2  ;;  %181 = vst [vmem:[#allocation3 + $0x38] sm:$0xff] %v7731_v2  ;;  %v220_v5 = vadd.s32 128, %v219_v3  ;;  %v221_v6 = vadd.s32 256, %v219_v3  ;;  %v222_v7 = vadd.s32 384, %v219_v3  ;;  %v223_v8 = vadd.s32 512, %v219_v3  ;;  %s165_s17 = scalar_lea.vmem %s10656_s0, %s7427_s14  ;;  %s170_s8 = scalar_lea.vmem %s10659_s3, %s7427_s14 }
  0x10   : > { %182 = vst [vmem:[#allocation3 + $0xf8] sm:$0xff] %v7731_v2  ;;  %183 = vst [vmem:[#allocation3 + $0x100] sm:$0xff] %v7731_v2  ;;  %v224_v9 = vadd.s32 640, %v219_v3  ;;  %v225_v10 = vadd.s32 768, %v219_v3  ;;  %v226_v13 = vadd.s32 896, %v219_v3  ;;  %v231_v14 = vand.u32 31, %v219_v3 }
  0x11   : > { %184 = vst [vmem:[#allocation3 + $0x80] sm:$0xff] %v7731_v2  ;;  %185 = vst [vmem:[#allocation3 + $0x108] sm:$0xff] %v7731_v2  ;;  %v7002_v15 = vadd.s32 4294967292, %v7823_v4  ;;  %v238_v16 = vand.u32 31, %v220_v5  ;;  %v245_v17 = vand.u32 31, %v221_v6  ;;  %v252_v18 = vand.u32 31, %v222_v7 }
  0x12   : > { %186 = vst [vmem:[#allocation3 + $0x138] sm:$0xff] %v7731_v2  ;;  %187 = vst [vmem:[#allocation3 + $0xf0] sm:$0xff] %v7731_v2  ;;  %vm324_vm0 = vcmp.ge.s32.totalorder %v7823_v4, 4  ;;  %v259_v19 = vand.u32 31, %v223_v8  ;;  %v266_v20 = vand.u32 31, %v224_v9  ;;  %v273_v21 = vand.u32 31, %v225_v10 }
  0x13   : > { %188 = vst [vmem:[#allocation3 + $0x18] sm:$0xff] %v7731_v2  ;;  %189 = vst [vmem:[#allocation3 + $0xc8] sm:$0xff] %v7731_v2  ;;  %v325_v22 = vsel %vm324_vm0, 1, %v7731_v2  ;;  %v7840_v23 = vld [vmem:[%s165_s17] sm:$0xff]  ;;  %v280_v26 = vand.u32 31, %v226_v13  ;;  %v7847_v28 = vld [vmem:[%s165_s17 + $0x8] sm:$0xff]  ;;  %v7852_v36 = vsub.s32 %v390_v25, %v7823_v4 }
  0x14   : > { %190 = vst [vmem:[#allocation3 + $0x70] sm:$0xff] %v7731_v2  ;;  %191 = vst [vmem:[#allocation3 + $0x20] sm:$0xff] %v7731_v2  ;;  %v326_v24 = vadd.s32 %v7002_v15, %v325_v22  ;;  %v7845_v27 = vcombine.high %v7840_v23, %v7840_v23  ;;  %v7871_v43 = vcombine.high %v7847_v28, %v7847_v28  ;;  %v7914_v56 = vsub.s32 2, %v7823_v4  ;;  %s7738_s23 = smov 95   ;;  %s7739_s24 = smov 96  }
  0x15   : > { %192 = vst [vmem:[#allocation3 + $0x128] sm:$0xff] %v7731_v2  ;;  %193 = vst [vmem:[#allocation3 + $0x110] sm:$0xff] %v7731_v2  ;;  %v7857_v39 = vrot.slane %v7840_v23, %v7852_v36  ;;  %v7861_v40 = vrot.slane %v7847_v28, %v7852_v36  ;;  %v7917_v57 = vsub.s32 0, %v7823_v4  ;;  %v7922_v60 = vsub.s32 3, %v7823_v4  ;;  %s7740_s25 = smov 32   ;;  %s7741_s28 = smov 4  }
  0x16   : > { %194 = vst [vmem:[#allocation3 + $0x8] sm:$0xff] %v7731_v2  ;;  %195 = vst [vmem:[#allocation3 + $0x98] sm:$0xff] %v7731_v2  ;;  %v327_v29 = vadd.s32 %v326_v24, %v231_v14  ;;  %v328_v30 = vadd.s32 %v326_v24, %v238_v16  ;;  %v329_v31 = vadd.s32 %v326_v24, %v245_v17  ;;  %v7925_v61 = vsub.s32 1, %v7823_v4  ;;  %s7742_s29 = smov 2   ;;  %s7743_s30 = smov 3  }
  0x17   : > { %196 = vst [vmem:[#allocation3 + $0xa8] sm:$0xff] %v7731_v2  ;;  %197 = vst [vmem:[#allocation3 + $0x90] sm:$0xff] %v7731_v2  ;;  %v330_v32 = vadd.s32 %v326_v24, %v252_v18  ;;  %v331_v33 = vadd.s32 %v326_v24, %v259_v19  ;;  %v332_v34 = vadd.s32 %v326_v24, %v266_v20  ;;  %s7744_s4 = smov 126   ;;  %s7745_s5 = smov 124  }
  0x18   : > { %198 = vst [vmem:[#allocation3 + $0xe0] sm:$0xff] %v7731_v2  ;;  %199 = vst [vmem:[#allocation3 + $0x88] sm:$0xff] %v7731_v2  ;;  %v333_v35 = vadd.s32 %v326_v24, %v273_v21  ;;  %vm335_vm1 = vcmp.ge.s32.totalorder %v327_v29, 0  ;;  %v334_v37 = vadd.s32 %v326_v24, %v280_v26  ;;  %vm336_vm2 = vcmp.ge.s32.totalorder %v328_v30, 0  ;;  %s7746_s6 = smov 125   ;;  %s7748_s16 = smov 64  }
  0x19   : > { %200 = vst [vmem:[#allocation3 + $0xc0] sm:$0xff] %v7731_v2  ;;  %201 = vst [vmem:[#allocation3 + $0x118] sm:$0xff] %v7731_v2  ;;  %vm337_vm3 = vcmp.ge.s32.totalorder %v329_v31, 0  ;;  %vm338_vm4 = vcmp.ge.s32.totalorder %v330_v32, 0  ;;  %vm339_vm5 = vcmp.ge.s32.totalorder %v331_v33, 0  ;;  %vm343_vm6 = vcmp.lt.s32.totalorder %v327_v29, 32 }
  0x1a   : > { %202 = vst [vmem:[#allocation3 + $0xd8] sm:$0xff] %v7731_v2  ;;  %203 = vst [vmem:[#allocation3 + $0xa0] sm:$0xff] %v7731_v2  ;;  %vm344_vm7 = vcmp.lt.s32.totalorder %v328_v30, 32  ;;  %vm345_vm8 = vcmp.lt.s32.totalorder %v329_v31, 32  ;;  %vm340_vm9 = vcmp.ge.s32.totalorder %v332_v34, 0  ;;  %vm346_vm11 = vcmp.lt.s32.totalorder %v330_v32, 32 }
  0x1b   : > { %204 = vst [vmem:[#allocation3 + $0x68] sm:$0xff] %v7731_v2  ;;  %205 = vst [vmem:[#allocation3 + $0x130] sm:$0xff] %v7731_v2  ;;  %vm347_vm12 = vcmp.lt.s32.totalorder %v331_v33, 32  ;;  %v7865_v41 = vrot.slane %v7845_v27, %v7852_v36  ;;  %vm348_vm15 = vcmp.lt.s32.totalorder %v332_v34, 32  ;;  %vm349_vm0 = vcmp.lt.s32.totalorder %v333_v35, 32 }
  0x1c   : > { %206 = vst [vmem:[#allocation3 + $0x50] sm:$0xff] %v7731_v2  ;;  %207 = vst [vmem:[#allocation3 + $0xe8] sm:$0xff] %v7731_v2  ;;  %v7877_v45 = vcombine.high %v7857_v39, %v7857_v39  ;;  %v7881_v46 = vcombine.high %v7861_v40, %v7861_v40  ;;  %v7892_v49 = vrot.slane %v7871_v43, %v7852_v36  ;;  %v7994_v34 = vsub.s32 5, %v7823_v4 }
  0x1d   : > { %208 = vst [vmem:[#allocation3 + $0x58] sm:$0xff] %v7731_v2  ;;  %209 = vst [vmem:[#allocation3 + $0x78] sm:$0xff] %v7731_v2  ;;  %v7885_v47 = vcombine.high %v7865_v41, %v7865_v41 }
  0x1e   : > { %210 = vst [vmem:[#allocation3 + $0x30] sm:$0xff] %v7731_v2  ;;  %211 = vst [vmem:[#allocation3 + $0x40] sm:$0xff] %v7731_v2  ;;  %v7906_v52 = vcombine.high %v7892_v49, %v7892_v49 }
  0x1f   : > { %212 = vst [vmem:[#allocation3 + $0x28] sm:$0xff] %v7731_v2  ;;  %10690 = vst [vmem:[#allocation5_spill] sm:$0xff] %v7840_v23 }
  0x20   : > { %7011 = vst.sshfl [vmem:[#allocation2 + $0x10] sm:$0x3 pattern:$0x76325410] %v7840_v23  ;;  %10691 = vst [vmem:[#allocation6_spill] sm:$0xff] %v7845_v27 }
  0x21   : > { %10692 = vst [vmem:[#allocation7_spill] sm:$0xff] %v7847_v28  ;;  %7013 = vst.sshfl [vmem:[#allocation2 + $0x30] sm:$0x3 pattern:$0x76325410] %v7847_v28 }
  0x22   : > { %7012 = vst.sshfl [vmem:[#allocation2 + $0x20] sm:$0x3 pattern:$0x76325410] %v7845_v27  ;;  %10693 = vst [vmem:[#allocation8_spill] sm:$0xff] %v7852_v36 }
  0x23   : > { %vm351_vm13 = vmand %vm335_vm1, %vm343_vm6  ;;  %10694 = vst [vmem:[#allocation9_spill] sm:$0xff] %v7857_v39  ;;  %v2309_v39 = vld [vmem:[#allocation2 + $0x8] sm:$0x7f] }
  0x24   : > { %vm352_vm14 = vmand %vm336_vm2, %vm344_vm7  ;;  %v7003_v38 = vsel %vm351_vm13, 1.0, %v7730_v1  ;;  %10695 = vst [vmem:[#allocation10_spill] sm:$0xff] %v7861_v40  ;;  %vm342_vm2 = vcmp.ge.s32.totalorder %v334_v37, 0  ;;  %vm876_vm13 = vcmask 1039360  }
  0x25   : > { %10696 = vst [vmem:[#allocation11_spill] sm:$0xff] %v7865_v41  ;;  %vm353_vm10 = vmand %vm337_vm3, %vm345_vm8  ;;  %v7004_v42 = vsel %vm352_vm14, 1.0, %v7730_v1  ;;  %vm350_vm3 = vcmp.lt.s32.totalorder %v334_v37, 32  ;;  %vm499_vm14 = vcmask 777216  }
  0x26   : > { %375 = vst [vmem:[#allocation4] sm:$0xff] %v7003_v38  ;;  %10697 = vst [vmem:[#allocation12_spill] sm:$0xff] %v7871_v43  ;;  %v7005_v44 = vsel %vm353_vm10, 1.0, %v7730_v1  ;;  %vm799_vm10 = vcmask 252928  }
  0x27   : > { %vm354_vm1 = vmand %vm338_vm4, %vm346_vm11  ;;  %376 = vst [vmem:[#allocation4 + $0x8] sm:$0xff] %v7004_v42  ;;  %vm950_vm11 = vcmask 7168  }
  0x28   : > { %10698 = vst [vmem:[#allocation13_spill] sm:$0xff] %v7877_v45  ;;  %10699 = vst [vmem:[#allocation14_spill] sm:$0xff] %v7881_v46  ;;  %v7006_v48 = vsel %vm354_vm1, 1.0, %v7730_v1  ;;  %vm647_vm1 = vcmask 261120  }
  0x29   : > { %10700 = vst [vmem:[#allocation15_spill] sm:$0xff] %v7885_v47  ;;  %vm355_vm4 = vmand %vm339_vm5, %vm347_vm12  ;;  %vm10702_vm5 = vcmp.ge.s32.totalorder %v333_v35, 0  ;;  %v7997_v35 = vsub.s32 4, %v7823_v4  ;;  %vm725_vm12 = vcmask 793600  }
  0x2a   : > { %377 = vst [vmem:[#allocation4 + $0x10] sm:$0xff] %v7005_v44  ;;  %10701 = vst [vmem:[#allocation16_spill] sm:$0xff] %v7892_v49  ;;  %v7007_v50 = vsel %vm355_vm4, 1.0, %v7730_v1 }
  0x2b   : > { %7014 = vst.sshfl [vmem:[#allocation2 + $0x40] sm:$0x3 pattern:$0x76325410] %v7871_v43  ;;  %vm356_vm6 = vmand %vm340_vm9, %vm348_vm15  ;;  %vm574_vm9 = vcmask 269312   ;;  %vm1369_vm15 = vcmask 785408  }
  0x2c   : > { %378 = vst [vmem:[#allocation4 + $0x18] sm:$0xff] %v7006_v48  ;;  %430 = vst [vmem:[#allocation2 + $0x18] sm:$0x3] %v7877_v45  ;;  %v7008_v51 = vsel %vm356_vm6, 1.0, %v7730_v1  ;;  %vm2371_vm6 = vcmask 1031168  }
  0x2d   : > { %434 = vst [vmem:[#allocation2 + $0x38] sm:$0x3] %v7881_v46  ;;  %432 = vst [vmem:[#allocation2 + $0x28] sm:$0x3] %v7885_v47  ;;  %v1984_v46 = vld [vmem:[#allocation2 + $0x8] sm:$0x7f] }
  0x2e   : > { %vm357_vm7 = vmand %vm10702_vm5, %vm349_vm0  ;;  %379 = vst [vmem:[#allocation4 + $0x20] sm:$0xff] %v7007_v50  ;;  %vm572_vm0 = vcmask 1043456   ;;  %vm2131_vm5 = vsmask.f32 3328 }
  0x2f   : > { %10703 = vst [vmem:[#allocation17_spill] sm:$0xff] %v7906_v52  ;;  %vm358_vm8 = vmand %vm342_vm2, %vm350_vm3  ;;  %v7009_v53 = vsel %vm357_vm7, 1.0, %v7730_v1  ;;  %vm1759_vm2 = vcmask 588800   ;;  %vm2119_vm7 = vcmask 31744  }
  0x30   : > { %380 = vst [vmem:[#allocation4 + $0x28] sm:$0xff] %v7008_v51  ;;  %v7010_v54 = vsel %vm358_vm8, 1.0, %v7730_v1  ;;  %381 = vst [vmem:[#allocation4 + $0x30] sm:$0xff] %v7009_v53  ;;  %vm2133_vm8 = vcmask 1047556  }
  0x31   : > { %436 = vst [vmem:[#allocation2 + $0x48] sm:$0x3] %v7906_v52  ;;  %382 = vst [vmem:[#allocation4 + $0x38] sm:$0xff] %v7010_v54 }
  0x32   : > { %10704 = vst [vmem:[#allocation18_spill] sm:$0xff] %v7922_v60  ;;  %10705 = vst [vmem:[#allocation19_spill] sm:$0xff] %v7994_v34 }
  0x33   : > { %v1394_v55 = vld [vmem:[#allocation4 + $0x4] ss:$8 sm:$0xf]  ;;  %v1170_v62 = vld [vmem:[#allocation4 + $0x3] ss:$8 sm:$0xf] }
  0x34   : > { %v1019_v8 = vld [vmem:[#allocation4 + $0x4] ss:$8 sm:$0xf]  ;;  %v824_v22 = vld [vmem:[#allocation4 + $0x3] ss:$8 sm:$0xf] }
  0x35   : > { %v673_v15 = vld [vmem:[#allocation4 + $0x4] ss:$8 sm:$0xf]  ;;  %10706 = vst [vmem:[#allocation20_spill] sm:$0xff] %v7997_v35 }
  0x36   : > { %v447_v37 = vld [vmem:[#allocation4 + $0x3] ss:$8 sm:$0xf] }
  0x38   : > { %v1395_v58 = vld [vmem:[#allocation4 + $0x4] ss:$8 sm:$0xf0]  ;;  %v1171_v63 = vld [vmem:[#allocation4 + $0x3] ss:$8 sm:$0xf0] }
  0x39   : > { %v7919_v59 = vor.u32 %v1395_v58, %v1394_v55  ;;  %v7937_v5 = vor.u32 %v1171_v63, %v1170_v62  ;;  %v1020_v9 = vld [vmem:[#allocation4 + $0x4] ss:$8 sm:$0xf0]  ;;  %v825_v24 = vld [vmem:[#allocation4 + $0x3] ss:$8 sm:$0xf0] }
  0x3a   : > { %v7951_v12 = vor.u32 %v1020_v9, %v1019_v8  ;;  %v674_v16 = vld [vmem:[#allocation4 + $0x4] ss:$8 sm:$0xf0]  ;;  %v7979_v29 = vor.u32 %v825_v24, %v824_v22  ;;  %v448_v38 = vld [vmem:[#allocation4 + $0x3] ss:$8 sm:$0xf0] }
  0x3b   : > { %v1409_v0 = vrot.slane %v7919_v59, %v7914_v56  ;;  %v1401_v1 = vrot.slane %v7919_v59, %v7917_v57  ;;  %v1413_v2 = vrot.slane %v7919_v59, %v7922_v60  ;;  %v1405_v3 = vrot.slane %v7919_v59, %v7925_v61  ;;  %v1315_v22 = vld [vmem:[#allocation2 + $0x28] sm:$0x3] }
  0x3c   : > { %v1181_v6 = vrot.slane %v7937_v5, %v7925_v61  ;;  %v1177_v7 = vrot.slane %v7937_v5, %v7917_v57  ;;  %v1189_v10 = vrot.slane %v7937_v5, %v7922_v60  ;;  %v1185_v11 = vrot.slane %v7937_v5, %v7914_v56 }
  0x3d   : > { %1434 = vrot.lane.b32.xlu1 %v1409_v0, %s7733_s18  ;;  %1430 = vrot.lane.b32.xlu0 %v1401_v1, %s7733_s18  ;;  %v1030_v13 = vrot.slane %v7951_v12, %v7925_v61  ;;  %v1026_v14 = vrot.slane %v7951_v12, %v7917_v57  ;;  %v1038_v17 = vrot.slane %v7951_v12, %v7922_v60  ;;  %v8026_v0 = vsub.s32 7, %v7823_v4 }
  0x3e   : > { %v1034_v18 = vrot.slane %v7951_v12, %v7914_v56  ;;  %v7965_v19 = vor.u32 %v674_v16, %v673_v15  ;;  %v835_v30 = vrot.slane %v7979_v29, %v7925_v61  ;;  %v831_v31 = vrot.slane %v7979_v29, %v7917_v57 }
  0x3f   : > { %v843_v32 = vrot.slane %v7979_v29, %v7922_v60  ;;  %v839_v33 = vrot.slane %v7979_v29, %v7914_v56  ;;  %v1421_v42 = vrot.slane %v7919_v59, %v7994_v34  ;;  %v1417_v44 = vrot.slane %v7919_v59, %v7997_v35  ;;  %10707 = vst [vmem:[#allocation21_spill] sm:$0xff] %v8026_v0 }
  0x40   : > { %v684_v20 = vrot.slane %v7965_v19, %v7925_v61  ;;  %v680_v21 = vrot.slane %v7965_v19, %v7917_v57  ;;  %v692_v25 = vrot.slane %v7965_v19, %v7922_v60  ;;  %v688_v26 = vrot.slane %v7965_v19, %v7914_v56 }
  0x41   : > { %1436 = vrot.lane.b32.xlu1 %v1413_v2, %s7733_s18  ;;  %1432 = vrot.lane.b32.xlu0 %v1405_v3, %s7733_s18  ;;  %v449_v48 = vor.u32 %v448_v38, %v447_v37  ;;  %v1197_v55 = vrot.slane %v7937_v5, %v7994_v34  ;;  %v1193_v58 = vrot.slane %v7937_v5, %v7997_v35  ;;  %v8029_v1 = vsub.s32 6, %v7823_v4  ;;  %v1316_v37 = vld [vmem:[#allocation2 + $0x30] sm:$0x3]  ;;  %v1317_v38 = vld [vmem:[#allocation2 + $0x38] sm:$0x3] }
  0x42   : > { %v1046_v62 = vrot.slane %v7951_v12, %v7994_v34  ;;  %v1042_v63 = vrot.slane %v7951_v12, %v7997_v35  ;;  %v1429_v2 = vrot.slane %v7919_v59, %v8026_v0  ;;  %v696_v4 = vrot.slane %v7965_v19, %v7997_v35 }
  0x43   : > { %v458_v50 = vrot.slane %v449_v48, %v7925_v61  ;;  %v454_v51 = vrot.slane %v449_v48, %v7917_v57  ;;  %v466_v53 = vrot.slane %v449_v48, %v7922_v60  ;;  %v462_v54 = vrot.slane %v449_v48, %v7914_v56  ;;  %10708 = vst [vmem:[#allocation22_spill] sm:$0xff] %v8029_v1 }
  0x44   : > { %v1425_v3 = vrot.slane %v7919_v59, %v8029_v1  ;;  %v847_v59 = vrot.slane %v7979_v29, %v7997_v35  ;;  %v1205_v8 = vrot.slane %v7937_v5, %v8026_v0  ;;  %v1201_v9 = vrot.slane %v7937_v5, %v8029_v1 }
  0x45   : > { %1208 = vrot.lane.b32.xlu1 %v1181_v6, %s7734_s19  ;;  %1206 = vrot.lane.b32.xlu0 %v1177_v7, %s7734_s19  ;;  %v700_v6 = vrot.slane %v7965_v19, %v7994_v34  ;;  %v851_v7 = vrot.slane %v7979_v29, %v7994_v34  ;;  %v708_v5 = vrot.slane %v7965_v19, %v8026_v0 }
  0x46   : > { %v704_v15 = vrot.slane %v7965_v19, %v8029_v1  ;;  %v859_v16 = vrot.slane %v7979_v29, %v8026_v0  ;;  %v1313_v19 = vld [vmem:[#allocation2 + $0x18] sm:$0x3] }
  0x49   : > { %1212 = vrot.lane.b32.xlu1 %v1189_v10, %s7734_s19  ;;  %1210 = vrot.lane.b32.xlu0 %v1185_v11, %s7734_s19  ;;  %v474_v10 = vrot.slane %v449_v48, %v7994_v34  ;;  %v470_v11 = vrot.slane %v449_v48, %v7997_v35 }
  0x4d   : > { %1057 = vrot.lane.b32.xlu1 %v1030_v13, %s7735_s20  ;;  %1055 = vrot.lane.b32.xlu0 %v1026_v14, %s7735_s20  ;;  %v1054_v13 = vrot.slane %v7951_v12, %v8026_v0  ;;  %v1050_v14 = vrot.slane %v7951_v12, %v8029_v1  ;;  %v855_v12 = vrot.slane %v7979_v29, %v8029_v1  ;;  %v592_v29 = vld [vmem:[#allocation2 + $0x18] sm:$0x3] }
  0x51   : > { %1061 = vrot.lane.b32.xlu1 %v1038_v17, %s7735_s20  ;;  %1059 = vrot.lane.b32.xlu0 %v1034_v18, %s7735_s20  ;;  %v482_v17 = vrot.slane %v449_v48, %v8026_v0  ;;  %v478_v18 = vrot.slane %v449_v48, %v8029_v1  ;;  %v1319_v48 = vld [vmem:[#allocation2 + $0x48] sm:$0x3] }
  0x55   : > { %711 = vrot.lane.b32.xlu1 %v684_v20, %s7736_s21  ;;  %709 = vrot.lane.b32.xlu0 %v680_v21, %s7736_s21  ;;  %v1312_v20 = vld [vmem:[#allocation2 + $0x10] sm:$0x3]  ;;  %v1314_v21 = vld [vmem:[#allocation2 + $0x20] sm:$0x3] }
  0x56   : > { %v7463_v24 = vpack.c.bf16 %v1313_v19, %v1312_v20  ;;  %v1164_v20 = vld [vmem:[#allocation2 + $0x28] sm:$0x3] }
  0x59   : > { %715 = vrot.lane.b32.xlu1 %v692_v25, %s7736_s21  ;;  %713 = vrot.lane.b32.xlu0 %v688_v26, %s7736_s21  ;;  %v593_v25 = vld [vmem:[#allocation2 + $0x20] sm:$0x3]  ;;  %v7464_v26 = vpack.c.bf16 %v1315_v22, %v1314_v21 }
  0x5d   : > { %862 = vrot.lane.b32.xlu1 %v835_v30, %s7737_s22  ;;  %860 = vrot.lane.b32.xlu0 %v831_v31, %s7737_s22  ;;  %v590_v30 = vld [vmem:[#allocation2 + $0x8] sm:$0x3]  ;;  %v591_v31 = vld [vmem:[#allocation2 + $0x10] sm:$0x3] }
  0x61   : > { %866 = vrot.lane.b32.xlu1 %v843_v32, %s7737_s22  ;;  %864 = vrot.lane.b32.xlu0 %v839_v33, %s7737_s22  ;;  %v7435_v32 = vpack.c.bf16 %v593_v25, %v592_v29  ;;  %v7434_v33 = vpack.c.bf16 %v591_v31, %v590_v30  ;;  %v966_v31 = vld [vmem:[#allocation2 + $0x10] sm:$0x3] }
  0x65   : > { %1440 = vrot.lane.b32.xlu1 %v1421_v42, %s7733_s18  ;;  %1438 = vrot.lane.b32.xlu0 %v1417_v44, %s7733_s18  ;;  %v7465_v42 = vpack.c.bf16 %v1317_v38, %v1316_v37  ;;  %v1318_v44 = vld [vmem:[#allocation2 + $0x40] sm:$0x3] }
  0x69   : > { %485 = vrot.lane.b32.xlu1 %v458_v50, %s7738_s23  ;;  %483 = vrot.lane.b32.xlu0 %v454_v51, %s7738_s23  ;;  %v7466_v50 = vpack.c.bf16 %v1319_v48, %v1318_v44 }
  0x6d   : > { %489 = vrot.lane.b32.xlu1 %v466_v53, %s7738_s23  ;;  %487 = vrot.lane.b32.xlu0 %v462_v54, %s7738_s23  ;;  %v1385_v54 = vld [vmem:[#allocation2 + $0x10] sm:$0x3] }
  0x71   : > { %1216 = vrot.lane.b32.xlu1 %v1197_v55, %s7734_s19  ;;  %1214 = vrot.lane.b32.xlu0 %v1193_v58, %s7734_s19  ;;  %v1388_v55 = vld [vmem:[#allocation2 + $0x28] sm:$0x3]  ;;  %v1386_v58 = vld [vmem:[#allocation2 + $0x18] sm:$0x3] }
  0x75   : > { %1065 = vrot.lane.b32.xlu1 %v1046_v62, %s7735_s20  ;;  %1063 = vrot.lane.b32.xlu0 %v1042_v63, %s7735_s20  ;;  %v1387_v62 = vld [vmem:[#allocation2 + $0x20] sm:$0x3] }
  0x79   : > { %1444 = vrot.lane.b32.xlu1 %v1429_v2, %s7733_s18  ;;  %1442 = vrot.lane.b32.xlu0 %v1425_v3, %s7733_s18 }
  0x7d   : > { %719 = vrot.lane.b32.xlu1 %v700_v6, %s7736_s21  ;;  %717 = vrot.lane.b32.xlu0 %v696_v4, %s7736_s21 }
  0x81   : > { %870 = vrot.lane.b32.xlu1 %v851_v7, %s7737_s22  ;;  %868 = vrot.lane.b32.xlu0 %v847_v59, %s7737_s22 }
  0x85   : > { %1220 = vrot.lane.b32.xlu1 %v1205_v8, %s7734_s19  ;;  %1218 = vrot.lane.b32.xlu0 %v1201_v9, %s7734_s19 }
  0x89   : > { %493 = vrot.lane.b32.xlu1 %v474_v10, %s7738_s23  ;;  %491 = vrot.lane.b32.xlu0 %v470_v11, %s7738_s23  ;;  %v1161_v10 = vld [vmem:[#allocation2 + $0x10] sm:$0x3]  ;;  %v1162_v11 = vld [vmem:[#allocation2 + $0x18] sm:$0x3] }
  0x8d   : > { %1069 = vrot.lane.b32.xlu1 %v1054_v13, %s7735_s20  ;;  %1067 = vrot.lane.b32.xlu0 %v1050_v14, %s7735_s20 }
  0x91   : > { %723 = vrot.lane.b32.xlu1 %v708_v5, %s7736_s21  ;;  %721 = vrot.lane.b32.xlu0 %v704_v15, %s7736_s21 }
  0x95   : > { %874 = vrot.lane.b32.xlu1 %v859_v16, %s7737_s22  ;;  %872 = vrot.lane.b32.xlu0 %v855_v12, %s7737_s22 }
  0x99   : > { %497 = vrot.lane.b32.xlu1 %v482_v17, %s7738_s23  ;;  %495 = vrot.lane.b32.xlu0 %v478_v18, %s7738_s23  ;;  %v1163_v18 = vld [vmem:[#allocation2 + $0x20] sm:$0x3] }
  0x9d   : > { %1353 = vrot.lane.b32.xlu0 %v7463_v24, %s7739_s24  ;;  %1355 = vrot.lane.b32.xlu1 %v7464_v26, %s7739_s24  ;;  %v1010_v26 = vld [vmem:[#allocation2 + $0x10] sm:$0x3] }
  0xa1   : > { %633 = vrot.lane.b32.xlu0 %v7435_v32, %s7740_s25  ;;  %631 = vrot.lane.b32.xlu1 %v7434_v33, %s7740_s25  ;;  %v967_v32 = vld [vmem:[#allocation2 + $0x18] sm:$0x3] }
  0xa2   : > { %v1011_v33 = vld [vmem:[#allocation2 + $0x18] sm:$0x3]  ;;  %v7449_v37 = vpack.c.bf16 %v967_v32, %v966_v31 }
  0xa4   : > { %1006 = vst [vmem:[#allocation3 + $0x128] sm:$0x11] %v7449_v37  ;;  %v817_v37 = vld [vmem:[#allocation2 + $0x18] sm:$0x3] }
  0xa5   : > { %1357 = vrot.lane.b32.xlu0 %v7465_v42, %s7739_s24 }
  0xa9   : > { %1359 = vrot.lane.b32.xlu0 %v7466_v50, %s7739_s24 }
  0xaf   : > { %v1435_v51 = vpop.permute.xlu1 %1434  ;;  %v1431_v53 = vpop.permute.xlu0 %1430 }
  0xb0   : > { %v1463_v7 = vmul.f32 %v1431_v53, %v1385_v54  ;;  %v1013_v54 = vld [vmem:[#allocation2 + $0x28] sm:$0x3] }
  0xb3   : > { %v8089_v63 = vpop.permute.xlu1 %1436  ;;  %v1433_v2 = vpop.permute.xlu0 %1432 }
  0xb4   : > { %v1449_v3 = vsel %vm574_vm9, %v1435_v51, %v8089_v63  ;;  %v1447_v6 = vsel %vm574_vm9, %v1431_v53, %v1433_v2  ;;  %v1448_v4 = vsel %vm574_vm9, %v1433_v2, %v1435_v51  ;;  %v1012_v53 = vld [vmem:[#allocation2 + $0x20] sm:$0x3] }
  0xb5   : > { %v1466_v59 = vmul.f32 %v1449_v3, %v1388_v55  ;;  %v1464_v8 = vmul.f32 %v1447_v6, %v1386_v58  ;;  %v1465_v9 = vmul.f32 %v1448_v4, %v1387_v62 }
  0xb7   : > { %v1209_v13 = vpop.permute.xlu1 %1208  ;;  %v1207_v14 = vpop.permute.xlu0 %1206  ;;  %v7468_v5 = vpack.c.bf16 %v1464_v8, %v1463_v7  ;;  %v7469_v15 = vpack.c.bf16 %v1466_v59, %v1465_v9  ;;  %v663_v7 = vld [vmem:[#allocation2 + $0x8] sm:$0x3]  ;;  %v664_v59 = vld [vmem:[#allocation2 + $0x10] sm:$0x3] }
  0xb8   : > { %v1223_v16 = vsel %vm799_vm10, %v1207_v14, %v1209_v13  ;;  %v1239_v12 = vmul.f32 %v1207_v14, %v1161_v10 }
  0xb9   : > { %v1240_v17 = vmul.f32 %v1223_v16, %v1162_v11  ;;  %1504 = vrot.lane.b32.xlu0 %v7468_v5, %s7738_s23  ;;  %1506 = vrot.lane.b32.xlu1 %v7469_v15, %s7738_s23  ;;  %v665_v5 = vld [vmem:[#allocation2 + $0x18] sm:$0x3]  ;;  %v666_v15 = vld [vmem:[#allocation2 + $0x20] sm:$0x3] }
  0xbb   : > { %v8098_v19 = vpop.permute.xlu1 %1212  ;;  %v1211_v21 = vpop.permute.xlu0 %1210  ;;  %v7458_v22 = vpack.c.bf16 %v1240_v17, %v1239_v12 }
  0xbc   : > { %v1224_v24 = vsel %vm799_vm10, %v1209_v13, %v1211_v21  ;;  %v1225_v25 = vsel %vm799_vm10, %v1211_v21, %v8098_v19 }
  0xbd   : > { %v1241_v29 = vmul.f32 %v1224_v24, %v1163_v18  ;;  %v1242_v30 = vmul.f32 %v1225_v25, %v1164_v20  ;;  %1280 = vrot.lane.b32.xlu0 %v7458_v22, %s7736_s21  ;;  %v815_v24 = vld [vmem:[#allocation2 + $0x8] sm:$0x3]  ;;  %v816_v25 = vld [vmem:[#allocation2 + $0x10] sm:$0x3] }
  0xbf   : > { %v1058_v38 = vpop.permute.xlu1 %1057  ;;  %v1056_v42 = vpop.permute.xlu0 %1055  ;;  %v7459_v44 = vpack.c.bf16 %v1242_v30, %v1241_v29 }
  0xc0   : > { %v1072_v48 = vsel %vm950_vm11, %v1056_v42, %v1058_v38  ;;  %v1088_v50 = vmul.f32 %v1056_v42, %v1010_v26 }
  0xc1   : > { %v1089_v51 = vmul.f32 %v1072_v48, %v1011_v33  ;;  %1282 = vrot.lane.b32.xlu1 %v7459_v44, %s7736_s21 }
  0xc3   : > { %v8106_v55 = vpop.permute.xlu1 %1061  ;;  %v1060_v58 = vpop.permute.xlu0 %1059  ;;  %v7453_v62 = vpack.c.bf16 %v1089_v51, %v1088_v50 }
  0xc4   : > { %v1073_v2 = vsel %vm950_vm11, %v1058_v38, %v1060_v58  ;;  %v1074_v3 = vsel %vm950_vm11, %v1060_v58, %v8106_v55  ;;  %v818_v38 = vld [vmem:[#allocation2 + $0x20] sm:$0x3]  ;;  %v1389_v58 = vld [vmem:[#allocation2 + $0x30] sm:$0x3] }
  0xc5   : > { %v1090_v6 = vmul.f32 %v1073_v2, %v1012_v53  ;;  %v1091_v4 = vmul.f32 %v1074_v3, %v1013_v54  ;;  %1129 = vrot.lane.b32.xlu0 %v7453_v62, %s7737_s22  ;;  %v1390_v62 = vld [vmem:[#allocation2 + $0x38] sm:$0x3] }
  0xc7   : > { %v712_v8 = vpop.permute.xlu1 %711  ;;  %v710_v9 = vpop.permute.xlu0 %709  ;;  %v7454_v10 = vpack.c.bf16 %v1091_v4, %v1090_v6 }
  0xc8   : > { %v726_v11 = vsel %vm725_vm12, %v710_v9, %v712_v8  ;;  %v742_v13 = vmul.f32 %v710_v9, %v663_v7  ;;  %v437_v9 = vld [vmem:[#allocation2 + $0x8] sm:$0x3] }
  0xc9   : > { %v743_v14 = vmul.f32 %v726_v11, %v664_v59  ;;  %1131 = vrot.lane.b32.xlu1 %v7454_v10, %s7737_s22  ;;  %v438_v10 = vld [vmem:[#allocation2 + $0x10] sm:$0x3] }
  0xcb   : > { %v8114_v16 = vpop.permute.xlu1 %715  ;;  %v714_v12 = vpop.permute.xlu0 %713  ;;  %v7439_v17 = vpack.c.bf16 %v743_v14, %v742_v13 }
  0xcc   : > { %v727_v18 = vsel %vm725_vm12, %v712_v8, %v714_v12  ;;  %v728_v20 = vsel %vm725_vm12, %v714_v12, %v8114_v16 }
  0xcd   : > { %v744_v21 = vmul.f32 %v727_v18, %v665_v5  ;;  %v745_v22 = vmul.f32 %v728_v20, %v666_v15  ;;  %783 = vrot.lane.b32.xlu0 %v7439_v17, %s7734_s19  ;;  %v439_v17 = vld [vmem:[#allocation2 + $0x18] sm:$0x3] }
  0xcf   : > { %v863_v26 = vpop.permute.xlu1 %862  ;;  %v861_v29 = vpop.permute.xlu0 %860  ;;  %v7440_v30 = vpack.c.bf16 %v745_v22, %v744_v21 }
  0xd0   : > { %v877_v31 = vsel %vm876_vm13, %v861_v29, %v863_v26  ;;  %v893_v32 = vmul.f32 %v861_v29, %v815_v24  ;;  %v968_v29 = vld [vmem:[#allocation2 + $0x20] sm:$0x3] }
  0xd1   : > { %v894_v33 = vmul.f32 %v877_v31, %v816_v25  ;;  %785 = vrot.lane.b32.xlu1 %v7440_v30, %s7734_s19  ;;  %v1165_v30 = vld [vmem:[#allocation2 + $0x30] sm:$0x3]  ;;  %v1166_v31 = vld [vmem:[#allocation2 + $0x38] sm:$0x3] }
  0xd3   : > { %v8122_v42 = vpop.permute.xlu1 %866  ;;  %v865_v44 = vpop.permute.xlu0 %864  ;;  %v7444_v48 = vpack.c.bf16 %v894_v33, %v893_v32  ;;  %v969_v32 = vld [vmem:[#allocation2 + $0x28] sm:$0x3] }
  0xd4   : > { %v878_v50 = vsel %vm876_vm13, %v863_v26, %v865_v44  ;;  %v879_v51 = vsel %vm876_vm13, %v865_v44, %v8122_v42  ;;  %v7450_v44 = vpack.c.bf16 %v969_v32, %v968_v29  ;;  %v820_v29 = vld [vmem:[#allocation2 + $0x30] sm:$0x3] }
  0xd5   : > { %v895_v53 = vmul.f32 %v878_v50, %v817_v37  ;;  %v896_v54 = vmul.f32 %v879_v51, %v818_v38  ;;  %934 = vrot.lane.b32.xlu0 %v7444_v48, %s7735_s20 }
  0xd6   : > { %1007 = vst [vmem:[#allocation3 + $0x110] sm:$0x11] %v7450_v44 }
  0xd7   : > { %v1441_v2 = vpop.permute.xlu1 %1440  ;;  %v1439_v3 = vpop.permute.xlu0 %1438  ;;  %v7445_v6 = vpack.c.bf16 %v896_v54, %v895_v53  ;;  %v1014_v54 = vld [vmem:[#allocation2 + $0x30] sm:$0x3] }
  0xd8   : > { %v1450_v4 = vsel %vm574_vm9, %v8089_v63, %v1439_v3  ;;  %v1451_v7 = vsel %vm574_vm9, %v1439_v3, %v1441_v2  ;;  %v440_v63 = vld [vmem:[#allocation2 + $0x20] sm:$0x3] }
  0xd9   : > { %v1467_v59 = vmul.f32 %v1450_v4, %v1389_v58  ;;  %v1468_v8 = vmul.f32 %v1451_v7, %v1390_v62  ;;  %936 = vrot.lane.b32.xlu1 %v7445_v6, %s7735_s20  ;;  %v1015_v58 = vld [vmem:[#allocation2 + $0x38] sm:$0x3] }
  0xdb   : > { %v486_v11 = vpop.permute.xlu1 %485  ;;  %v484_v13 = vpop.permute.xlu0 %483  ;;  %v7470_v14 = vpack.c.bf16 %v1468_v8, %v1467_v59  ;;  %v1391_v8 = vld [vmem:[#allocation2 + $0x40] sm:$0x3] }
  0xdc   : > { %v500_v5 = vsel %vm499_vm14, %v484_v13, %v486_v11  ;;  %v516_v15 = vmul.f32 %v484_v13, %v437_v9  ;;  %v1392_v9 = vld [vmem:[#allocation2 + $0x48] sm:$0x3] }
  0xdd   : > { %v517_v12 = vmul.f32 %v500_v5, %v438_v10  ;;  %1508 = vrot.lane.b32.xlu0 %v7470_v14, %s7738_s23 }
  0xdf   : > { %v8134_v18 = vpop.permute.xlu1 %489  ;;  %v488_v20 = vpop.permute.xlu0 %487  ;;  %v7429_v21 = vpack.c.bf16 %v517_v12, %v516_v15  ;;  %v667_v12 = vld [vmem:[#allocation2 + $0x28] sm:$0x3] }
  0xe0   : > { %v501_v22 = vsel %vm499_vm14, %v486_v11, %v488_v20  ;;  %v502_v24 = vsel %vm499_vm14, %v488_v20, %v8134_v18 }
  0xe1   : > { %v518_v25 = vmul.f32 %v501_v22, %v439_v17  ;;  %v519_v26 = vmul.f32 %v502_v24, %v440_v63  ;;  %557 = vrot.lane.b32.xlu1 %v7429_v21, %s7733_s18  ;;  %v668_v17 = vld [vmem:[#allocation2 + $0x30] sm:$0x3] }
  0xe3   : > { %v1217_v33 = vpop.permute.xlu1 %1216  ;;  %v1215_v37 = vpop.permute.xlu0 %1214  ;;  %v7430_v38 = vpack.c.bf16 %v519_v26, %v518_v25  ;;  %v819_v26 = vld [vmem:[#allocation2 + $0x28] sm:$0x3] }
  0xe4   : > { %v1226_v48 = vsel %vm799_vm10, %v8098_v19, %v1215_v37  ;;  %v1227_v50 = vsel %vm799_vm10, %v1215_v37, %v1217_v33 }
  0xe5   : > { %v1243_v51 = vmul.f32 %v1226_v48, %v1165_v30  ;;  %v1244_v53 = vmul.f32 %v1227_v50, %v1166_v31  ;;  %559 = vrot.lane.b32.xlu0 %v7430_v38, %s7733_s18  ;;  %v1167_v48 = vld [vmem:[#allocation2 + $0x40] sm:$0x3]  ;;  %v1168_v50 = vld [vmem:[#allocation2 + $0x48] sm:$0x3] }
  0xe7   : > { %v8144_v62 = vpop.permute.xlu1 %1065  ;;  %v1064_v3 = vpop.permute.xlu0 %1063  ;;  %v7460_v6 = vpack.c.bf16 %v1244_v53, %v1243_v51  ;;  %v594_v51 = vld [vmem:[#allocation2 + $0x28] sm:$0x3]  ;;  %v595_v53 = vld [vmem:[#allocation2 + $0x30] sm:$0x3] }
  0xe8   : > { %v1075_v4 = vsel %vm950_vm11, %v8106_v55, %v1064_v3  ;;  %v1076_v7 = vsel %vm950_vm11, %v1064_v3, %v8144_v62 }
  0xe9   : > { %v1092_v19 = vmul.f32 %v1075_v4, %v1014_v54  ;;  %v1093_v59 = vmul.f32 %v1076_v7, %v1015_v58  ;;  %1284 = vrot.lane.b32.xlu1 %v7460_v6, %s7736_s21 }
  0xeb   : > { %v8151_v10 = vpop.permute.xlu1 %1444  ;;  %v1443_v11 = vpop.permute.xlu0 %1442  ;;  %v7455_v13 = vpack.c.bf16 %v1093_v59, %v1092_v19  ;;  %v441_v19 = vld [vmem:[#allocation2 + $0x28] sm:$0x3]  ;;  %v7436_v59 = vpack.c.bf16 %v595_v53, %v594_v51  ;;  %v821_v53 = vld [vmem:[#allocation2 + $0x38] sm:$0x3] }
  0xec   : > { %v1452_v14 = vsel %vm574_vm9, %v1441_v2, %v1443_v11  ;;  %v1453_v5 = vsel %vm574_vm9, %v1443_v11, %v8151_v10  ;;  %v971_v11 = vld [vmem:[#allocation2 + $0x38] sm:$0x3] }
  0xed   : > { %v1469_v15 = vmul.f32 %v1452_v14, %v1391_v8  ;;  %v1470_v55 = vmul.f32 %v1453_v5, %v1392_v9  ;;  %1133 = vrot.lane.b32.xlu1 %v7455_v13, %s7737_s22  ;;  %v442_v8 = vld [vmem:[#allocation2 + $0x30] sm:$0x3] }
  0xee   : > { %v970_v9 = vld [vmem:[#allocation2 + $0x30] sm:$0x3] }
  0xef   : > { %v8157_v63 = vpop.permute.xlu1 %719  ;;  %v718_v20 = vpop.permute.xlu0 %717  ;;  %v7471_v21 = vpack.c.bf16 %v1470_v55, %v1469_v15  ;;  %v7451_v15 = vpack.c.bf16 %v971_v11, %v970_v9  ;;  %v444_v9 = vld [vmem:[#allocation2 + $0x40] sm:$0x3]  ;;  %v596_v11 = vld [vmem:[#allocation2 + $0x38] sm:$0x3] }
  0xf0   : > { %v729_v22 = vsel %vm725_vm12, %v8114_v16, %v718_v20  ;;  %v730_v24 = vsel %vm725_vm12, %v718_v20, %v8157_v63  ;;  %v1016_v20 = vld [vmem:[#allocation2 + $0x40] sm:$0x3] }
  0xf1   : > { %v746_v2 = vmul.f32 %v729_v22, %v667_v12  ;;  %v747_v25 = vmul.f32 %v730_v24, %v668_v17  ;;  %1510 = vrot.lane.b32.xlu0 %v7471_v21, %s7738_s23  ;;  %1008 = vst [vmem:[#allocation3 + $0x8] sm:$0x11] %v7451_v15  ;;  %v1017_v21 = vld [vmem:[#allocation2 + $0x48] sm:$0x3] }
  0xf3   : > { %v8164_v30 = vpop.permute.xlu1 %870  ;;  %v869_v31 = vpop.permute.xlu0 %868  ;;  %v7441_v32 = vpack.c.bf16 %v747_v25, %v746_v2 }
  0xf4   : > { %v880_v37 = vsel %vm876_vm13, %v8122_v42, %v869_v31  ;;  %v881_v38 = vsel %vm876_vm13, %v869_v31, %v8164_v30  ;;  %v669_v31 = vld [vmem:[#allocation2 + $0x38] sm:$0x3] }
  0xf5   : > { %v897_v16 = vmul.f32 %v880_v37, %v819_v26  ;;  %v898_v44 = vmul.f32 %v881_v38, %v820_v29  ;;  %787 = vrot.lane.b32.xlu1 %v7441_v32, %s7734_s19  ;;  %v670_v32 = vld [vmem:[#allocation2 + $0x40] sm:$0x3] }
  0xf7   : > { %v8171_v54 = vpop.permute.xlu1 %1220  ;;  %v1219_v58 = vpop.permute.xlu0 %1218  ;;  %v7446_v3 = vpack.c.bf16 %v898_v44, %v897_v16  ;;  %v1393_v44 = vld [vmem:[#allocation2 + $0x50] sm:$0x3] }
  0xf8   : > { %v1228_v6 = vsel %vm799_vm10, %v1217_v33, %v1219_v58  ;;  %v1229_v42 = vsel %vm799_vm10, %v1219_v58, %v8171_v54  ;;  %v822_v58 = vld [vmem:[#allocation2 + $0x40] sm:$0x3] }
  0xf9   : > { %v1245_v4 = vmul.f32 %v1228_v6, %v1167_v48  ;;  %v1246_v7 = vmul.f32 %v1229_v42, %v1168_v50  ;;  %938 = vrot.lane.b32.xlu0 %v7446_v3, %s7735_s20  ;;  %v1471_v3 = vmul.f32 %v8151_v10, %v1393_v44 }
  0xfb   : > { %v494_v13 = vpop.permute.xlu1 %493  ;;  %v492_v14 = vpop.permute.xlu0 %491  ;;  %v7461_v5 = vpack.c.bf16 %v1246_v7, %v1245_v4 }
  0xfc   : > { %v503_v55 = vsel %vm499_vm14, %v8134_v18, %v492_v14  ;;  %v504_v33 = vsel %vm499_vm14, %v492_v14, %v494_v13  ;;  %v597_v14 = vld [vmem:[#allocation2 + $0x40] sm:$0x3] }
  0xfd   : > { %v520_v12 = vmul.f32 %v503_v55, %v441_v19  ;;  %v521_v17 = vmul.f32 %v504_v33, %v442_v8  ;;  %1286 = vrot.lane.b32.xlu1 %v7461_v5, %s7736_s21  ;;  %635 = vrot.lane.b32.xlu0 %v7436_v59, %s7740_s25  ;;  %v443_v8 = vld [vmem:[#allocation2 + $0x38] sm:$0x3]  ;;  %v7472_v55 = vpack.c.bf16 %v1471_v3, %v1471_v3  ;;  %v1169_v33 = vld [vmem:[#allocation2 + $0x50] sm:$0x3] }
  0xff   : > { %v8182_v22 = vpop.permute.xlu1 %1069  ;;  %v1068_v24 = vpop.permute.xlu0 %1067  ;;  %v7431_v2 = vpack.c.bf16 %v521_v17, %v520_v12 }
 0x100   : > { %v1077_v25 = vsel %vm950_vm11, %v8144_v62, %v1068_v24  ;;  %v1078_v18 = vsel %vm950_vm11, %v1068_v24, %v8182_v22  ;;  %v1320_v24 = vld [vmem:[#allocation2 + $0x50] sm:$0x3] }
 0x101   : > { %v1094_v26 = vmul.f32 %v1077_v25, %v1016_v20  ;;  %v1095_v29 = vmul.f32 %v1078_v18, %v1017_v21  ;;  %561 = vrot.lane.b32.xlu1 %v7431_v2, %s7733_s18  ;;  %v7437_v21 = vpack.c.bf16 %v597_v14, %v596_v11  ;;  %v972_v2 = vld [vmem:[#allocation2 + $0x40] sm:$0x3]  ;;  %v973_v25 = vld [vmem:[#allocation2 + $0x48] sm:$0x3]  ;;  %v1247_v18 = vmul.f32 %v8171_v54, %v1169_v33 }
 0x102   : > { %v3166_v33 = vld [vmem:[#allocation4 + $0x7] ss:$8 sm:$0xf0] }
 0x103   : > { %v724_v37 = vpop.permute.xlu1 %723  ;;  %v722_v38 = vpop.permute.xlu0 %721  ;;  %v7456_v16 = vpack.c.bf16 %v1095_v29, %v1094_v26  ;;  %v1018_v26 = vld [vmem:[#allocation2 + $0x50] sm:$0x3] }
 0x104   : > { %v731_v48 = vsel %vm725_vm12, %v8157_v63, %v722_v38  ;;  %v732_v50 = vsel %vm725_vm12, %v722_v38, %v724_v37  ;;  %v7452_v38 = vpack.c.bf16 %v973_v25, %v972_v2  ;;  %v2845_v25 = vld [vmem:[#allocation4 + $0x5] ss:$8 sm:$0xf] }
 0x105   : > { %v748_v51 = vmul.f32 %v731_v48, %v669_v31  ;;  %v749_v62 = vmul.f32 %v732_v50, %v670_v32  ;;  %1135 = vrot.lane.b32.xlu1 %v7456_v16, %s7737_s22  ;;  %v7467_v48 = vpack.c.bf16 %v1320_v24, %v1320_v24  ;;  %v1096_v50 = vmul.f32 %v8182_v22, %v1018_v26 }
 0x106   : > { %1009 = vst [vmem:[#allocation3 + $0x98] sm:$0x11] %v7452_v38 }
 0x107   : > { %v875_v6 = vpop.permute.xlu1 %874  ;;  %v873_v42 = vpop.permute.xlu0 %872  ;;  %v7442_v4 = vpack.c.bf16 %v749_v62, %v748_v51  ;;  %v823_v62 = vld [vmem:[#allocation2 + $0x48] sm:$0x3]  ;;  %v7457_v22 = vpack.c.bf16 %v1096_v50, %v1096_v50 }
 0x108   : > { %v882_v7 = vsel %vm876_vm13, %v8164_v30, %v873_v42  ;;  %v883_v19 = vsel %vm876_vm13, %v873_v42, %v875_v6 }
 0x109   : > { %v899_v59 = vmul.f32 %v882_v7, %v821_v53  ;;  %v900_v63 = vmul.f32 %v883_v19, %v822_v58  ;;  %789 = vrot.lane.b32.xlu0 %v7442_v4, %s7734_s19  ;;  %v7462_v53 = vpack.c.bf16 %v1247_v18, %v1247_v18  ;;  %v445_v4 = vld [vmem:[#allocation2 + $0x48] sm:$0x3]  ;;  %v2846_v18 = vld [vmem:[#allocation4 + $0x5] ss:$8 sm:$0xf0] }
 0x10b   : > { %v498_v5 = vpop.permute.xlu1 %497  ;;  %v496_v15 = vpop.permute.xlu0 %495  ;;  %v7447_v10 = vpack.c.bf16 %v900_v63, %v899_v59  ;;  %v901_v59 = vmul.f32 %v875_v6, %v823_v62 }
 0x10c   : > { %v505_v12 = vsel %vm499_vm14, %v494_v13, %v496_v15  ;;  %v506_v17 = vsel %vm499_vm14, %v496_v15, %v498_v5  ;;  %v671_v13 = vld [vmem:[#allocation2 + $0x48] sm:$0x3]  ;;  %v524_v63 = vmul.f32 %v498_v5, %v445_v4 }
 0x10d   : > { %v522_v30 = vmul.f32 %v505_v12, %v443_v8  ;;  %v523_v20 = vmul.f32 %v506_v17, %v444_v9  ;;  %1512 = vrot.lane.b32.xlu0 %v7472_v55, %s7738_s23  ;;  %940 = vrot.lane.b32.xlu1 %v7447_v10, %s7735_s20  ;;  %v750_v51 = vmul.f32 %v724_v37, %v671_v13  ;;  %v598_v15 = vld [vmem:[#allocation2 + $0x48] sm:$0x3]  ;;  %v3165_v10 = vld [vmem:[#allocation4 + $0x7] ss:$8 sm:$0xf] }
 0x10e   : > { %v7433_v12 = vpack.c.bf16 %v524_v63, %v524_v63  ;;  %v7448_v17 = vpack.c.bf16 %v901_v59, %v901_v59  ;;  %v8229_v24 = vor.u32 %v3166_v33, %v3165_v10 }
 0x10f   : > { %v7432_v29 = vpack.c.bf16 %v523_v20, %v522_v30  ;;  %v1354_v31 = vpop.permute.xlu0 %1353  ;;  %v1356_v32 = vpop.permute.xlu1 %1355  ;;  %v7443_v8 = vpack.c.bf16 %v750_v51, %v750_v51  ;;  %v7438_v20 = vpack.c.bf16 %v598_v15, %v598_v15 }
 0x110   : > { %v1363_v16 = vrot.slane %v1354_v31, 4  ;;  %v1364_v44 = vrot.slane %v1356_v32, 4  ;;  %v3176_v13 = vrot.slane %v8229_v24, %v7925_v61 }
 0x111   : > { %637 = vrot.lane.b32.xlu0 %v7437_v21, %s7740_s25  ;;  %563 = vrot.lane.b32.xlu1 %v7432_v29, %s7733_s18  ;;  %v1573_v21 = vld [vmem:[%s10658_s2] sm:$0x7f]  ;;  %v3180_v29 = vrot.slane %v8229_v24, %v7914_v56 }
 0x112   : > { %v1368_v54 = vsel %vm572_vm0, %v1363_v16, %v1364_v44  ;;  %v3005_v16 = vld [vmem:[#allocation4 + $0x6] ss:$8 sm:$0xf] }
 0x113   : > { %v8207_v58 = vpop.permute.xlu0 %633  ;;  %v1370_v3 = vsel %vm1369_vm15, %v1354_v31, %v1368_v54  ;;  %v632_v42 = vpop.permute.xlu1 %631  ;;  %v8238_v31 = vor.u32 %v2846_v18, %v2845_v25  ;;  %v3184_v54 = vrot.slane %v8229_v24, %v7922_v60  ;;  %v2319_v18 = vld [vmem:[#allocation4 + $0x2] ss:$8 sm:$0xf] }
 0x114   : > { %v642_v7 = vrot.slane %v8207_v58, 4  ;;  %1381 = vst [vmem:[#allocation3 + $0x68] sm:$0x11] %v1370_v3  ;;  %v641_v19 = vrot.slane %v632_v42, 4 }
 0x115   : > { %1361 = vrot.lane.b32.xlu0 %v7467_v48, %s7739_s24  ;;  %1288 = vrot.lane.b32.xlu1 %v7462_v53, %s7736_s21  ;;  %v2852_v38 = vrot.slane %v8238_v31, %v7917_v57  ;;  %v2860_v48 = vrot.slane %v8238_v31, %v7914_v56  ;;  %v2856_v4 = vrot.slane %v8238_v31, %v7925_v61 }
 0x116   : > { %v646_v37 = vsel %vm572_vm0, %v641_v19, %v642_v7 }
 0x117   : > { %v1358_v9 = vpop.permute.xlu0 %1357  ;;  %v648_v11 = vsel %vm647_vm1, %v632_v42, %v646_v37  ;;  %v2688_v37 = vld [vmem:[#allocation4 + $0x4] ss:$8 sm:$0xf0] }
 0x118   : > { %v1365_v14 = vrot.slane %v1358_v9, 4  ;;  %659 = vst [vmem:[#allocation3 + $0x120] sm:$0x11] %v648_v11  ;;  %v2864_v11 = vrot.slane %v8238_v31, %v7922_v60 }
 0x119   : > { %791 = vrot.lane.b32.xlu0 %v7443_v8, %s7734_s19  ;;  %1137 = vrot.lane.b32.xlu1 %v7457_v22, %s7737_s22  ;;  %v2687_v22 = vld [vmem:[#allocation4 + $0x4] ss:$8 sm:$0xf] }
 0x11a   : > { %v1371_v55 = vsel %vm572_vm0, %v1364_v44, %v1365_v14  ;;  %v3006_v44 = vld [vmem:[#allocation4 + $0x6] ss:$8 sm:$0xf0] }
 0x11b   : > { %v1372_v6 = vsel %vm1369_vm15, %v1356_v32, %v1371_v55  ;;  %v8221_v5 = vpop.permute.xlu0 %1359  ;;  %v3172_v32 = vrot.slane %v8229_v24, %v7917_v57  ;;  %v8251_v50 = vor.u32 %v3006_v44, %v3005_v16  ;;  %v3188_v44 = vrot.slane %v8229_v24, %v7997_v35 }
 0x11c   : > { %1382 = vst [vmem:[#allocation3 + $0x130] sm:$0x11] %v1372_v6  ;;  %v1366_v30 = vrot.slane %v8221_v5, 4 }
 0x11d   : > { %565 = vrot.lane.b32.xlu0 %v7433_v12, %s7733_s18  ;;  %942 = vrot.lane.b32.xlu1 %v7448_v17, %s7735_s20  ;;  %v3012_v42 = vrot.slane %v8251_v50, %v7917_v57  ;;  %v3020_v8 = vrot.slane %v8251_v50, %v7914_v56  ;;  %v3016_v33 = vrot.slane %v8251_v50, %v7925_v61 }
 0x11e   : > { %v1373_v2 = vsel %vm572_vm0, %v1365_v14, %v1366_v30 }
 0x11f   : > { %v1374_v26 = vsel %vm1369_vm15, %v1358_v9, %v1373_v2  ;;  %v8272_v9 = vor.u32 %v2688_v37, %v2687_v22  ;;  %v2478_v37 = vld [vmem:[#allocation4 + $0x3] ss:$8 sm:$0xf] }
 0x120   : > { %1383 = vst [vmem:[#allocation3 + $0x50] sm:$0x11] %v1374_v26  ;;  %v3024_v26 = vrot.slane %v8251_v50, %v7922_v60 }
 0x121   : > { %639 = vrot.lane.b32.xlu1 %v7438_v20, %s7740_s25  ;;  %1576 = vperm.xlu0 %7646, %v1573_v21   ;;  %v2694_v10 = vrot.slane %v8272_v9, %v7917_v57  ;;  %v2702_v25 = vrot.slane %v8272_v9, %v7914_v56 }
 0x125   : > { %3205 = vrot.lane.b32.xlu0 %v3180_v29, %s7741_s28  ;;  %3201 = vrot.lane.b32.xlu1 %v3172_v32, %s7741_s28  ;;  %v2320_v32 = vld [vmem:[#allocation4 + $0x2] ss:$8 sm:$0xf0] }
 0x129   : > { %2881 = vrot.lane.b32.xlu0 %v2852_v38, %s7742_s29  ;;  %3203 = vrot.lane.b32.xlu1 %v3176_v13, %s7741_s28 }
 0x12b   : > { %v1505_v51 = vpop.permute.xlu0 %1504  ;;  %v8256_v62 = vpop.permute.xlu1 %1506 }
 0x12c   : > { %v1514_v53 = vrot.slane %v1505_v51, 4  ;;  %v1515_v3 = vrot.slane %v8256_v62, 4 }
 0x12d   : > { %2885 = vrot.lane.b32.xlu0 %v2860_v48, %s7742_s29  ;;  %3207 = vrot.lane.b32.xlu1 %v3184_v54, %s7741_s28  ;;  %v8304_v48 = vor.u32 %v2320_v32, %v2319_v18 }
 0x12e   : > { %v1519_v19 = vsel %vm572_vm0, %v1514_v53, %v1515_v3 }
 0x12f   : > { %v1521_v59 = vsel %vm499_vm14, %v1505_v51, %v1519_v19  ;;  %v1281_v63 = vpop.permute.xlu0 %1280  ;;  %v2698_v51 = vrot.slane %v8272_v9, %v7925_v61  ;;  %v2326_v22 = vrot.slane %v8304_v48, %v7917_v57 }
 0x130   : > { %1532 = vst [vmem:[#allocation3 + $0x58] sm:$0x11] %v1521_v59  ;;  %v1290_v15 = vrot.slane %v1281_v63, 4  ;;  %v2479_v59 = vld [vmem:[#allocation4 + $0x3] ss:$8 sm:$0xf0] }
 0x131   : > { %3041 = vrot.lane.b32.xlu0 %v3012_v42, %s7743_s30  ;;  %2883 = vrot.lane.b32.xlu1 %v2856_v4, %s7742_s29 }
 0x133   : > { %v8277_v14 = vpop.permute.xlu1 %1282 }
 0x134   : > { %v1291_v55 = vrot.slane %v8277_v14, 4 }
 0x135   : > { %3045 = vrot.lane.b32.xlu0 %v3020_v8, %s7743_s30  ;;  %2887 = vrot.lane.b32.xlu1 %v2864_v11, %s7742_s29 }
 0x136   : > { %v1295_v12 = vsel %vm572_vm0, %v1290_v15, %v1291_v55 }
 0x137   : > { %v1297_v17 = vsel %vm725_vm12, %v1281_v63, %v1295_v12  ;;  %v1569_v6 = vld [vmem:[#allocation3 + $0x58] sm:$0xff]  ;;  %v1130_v2 = vpop.permute.xlu0 %1129  ;;  %v2706_v63 = vrot.slane %v8272_v9, %v7922_v60  ;;  %v8325_v12 = vor.u32 %v2479_v59, %v2478_v37 }
 0x138   : > { %1308 = vst [vmem:[#allocation3 + $0xc0] sm:$0x11] %v1297_v17  ;;  %v7092_v20 = vcombine.high %v1569_v6, %v1569_v6  ;;  %v7091_v21 = vcombine.low %v1569_v6, %v1569_v6  ;;  %v1139_v13 = vrot.slane %v1130_v2, 4  ;;  %v3192_v6 = vrot.slane %v8229_v24, %v7994_v34  ;;  %v1993_v59 = vld [vmem:[#allocation4] ss:$8 sm:$0xf] }
 0x139   : > { %2723 = vrot.lane.b32.xlu0 %v2694_v10, %s7735_s20  ;;  %3043 = vrot.lane.b32.xlu1 %v3016_v33, %s7743_s30  ;;  %v1553_v10 = vld [vmem:[#allocation3 + $0x128] sm:$0xff]  ;;  %v2334_v33 = vrot.slane %v8304_v48, %v7914_v56 }
 0x13a   : > { %7099 = vmatprep.subr.msk.bf16.mxu0 %vm572_vm0, %v7092_v20  ;;  %v1765_v29 = vsel %vm572_vm0, %v7091_v21, 0 }
 0x13b   : > { %1795 = vmatpush1.bf16.msra.mxu0 %v1765_v29  ;;  %v8298_v38 = vpop.permute.xlu1 %1131  ;;  %v2330_v29 = vrot.slane %v8304_v48, %v7925_v61 }
 0x13c   : > { %v1140_v16 = vrot.slane %v8298_v38, 4 }
 0x13d   : > { %2727 = vrot.lane.b32.xlu0 %v2702_v25, %s7735_s20  ;;  %3047 = vrot.lane.b32.xlu1 %v3024_v26, %s7743_s30  ;;  %v2485_v26 = vrot.slane %v8325_v12, %v7917_v57 }
 0x13e   : > { %v1144_v54 = vsel %vm572_vm0, %v1139_v13, %v1140_v16 }
 0x13f   : > { %v1146_v53 = vsel %vm876_vm13, %v1130_v2, %v1144_v54  ;;  %v7655_v42 = vld [vmem:[#allocation3 + $0xc4] ss:$-88 sps:$4 sm:$0xff]   ;;  %v7657_v4 = vld [vmem:[#allocation3 + $0xc0] ss:$-88 sps:$4 sm:$0xff]   ;;  %v784_v19 = vpop.permute.xlu0 %783  ;;  %v2493_v54 = vrot.slane %v8325_v12, %v7914_v56 }
 0x140   : > { %1157 = vst [vmem:[#allocation3 + $0xa8] sm:$0x11] %v1146_v53  ;;  %1796 = vmatprep.subr.bf16.mxu0 %v7655_v42  ;;  %v793_v11 = vrot.slane %v784_v19, 4  ;;  %v2338_v53 = vrot.slane %v8304_v48, %v7922_v60 }
 0x141   : > { %3209 = vrot.lane.b32.xlu0 %v3188_v44, %s7741_s28  ;;  %1797 = vmatpush1.bf16.msra.mxu0 %v7657_v4 }
 0x142   : > { %2725 = vrot.lane.b32.xlu1 %v2698_v51, %s7735_s20 }
 0x143   : > { %v8319_v8 = vpop.permute.xlu1 %785 }
 0x144   : > { %v794_v15 = vrot.slane %v8319_v8, 4 }
 0x145   : > { %2355 = vrot.lane.b32.xlu0 %v2326_v22, %s7744_s4  ;;  %v2868_v22 = vrot.slane %v8238_v31, %v7997_v35 }
 0x146   : > { %v798_v17 = vsel %vm572_vm0, %v793_v11, %v794_v15  ;;  %2729 = vrot.lane.b32.xlu1 %v2706_v63, %s7735_s20  ;;  %v1994_v63 = vld [vmem:[#allocation4] ss:$8 sm:$0xf0]  ;;  %v2489_v11 = vrot.slane %v8325_v12, %v7925_v61 }
 0x147   : > { %v800_v20 = vsel %vm799_vm10, %v784_v19, %v798_v17  ;;  %v1557_v21 = vld [vmem:[#allocation3 + $0xa8] sm:$0xff]  ;;  %v935_v18 = vpop.permute.xlu0 %934  ;;  %v3028_v17 = vrot.slane %v8251_v50, %v7997_v35 }
 0x148   : > { %811 = vst [vmem:[#allocation3 + $0x80] sm:$0x11] %v800_v20  ;;  %v7076_v2 = vcombine.high %v1553_v10, %v1557_v21  ;;  %v7075_v25 = vcombine.low %v1553_v10, %v1557_v21  ;;  %v944_v13 = vrot.slane %v935_v18, 4 }
 0x149   : > { %2359 = vrot.lane.b32.xlu0 %v2334_v33, %s7744_s4 }
 0x14a   : > { %1798 = vmatprep.subr.bf16.mxu0 %v7076_v2  ;;  %3211 = vrot.lane.b32.xlu1 %v3192_v6, %s7741_s28  ;;  %v8372_v6 = vor.u32 %v1994_v63, %v1993_v59 }
 0x14b   : > { %1799 = vmatpush1.bf16.msra.mxu0 %v7075_v25  ;;  %v8340_v32 = vpop.permute.xlu1 %936 }
 0x14c   : > { %v945_v44 = vrot.slane %v8340_v32, 4  ;;  %v2008_v63 = vrot.slane %v8372_v6, %v7914_v56 }
 0x14d   : > { %2514 = vrot.lane.b32.xlu0 %v2485_v26, %s7737_s22 }
 0x14e   : > { %v949_v51 = vsel %vm572_vm0, %v944_v13, %v945_v44  ;;  %2357 = vrot.lane.b32.xlu1 %v2330_v29, %s7744_s4  ;;  %v2159_v29 = vld [vmem:[#allocation4 + $0x1] ss:$8 sm:$0xf] }
 0x14f   : > { %v951_v42 = vsel %vm950_vm11, %v935_v18, %v949_v51  ;;  %v8353_v4 = vpop.permute.xlu0 %1508  ;;  %v2000_v18 = vrot.slane %v8372_v6, %v7917_v57  ;;  %v2160_v13 = vld [vmem:[#allocation4 + $0x1] ss:$8 sm:$0xf0] }
 0x150   : > { %962 = vst [vmem:[#allocation3 + $0x18] sm:$0x11] %v951_v42  ;;  %v1516_v19 = vrot.slane %v8353_v4, 4 }
 0x151   : > { %2518 = vrot.lane.b32.xlu0 %v2493_v54, %s7737_s22  ;;  %v2872_v54 = vrot.slane %v8238_v31, %v7994_v34 }
 0x152   : > { %v1522_v37 = vsel %vm572_vm0, %v1515_v3, %v1516_v19  ;;  %2361 = vrot.lane.b32.xlu1 %v2338_v53, %s7744_s4  ;;  %v2497_v3 = vrot.slane %v8325_v12, %v7922_v60 }
 0x153   : > { %v1523_v10 = vsel %vm499_vm14, %v8256_v62, %v1522_v37  ;;  %v558_v33 = vpop.permute.xlu1 %557 }
 0x154   : > { %1533 = vst [vmem:[#allocation3 + $0x78] sm:$0x11] %v1523_v10  ;;  %v567_v25 = vrot.slane %v558_v33, 4 }
 0x155   : > { %2889 = vrot.lane.b32.xlu0 %v2868_v22, %s7742_s29 }
 0x156   : > { %2516 = vrot.lane.b32.xlu1 %v2489_v11, %s7737_s22  ;;  %v8396_v11 = vor.u32 %v2160_v13, %v2159_v29 }
 0x157   : > { %v8377_v20 = vpop.permute.xlu0 %559  ;;  %v7658_v21 = vld [vmem:[#allocation3 + $0x84] ss:$-104 sps:$4 sm:$0xff]   ;;  %v7660_v2 = vld [vmem:[#allocation3 + $0x80] ss:$-104 sps:$4 sm:$0xff]  }
 0x158   : > { %v568_v62 = vrot.slane %v8377_v20, 4  ;;  %1800 = vmatprep.subr.bf16.mxu0 %v7658_v21 }
 0x159   : > { %3049 = vrot.lane.b32.xlu0 %v3028_v17, %s7743_s30  ;;  %1801 = vmatpush1.bf16.msra.mxu0 %v7660_v2  ;;  %v3032_v17 = vrot.slane %v8251_v50, %v7994_v34 }
 0x15a   : > { %v573_v26 = vsel %vm572_vm0, %v567_v25, %v568_v62  ;;  %2520 = vrot.lane.b32.xlu1 %v2497_v3, %s7737_s22 }
 0x15b   : > { %v575_v51 = vsel %vm574_vm9, %v558_v33, %v573_v26  ;;  %v8390_v53 = vpop.permute.xlu1 %1284  ;;  %v1570_v42 = vld [vmem:[#allocation3 + $0x78] sm:$0xff] }
 0x15c   : > { %586 = vst [vmem:[#allocation3 + $0xb0] sm:$0x11] %v575_v51  ;;  %v1292_v22 = vrot.slane %v8390_v53, 4  ;;  %v7094_v37 = vcombine.high %v1570_v42, %v1570_v42  ;;  %v7093_v59 = vcombine.low %v1570_v42, %v1570_v42 }
 0x15d   : > { %2029 = vrot.lane.b32.xlu0 %v2000_v18, %s7745_s5 }
 0x15e   : > { %v1298_v10 = vsel %vm572_vm0, %v1291_v55, %v1292_v22  ;;  %7101 = vmatprep.subr.msk.bf16.mxu1 %vm572_vm0, %v7094_v37  ;;  %v1771_v33 = vsel %vm572_vm0, %v7093_v59, 0  ;;  %2891 = vrot.lane.b32.xlu1 %v2872_v54, %s7742_s29  ;;  %v2166_v55 = vrot.slane %v8396_v11, %v7917_v57 }
 0x15f   : > { %v1299_v3 = vsel %vm725_vm12, %v8277_v14, %v1298_v10  ;;  %1836 = vmatpush1.bf16.msra.mxu1 %v1771_v33  ;;  %v8410_v21 = vpop.permute.xlu1 %1133  ;;  %v2004_v14 = vrot.slane %v8372_v6, %v7925_v61  ;;  %v1554_v33 = vld [vmem:[#allocation3 + $0x110] sm:$0xff] }
 0x160   : > { %1309 = vst [vmem:[#allocation3 + $0x118] sm:$0x11] %v1299_v3  ;;  %v1141_v2 = vrot.slane %v8410_v21, 4 }
 0x161   : > { %2033 = vrot.lane.b32.xlu0 %v2008_v63, %s7745_s5  ;;  %v2174_v63 = vrot.slane %v8396_v11, %v7914_v56 }
 0x162   : > { %v1147_v25 = vsel %vm572_vm0, %v1140_v16, %v1141_v2  ;;  %3051 = vrot.lane.b32.xlu1 %v3032_v17, %s7743_s30  ;;  %v8457_v17 = vld [vmem:[#allocation3 + $0xd0] sm:$0xff] }
 0x163   : > { %v1148_v18 = vsel %vm876_vm13, %v8298_v38, %v1147_v25  ;;  %v8426_v26 = vpop.permute.xlu0 %1510  ;;  %v7663_v29 = vld [vmem:[#allocation3 + $0xb4] ss:$112 sps:$4 sm:$0xff]   ;;  %v7665_v13 = vld [vmem:[#allocation3 + $0xb0] ss:$112 sps:$4 sm:$0xff]  }
 0x164   : > { %1158 = vst [vmem:[#allocation3 + $0x90] sm:$0x11] %v1148_v18  ;;  %v1517_v54 = vrot.slane %v8426_v26, 4  ;;  %1802 = vmatprep.subr.bf16.mxu0 %v7663_v29  ;;  %v8438_v38 = vld [vmem:[%s10657_s1] sm:$0xf] }
 0x165   : > { %2195 = vrot.lane.b32.xlu0 %v2166_v55, %s7746_s6  ;;  %1803 = vmatpush1.bf16.msra.mxu0 %v7665_v13  ;;  %v2170_v13 = vrot.slane %v8396_v11, %v7925_v61 }
 0x166   : > { %v1524_v16 = vsel %vm572_vm0, %v1516_v19, %v1517_v54  ;;  %2031 = vrot.lane.b32.xlu1 %v2004_v14, %s7745_s5  ;;  %v2012_v19 = vrot.slane %v8372_v6, %v7922_v60  ;;  %v2710_v14 = vrot.slane %v8272_v9, %v7997_v35 }
 0x167   : > { %v1525_v51 = vsel %vm499_vm14, %v8353_v4, %v1524_v16  ;;  %v8443_v42 = vpop.permute.xlu1 %787  ;;  %v7666_v37 = vld [vmem:[#allocation3 + $0x11c] ss:$24 sps:$4 sm:$0xff]   ;;  %v7668_v59 = vld [vmem:[#allocation3 + $0x118] ss:$24 sps:$4 sm:$0xff]  }
 0x168   : > { %1534 = vst [vmem:[#allocation3 + $0x30] sm:$0x11] %v1525_v51  ;;  %v795_v10 = vrot.slane %v8443_v42, 4  ;;  %7100 = vmatmul.mubr.msk.bf16.vlgmr.msra.gmra.mxu0 %vm1759_vm2, %v8438_v38  ;;  %1837 = vmatprep.subr.bf16.mxu1 %v7666_v37 }
 0x169   : > { %1838 = vmatpush1.bf16.msra.mxu1 %v7668_v59  ;;  %1902 = vmatprep.mubr.bf16.mxu0 %v8457_v17 }
 0x16a   : > { %v801_v4 = vsel %vm572_vm0, %v794_v15, %v795_v10  ;;  %2199 = vrot.lane.b32.xlu0 %v2174_v63, %s7746_s6  ;;  %2035 = vrot.lane.b32.xlu1 %v2012_v19, %s7745_s5  ;;  %v2342_v63 = vrot.slane %v8304_v48, %v7997_v35  ;;  %v2178_v19 = vrot.slane %v8396_v11, %v7922_v60 }
 0x16b   : > { %v802_v3 = vsel %vm799_vm10, %v8319_v8, %v801_v4  ;;  %v8462_v55 = vpop.permute.xlu0 %938  ;;  %v1558_v25 = vld [vmem:[#allocation3 + $0x90] sm:$0xff] }
 0x16c   : > { %812 = vst [vmem:[#allocation3 + $0x108] sm:$0x11] %v802_v3  ;;  %v946_v15 = vrot.slane %v8462_v55, 4  ;;  %v7078_v18 = vcombine.high %v1554_v33, %v1558_v25  ;;  %v7077_v29 = vcombine.low %v1554_v33, %v1558_v25 }
 0x16e   : > { %v952_v8 = vsel %vm572_vm0, %v945_v44, %v946_v15  ;;  %1839 = vmatprep.subr.bf16.mxu1 %v7078_v18  ;;  %2731 = vrot.lane.b32.xlu0 %v2710_v14, %s7735_s20 }
 0x16f   : > { %v953_v16 = vsel %vm950_vm11, %v8340_v32, %v952_v8  ;;  %1840 = vmatpush1.bf16.msra.mxu1 %v7077_v29  ;;  %v8478_v51 = vpop.permute.xlu1 %1286  ;;  %v8480_v37 = vpop.permute.xlu0 %635  ;;  %v1571_v59 = vld [vmem:[#allocation3 + $0x30] sm:$0xff]  ;;  %2197 = vrot.lane.b32.xlu1 %v2170_v13, %s7746_s6 }
 0x170   : > { %963 = vst [vmem:[#allocation3 + $0xc8] sm:$0x11] %v953_v16  ;;  %v1293_v44 = vrot.slane %v8478_v51, 4  ;;  %v643_v33 = vrot.slane %v8480_v37, 4  ;;  %v7096_v32 = vcombine.high %v1571_v59, %v1571_v59  ;;  %v7095_v4 = vcombine.low %v1571_v59, %v1571_v59 }
 0x172   : > { %v1300_v3 = vsel %vm572_vm0, %v1292_v22, %v1293_v44  ;;  %v649_v25 = vsel %vm572_vm0, %v642_v7, %v643_v33  ;;  %7103 = vmatprep.subr.msk.bf16.mxu0 %vm572_vm0, %v7096_v32  ;;  %v1777_v14 = vsel %vm572_vm0, %v7095_v4, 0  ;;  %2363 = vrot.lane.b32.xlu0 %v2342_v63, %s7744_s4  ;;  %v2501_v22 = vrot.slane %v8325_v12, %v7997_v35 }
 0x173   : > { %v1301_v18 = vsel %vm725_vm12, %v8390_v53, %v1300_v3  ;;  %v650_v29 = vsel %vm647_vm1, %v8207_v58, %v649_v25  ;;  %1877 = vmatpush1.bf16.msra.mxu0 %v1777_v14  ;;  %v8506_v13 = vpop.permute.xlu1 %561  ;;  %2201 = vrot.lane.b32.xlu1 %v2178_v19, %s7746_s6  ;;  %v2714_v53 = vrot.slane %v8272_v9, %v7994_v34  ;;  %v1546_v59 = vld [vmem:[#allocation3 + $0x108] sm:$0xff] }
 0x174   : > { %1310 = vst [vmem:[#allocation3 + $0xd8] sm:$0x11] %v1301_v18  ;;  %660 = vst [vmem:[#allocation3 + $0x38] sm:$0x11] %v650_v29  ;;  %v569_v7 = vrot.slane %v8506_v13, 4  ;;  %v3196_v19 = vrot.slane %v8229_v24, %v8029_v1 }
 0x176   : > { %v576_v58 = vsel %vm572_vm0, %v568_v62, %v569_v7  ;;  %2522 = vrot.lane.b32.xlu0 %v2501_v22, %s7737_s22  ;;  %v2346_v62 = vrot.slane %v8304_v48, %v7994_v34  ;;  %v2016_v22 = vrot.slane %v8372_v6, %v7997_v35 }
 0x177   : > { %v577_v8 = vsel %vm574_vm9, %v8377_v20, %v576_v58  ;;  %v8522_v16 = vpop.permute.xlu1 %1135  ;;  %v1550_v63 = vld [vmem:[#allocation3 + $0xc8] sm:$0xff]  ;;  %2733 = vrot.lane.b32.xlu1 %v2714_v53, %s7735_s20 }
 0x178   : > { %587 = vst [vmem:[#allocation3 + $0xd0] sm:$0x11] %v577_v8  ;;  %v1142_v32 = vrot.slane %v8522_v16, 4  ;;  %v7070_v4 = vcombine.high %v1546_v59, %v1550_v63  ;;  %v7069_v3 = vcombine.low %v1546_v59, %v1550_v63 }
 0x17a   : > { %v1149_v20 = vsel %vm572_vm0, %v1141_v2, %v1142_v32  ;;  %1841 = vmatprep.subr.bf16.mxu1 %v7070_v4  ;;  %3213 = vrot.lane.b32.xlu0 %v3196_v19, %s7741_s28  ;;  %v2505_v2 = vrot.slane %v8325_v12, %v7994_v34  ;;  %v2182_v4 = vrot.slane %v8396_v11, %v7997_v35 }
 0x17b   : > { %v1150_v25 = vsel %vm876_vm13, %v8410_v21, %v1149_v20  ;;  %1842 = vmatpush1.bf16.msra.mxu1 %v7069_v3  ;;  %v8538_v14 = vpop.permute.xlu0 %789  ;;  %v7671_v18 = vld [vmem:[#allocation3 + $0xdc] ss:$-136 sps:$4 sm:$0xff]   ;;  %v7673_v29 = vld [vmem:[#allocation3 + $0xd8] ss:$-136 sps:$4 sm:$0xff]   ;;  %2365 = vrot.lane.b32.xlu1 %v2346_v62, %s7744_s4 }
 0x17c   : > { %1159 = vst [vmem:[#allocation3 + $0xe0] sm:$0x11] %v1150_v25  ;;  %v796_v53 = vrot.slane %v8538_v14, 4  ;;  %1878 = vmatprep.subr.bf16.mxu0 %v7671_v18 }
 0x17d   : > { %1879 = vmatpush1.bf16.msra.mxu0 %v7673_v29 }
 0x17e   : > { %v803_v21 = vsel %vm572_vm0, %v795_v10, %v796_v53  ;;  %2037 = vrot.lane.b32.xlu0 %v2016_v22, %s7745_s5  ;;  %v3200_v10 = vrot.slane %v8229_v24, %v8026_v0 }
 0x17f   : > { %v804_v58 = vsel %vm799_vm10, %v8443_v42, %v803_v21  ;;  %v1513_v8 = vpop.permute.xlu0 %1512  ;;  %v8554_v59 = vpop.permute.xlu1 %940  ;;  %v7674_v63 = vld [vmem:[#allocation3 + $0xd4] ss:$-152 sps:$4 sm:$0xff]   ;;  %v7676_v19 = vld [vmem:[#allocation3 + $0xd0] ss:$-152 sps:$4 sm:$0xff]   ;;  %2524 = vrot.lane.b32.xlu1 %v2505_v2, %s7737_s22 }
 0x180   : > { %813 = vst [vmem:[#allocation3 + $0x138] sm:$0x11] %v804_v58  ;;  %v1518_v3 = vrot.slane %v1513_v8, 4  ;;  %v947_v62 = vrot.slane %v8554_v59, 4  ;;  %1843 = vmatprep.subr.bf16.mxu1 %v7674_v63 }
 0x181   : > { %1844 = vmatpush1.bf16.msra.mxu1 %v7676_v19 }
 0x182   : > { %v1526_v42 = vsel %vm572_vm0, %v1517_v54, %v1518_v3  ;;  %v954_v20 = vsel %vm572_vm0, %v946_v15, %v947_v62  ;;  %2203 = vrot.lane.b32.xlu0 %v2182_v4, %s7746_s6  ;;  %v2876_v54 = vrot.slane %v8238_v31, %v8029_v1 }
 0x183   : > { %v1527_v25 = vsel %vm499_vm14, %v8426_v26, %v1526_v42  ;;  %v955_v18 = vsel %vm950_vm11, %v8462_v55, %v954_v20  ;;  %v8575_v29 = vpop.permute.xlu0 %637  ;;  %v8577_v24 = vpop.permute.xlu1 %563  ;;  %v7677_v22 = vld [vmem:[#allocation3 + $0xc] ss:$216 sps:$4 sm:$0xff]   ;;  %v7679_v2 = vld [vmem:[#allocation3 + $0x8] ss:$216 sps:$4 sm:$0xff]   ;;  %3215 = vrot.lane.b32.xlu1 %v3200_v10, %s7741_s28  ;;  %v2020_v55 = vrot.slane %v8372_v6, %v7994_v34  ;;  %v2186_v10 = vrot.slane %v8396_v11, %v7994_v34  ;;  %vm8773_vm14 = vmand %vm572_vm0, %vm2131_vm5 }
 0x184   : > { %1535 = vst [vmem:[#allocation3 + $0x40] sm:$0x11] %v1527_v25  ;;  %964 = vst [vmem:[#allocation3 + $0x70] sm:$0x11] %v955_v18  ;;  %v644_v15 = vrot.slane %v8575_v29, 4  ;;  %v570_v26 = vrot.slane %v8577_v24, 4  ;;  %7102 = vmatmul.mubr.msk.bf16.vlgmr.msra.gmra.mxu1 %vm1759_vm2, %v8438_v38  ;;  %1880 = vmatprep.subr.bf16.mxu0 %v7677_v22 }
 0x185   : > { %1881 = vmatpush1.bf16.msra.mxu0 %v7679_v2  ;;  %1943 = vmatprep.mubr.bf16.mxu1 %v8457_v17  ;;  %vm2211_vm5 = vcmask 1022976  }
 0x186   : > { %v651_v21 = vsel %vm572_vm0, %v643_v33, %v644_v15  ;;  %v578_v58 = vsel %vm572_vm0, %v569_v7, %v570_v26  ;;  %2893 = vrot.lane.b32.xlu0 %v2876_v54, %s7742_s29  ;;  %v3036_v33 = vrot.slane %v8251_v50, %v8029_v1  ;;  %v2718_v54 = vrot.slane %v8272_v9, %v8029_v1 }
 0x187   : > { %v652_v8 = vsel %vm647_vm1, %v8480_v37, %v651_v21  ;;  %v579_v63 = vsel %vm574_vm9, %v8506_v13, %v578_v58  ;;  %v1362_v19 = vpop.permute.xlu0 %1361  ;;  %v1289_v4 = vpop.permute.xlu1 %1288  ;;  %2039 = vrot.lane.b32.xlu1 %v2020_v55, %s7745_s5 }
 0x188   : > { %661 = vst [vmem:[#allocation3 + $0xf8] sm:$0x11] %v652_v8  ;;  %588 = vst [vmem:[#allocation3 + $0x10] sm:$0x11] %v579_v63  ;;  %v1367_v3 = vrot.slane %v1362_v19, 4  ;;  %v1294_v7 = vrot.slane %v1289_v4, 4 }
 0x18a   : > { %v1375_v37 = vsel %vm572_vm0, %v1366_v30, %v1367_v3  ;;  %v1302_v13 = vsel %vm572_vm0, %v1293_v44, %v1294_v7  ;;  %3053 = vrot.lane.b32.xlu0 %v3036_v33, %s7743_s30  ;;  %v2880_v30 = vrot.slane %v8238_v31, %v8026_v0 }
 0x18b   : > { %v1376_v42 = vsel %vm1369_vm15, %v8221_v5, %v1375_v37  ;;  %v1303_v20 = vsel %vm725_vm12, %v8478_v51, %v1302_v13  ;;  %v792_v25 = vpop.permute.xlu0 %791  ;;  %v1138_v18 = vpop.permute.xlu1 %1137  ;;  %v7680_v22 = vld [vmem:[#allocation3 + $0x13c] ss:$-200 sps:$4 sm:$0xff]   ;;  %v1572_v2 = vld [vmem:[#allocation3 + $0x40] sm:$0xff]  ;;  %v7683_v21 = vld [vmem:[#allocation3 + $0x138] ss:$-200 sps:$4 sm:$0xff]   ;;  %2205 = vrot.lane.b32.xlu1 %v2186_v10, %s7746_s6  ;;  %vm2045_vm12 = vcmask 1014784  }
 0x18c   : > { %1384 = vst [vmem:[#allocation3 + $0xe8] sm:$0x11] %v1376_v42  ;;  %1311 = vst [vmem:[#allocation3 + $0xa0] sm:$0x11] %v1303_v20  ;;  %v797_v44 = vrot.slane %v792_v25, 4  ;;  %v1143_v55 = vrot.slane %v1138_v18, 4  ;;  %v7098_v5 = vcombine.high %v1572_v2, %v1572_v2  ;;  %v7097_v58 = vcombine.low %v1572_v2, %v1572_v2  ;;  %1882 = vmatprep.subr.bf16.mxu0 %v7680_v22 }
 0x18d   : > { %1883 = vmatpush1.bf16.msra.mxu0 %v7683_v21  ;;  %v2194_v21 = vrot.slane %v8396_v11, %v8026_v0 }
 0x18e   : > { %v805_v51 = vsel %vm572_vm0, %v796_v53, %v797_v44  ;;  %v1151_v8 = vsel %vm572_vm0, %v1142_v32, %v1143_v55  ;;  %7105 = vmatprep.subr.msk.bf16.mxu1 %vm572_vm0, %v7098_v5  ;;  %v1783_v31 = vsel %vm572_vm0, %v7097_v58, 0  ;;  %2735 = vrot.lane.b32.xlu0 %v2718_v54, %s7735_s20  ;;  %v2350_v32 = vrot.slane %v8304_v48, %v8029_v1 }
 0x18f   : > { %v806_v63 = vsel %vm799_vm10, %v8538_v14, %v805_v51  ;;  %v1152_v19 = vsel %vm876_vm13, %v8522_v16, %v1151_v8  ;;  %v566_v4 = vpop.permute.xlu0 %565  ;;  %1918 = vmatpush1.bf16.msra.mxu1 %v1783_v31  ;;  %v943_v33 = vpop.permute.xlu1 %942  ;;  %v7685_v3 = vld [vmem:[#allocation3 + $0x14] ss:$232 sps:$4 sm:$0xff]   ;;  %v7687_v10 = vld [vmem:[#allocation3 + $0x10] ss:$232 sps:$4 sm:$0xff]   ;;  %2895 = vrot.lane.b32.xlu1 %v2880_v30, %s7742_s29  ;;  %v3040_v14 = vrot.slane %v8251_v50, %v8026_v0  ;;  %vm2445_vm10 = vcmask 15360  }
 0x190   : > { %814 = vst [vmem:[#allocation3 + $0xf0] sm:$0x11] %v806_v63  ;;  %1160 = vst [vmem:[#allocation3 + $0x88] sm:$0x11] %v1152_v19  ;;  %v571_v53 = vrot.slane %v566_v4, 4  ;;  %v948_v7 = vrot.slane %v943_v33, 4  ;;  %1884 = vmatprep.subr.bf16.mxu0 %v7685_v3  ;;  %v2509_v50 = vrot.slane %v8325_v12, %v8029_v1  ;;  %v2354_v54 = vrot.slane %v8304_v48, %v8026_v0 }
 0x191   : > { %1885 = vmatpush1.bf16.msra.mxu0 %v7687_v10  ;;  %v2513_v44 = vrot.slane %v8325_v12, %v8026_v0  ;;  %v2028_v48 = vrot.slane %v8372_v6, %v8026_v0 }
 0x192   : > { %v580_v16 = vsel %vm572_vm0, %v570_v26, %v571_v53  ;;  %v956_v37 = vsel %vm572_vm0, %v947_v62, %v948_v7  ;;  %2367 = vrot.lane.b32.xlu0 %v2350_v32, %s7744_s4  ;;  %v2722_v62 = vrot.slane %v8272_v9, %v8026_v0  ;;  %v2024_v9 = vrot.slane %v8372_v6, %v8029_v1 }
 0x193   : > { %v581_v13 = vsel %vm574_vm9, %v8577_v24, %v580_v16  ;;  %v957_v42 = vsel %vm950_vm11, %v8554_v59, %v956_v37  ;;  %v640_v20 = vpop.permute.xlu1 %639  ;;  %v7688_v25 = vld [vmem:[#allocation3 + $0xa4] ss:$72 sps:$4 sm:$0xff]   ;;  %v7690_v18 = vld [vmem:[#allocation3 + $0xa0] ss:$72 sps:$4 sm:$0xff]   ;;  %3055 = vrot.lane.b32.xlu1 %v3040_v14, %s7743_s30  ;;  %vm2134_vm9 = vsmask.f32 7424 }
 0x194   : > { %589 = vst [vmem:[#allocation3 + $0x48] sm:$0x11] %v581_v13  ;;  %965 = vst [vmem:[#allocation3 + $0x20] sm:$0x11] %v957_v42  ;;  %v645_v26 = vrot.slane %v640_v20, 4  ;;  %7104 = vmatmul.mubr.msk.bf16.vlgmr.msra.gmra.mxu0 %vm1759_vm2, %v8438_v38  ;;  %1919 = vmatprep.subr.bf16.mxu1 %v7688_v25 }
 0x195   : > { %1920 = vmatpush1.bf16.msra.mxu1 %v7690_v18  ;;  %3597 = vmatprep.mubr.bf16.mxu0 %v8457_v17 }
 0x196   : > { %v653_v59 = vsel %vm572_vm0, %v644_v15, %v645_v26  ;;  %2526 = vrot.lane.b32.xlu0 %v2509_v50, %s7737_s22 }
 0x197   : > { %v654_v24 = vsel %vm647_vm1, %v8575_v29, %v653_v59  ;;  %v7691_v22 = vld [vmem:[#allocation3 + $0x9c] ss:$-16 sps:$4 sm:$0xff]   ;;  %v7693_v2 = vld [vmem:[#allocation3 + $0x98] ss:$-16 sps:$4 sm:$0xff]   ;;  %2737 = vrot.lane.b32.xlu1 %v2722_v62, %s7735_s20  ;;  %v2190_v29 = vrot.slane %v8396_v11, %v8029_v1  ;;  %v8691_v12 = vpop.permute.xlu1 %3201 }
 0x198   : > { %662 = vst [vmem:[#allocation3 + $0x100] sm:$0x11] %v654_v24  ;;  %1921 = vmatprep.subr.bf16.mxu1 %v7691_v22 }
 0x199   : > { %1922 = vmatpush1.bf16.msra.mxu1 %v7693_v2 }
 0x19a   : > { %2041 = vrot.lane.b32.xlu0 %v2024_v9, %s7745_s5 }
 0x19b   : > { %v7694_v15 = vld [vmem:[#allocation3 + $0xf4] ss:$-208 sps:$4 sm:$0xff]   ;;  %v7696_v30 = vld [vmem:[#allocation3 + $0xf0] ss:$-208 sps:$4 sm:$0xff]   ;;  %2369 = vrot.lane.b32.xlu1 %v2354_v54, %s7744_s4  ;;  %v8693_v58 = vpop.permute.xlu1 %3203 }
 0x19c   : > { %1923 = vmatprep.subr.bf16.mxu1 %v7694_v15  ;;  %v8695_v51 = vpop.permute.xlu0 %1576 }
 0x19d   : > { %1924 = vmatpush1.bf16.msra.mxu1 %v7696_v30 }
 0x19e   : > { %2207 = vrot.lane.b32.xlu0 %v2190_v29, %s7746_s6 }
 0x19f   : > { %v7697_v55 = vld [vmem:[#allocation3 + $0x4c] ss:$184 sps:$4 sm:$0xff]   ;;  %v7699_v5 = vld [vmem:[#allocation3 + $0x48] ss:$184 sps:$4 sm:$0xff]   ;;  %2528 = vrot.lane.b32.xlu1 %v2513_v44, %s7737_s22  ;;  %v8697_v6 = vpop.permute.xlu1 %3207 }
 0x1a0   : > { %1925 = vmatprep.subr.bf16.mxu1 %v7697_v55  ;;  %v8699_v8 = vpop.permute.xlu0 %3205 }
 0x1a1   : > { %1926 = vmatpush1.bf16.msra.mxu1 %v7699_v5 }
 0x1a3   : > { %2043 = vrot.lane.b32.xlu1 %v2028_v48, %s7745_s5  ;;  %v8701_v31 = vpop.permute.xlu1 %2883 }
 0x1a4   : > { %7106 = vmatmul.mubr.msk.bf16.vlgmr.msra.gmra.mxu1 %vm1759_vm2, %v8438_v38  ;;  %v8703_v11 = vpop.permute.xlu0 %2881 }
 0x1a5   : > { %3638 = vmatprep.mubr.bf16.mxu1 %v8457_v17  ;;  %v2898_v45 = vsel %vm2445_vm10, %v8703_v11, %v8701_v31 }
 0x1a7   : > { %2209 = vrot.lane.b32.xlu1 %v2194_v21, %s7746_s6  ;;  %v8705_v63 = vpop.permute.xlu1 %2887 }
 0x1a8   : > { %v8707_v38 = vpop.permute.xlu0 %2885 }
 0x1ab   : > { %v8709_v17 = vpop.permute.xlu1 %3043 }
 0x1ac   : > { %v8711_v19 = vpop.permute.xlu0 %3041 }
 0x1af   : > { %v8713_v4 = vpop.permute.xlu1 %3047 }
 0x1b0   : > { %v8715_v33 = vpop.permute.xlu0 %3045 }
 0x1b4   : > { %v8717_v3 = vpop.permute.xlu1 %2725  ;;  %v8719_v32 = vpop.permute.xlu0 %2723 }
 0x1b8   : > { %v8721_v53 = vpop.permute.xlu1 %2729  ;;  %v8723_v7 = vpop.permute.xlu0 %2727 }
 0x1bc   : > { %v8725_v10 = vpop.permute.xlu1 %3211  ;;  %v8727_v14 = vpop.permute.xlu0 %3209 }
 0x1c0   : > { %v8729_v16 = vpop.permute.xlu1 %2357  ;;  %v2356_v37 = vpop.permute.xlu0 %2355 }
 0x1c4   : > { %v8731_v13 = vpop.permute.xlu1 %2361  ;;  %v8733_v42 = vpop.permute.xlu0 %2359 }
 0x1c8   : > { %v8735_v20 = vpop.permute.xlu1 %2516  ;;  %v2515_v25 = vpop.permute.xlu0 %2514 }
 0x1cc   : > { %v8737_v50 = vpop.permute.xlu1 %2520  ;;  %v8739_v26 = vpop.permute.xlu0 %2518 }
 0x1d0   : > { %v8741_v18 = vpop.permute.xlu1 %2891  ;;  %v8743_v62 = vpop.permute.xlu0 %2889 }
 0x1d4   : > { %v8745_v59 = vpop.permute.xlu1 %3051  ;;  %v8747_v24 = vpop.permute.xlu0 %3049 }
 0x1d8   : > { %v8749_v22 = vpop.permute.xlu1 %2031  ;;  %v8751_v2 = vpop.permute.xlu0 %2029 }
 0x1d9   : > { %v2046_v34 = vsel %vm2045_vm12, %v8751_v2, %v8749_v22 }
 0x1dc   : > { %v8753_v9 = vpop.permute.xlu1 %2035  ;;  %v8756_v29 = vpop.permute.xlu0 %2033 }
 0x1e0   : > { %v8761_v41 = vpop.permute.xlu0 %2195 }
 0x1e1   : > { %v8759_v49 = vpop.permute.xlu1 %2197 }
 0x228   : > { %v1822_v54 = vpop.f32.mrf.mxu0 }
 0x229   : > { %v1823_v15 = vadd.f32 %v1822_v54, %v8695_v51  ;;  %v8763_v54 = vpop.permute.xlu1 %2201 }
 0x22a   : > { %v1824_v30 = vpop.f32.mrf.mxu0 }
 0x22b   : > { %vm1952_vm3 = vcmp.gt.f32.partialorder %v1823_v15, 0.0  ;;  %v1960_v44 = vmul.f32 0.3, %v1823_v15  ;;  %v1825_v55 = vadd.f32 %v1824_v30, %v8695_v51  ;;  %v2372_v30 = vsel %vm2371_vm6, %v2356_v37, %v8729_v16 }
 0x22c   : > { %v1826_v5 = vpop.f32.mrf.mxu0 }
 0x22d   : > { %v1968_v48 = vsel %vm1952_vm3, %v1823_v15, %v1960_v44  ;;  %vm1953_vm4 = vcmp.gt.f32.partialorder %v1825_v55, 0.0  ;;  %v1961_v21 = vmul.f32 0.3, %v1825_v55  ;;  %vm2285_vm3 = vcmask 23552  }
 0x22e   : > { %1976 = vst [vmem:[#allocation2 + $0x10] sm:$0x7f] %v1968_v48  ;;  %v1827_v36 = vpop.f32.mrf.mxu0  ;;  %v3058_v28 = vsel %vm2285_vm3, %v8711_v19, %v8709_v17 }
 0x22f   : > { %v1969_v40 = vsel %vm1953_vm4, %v1825_v55, %v1961_v21  ;;  %v2388_v36 = vmul.f32 %v2356_v37, %v2309_v39  ;;  %v8769_v21 = vpop.permute.xlu1 %2733  ;;  %v2530_v39 = vsel %vm876_vm13, %v2515_v25, %v8735_v20  ;;  %vm8784_vm4 = vmand %vm2133_vm8, %vm2134_vm9 }
 0x230   : > { %1977 = vst [vmem:[#allocation2 + $0x18] sm:$0x7f] %v1969_v40  ;;  %v8767_v40 = vpop.permute.xlu0 %2199  ;;  %vm8800_vm8 = vmor %vm8784_vm4, %vm8773_vm14 }
 0x235   : > { %v2310_v15 = vld [vmem:[#allocation2 + $0x10] sm:$0x7f] }
 0x236   : > { %v2389_v44 = vmul.f32 %v2372_v30, %v2310_v15  ;;  %v3155_v5 = vld [vmem:[#allocation2 + $0x10] sm:$0x7f]  ;;  %v3218_v30 = vsel %vm2119_vm7, %v8691_v12, %v8693_v58  ;;  %v2469_v15 = vld [vmem:[#allocation2 + $0x8] sm:$0x7f] }
 0x237   : > { %v2470_v48 = vld [vmem:[#allocation2 + $0x10] sm:$0x7f]  ;;  %v3156_v55 = vld [vmem:[#allocation2 + $0x18] sm:$0x7f]  ;;  %v3234_v47 = vmul.f32 %v8691_v12, %v3155_v5  ;;  %v2546_v60 = vmul.f32 %v2515_v25, %v2469_v15  ;;  %v8805_v25 = vpop.permute.xlu0 %2731  ;;  %v10730_v12 = vld [vmem:[#allocation9_spill] sm:$0xff] }
 0x238   : > { %v2836_v37 = vld [vmem:[#allocation2 + $0x18] sm:$0x7f]  ;;  %v7483_v52 = vpack.c.bf16 %v2389_v44, %v2388_v36  ;;  %v3235_v27 = vmul.f32 %v3218_v30, %v3156_v55  ;;  %v2547_v23 = vmul.f32 %v2530_v39, %v2470_v48  ;;  %v1985_v0 = vld [vmem:[#allocation2 + $0x10] sm:$0x7f]  ;;  %v2666_v48 = vld [vmem:[#allocation3 + $0x128] sm:$0xff]  ;;  %v2062_v39 = vmul.f32 %v8751_v2, %v1984_v46 }
 0x239   : > { %v2835_v1 = vld [vmem:[#allocation2 + $0x10] sm:$0x7f]  ;;  %v2627_v35 = vld [vmem:[#allocation2 + $0x18] sm:$0x7f]  ;;  %v2915_v36 = vmul.f32 %v2898_v45, %v2836_v37  ;;  %v2063_v15 = vmul.f32 %v2046_v34, %v1985_v0  ;;  %v8809_v45 = vpop.permute.xlu1 %2365  ;;  %v2212_v46 = vsel %vm2211_vm5, %v8761_v41, %v8759_v49 }
 0x23a   : > { %2429 = vrot.lane.b32.xlu1 %v7483_v52, %s7742_s29  ;;  %v7512_v44 = vpack.c.bf16 %v3235_v27, %v3234_v47  ;;  %v2626_v5 = vld [vmem:[#allocation2 + $0x10] sm:$0x7f]  ;;  %v2996_v55 = vld [vmem:[#allocation2 + $0x18] sm:$0x7f]  ;;  %v7488_v27 = vpack.c.bf16 %v2547_v23, %v2546_v60  ;;  %v2914_v43 = vmul.f32 %v8703_v11, %v2835_v1  ;;  %v2149_v47 = vld [vmem:[#allocation2 + $0x8] sm:$0x7f] }
 0x23b   : > { %v7493_v30 = vpack.c.bf16 %v2627_v35, %v2626_v5  ;;  %v2150_v52 = vld [vmem:[#allocation2 + $0x10] sm:$0x7f]  ;;  %v3075_v60 = vmul.f32 %v3058_v28, %v2996_v55  ;;  %v2679_v0 = vld [vmem:[#allocation2 + $0x18] sm:$0x7f]  ;;  %v2228_v1 = vmul.f32 %v8761_v41, %v2149_v47  ;;  %v7473_v11 = vpack.c.bf16 %v2063_v15, %v2062_v39 }
 0x23c   : > { %3275 = vrot.lane.b32.xlu0 %v7512_v44, %s7745_s5  ;;  %v2995_v35 = vld [vmem:[#allocation2 + $0x10] sm:$0x7f]  ;;  %v7502_v23 = vpack.c.bf16 %v2915_v36, %v2914_v43  ;;  %v2229_v2 = vmul.f32 %v2212_v46, %v2150_v52  ;;  %v2739_v44 = vsel %vm950_vm11, %v8719_v32, %v8717_v3 }
 0x23d   : > { %v8819_v34 = vsel %vm8800_vm8, %v7493_v30, %v2666_v48  ;;  %v3074_v37 = vmul.f32 %v8711_v19, %v2995_v35  ;;  %v2678_v5 = vld [vmem:[#allocation2 + $0x10] sm:$0x7f]  ;;  %v8829_v48 = vpop.permute.xlu0 %2363  ;;  %v2756_v55 = vmul.f32 %v2739_v44, %v2679_v0  ;;  %v8832_v30 = vpop.permute.xlu1 %2524  ;;  %v2374_v44 = vsel %vm2371_vm6, %v8733_v42, %v8731_v13 }
 0x23e   : > { %10715 = vst [vmem:[#allocation23_spill] sm:$0xff] %v8819_v34  ;;  %2587 = vrot.lane.b32.xlu1 %v7488_v27, %s7735_s20  ;;  %2668 = vst [vmem:[#allocation3 + $0x128] sm:$0xff] %v8819_v34  ;;  %v7478_v39 = vpack.c.bf16 %v2229_v2, %v2228_v1  ;;  %v2755_v19 = vmul.f32 %v8719_v32, %v2678_v5  ;;  %v2311_v2 = vld [vmem:[#allocation2 + $0x18] sm:$0x7f] }
 0x23f   : > { %v7507_v36 = vpack.c.bf16 %v3075_v60, %v3074_v37  ;;  %v2373_v37 = vsel %vm2371_vm6, %v8729_v16, %v8733_v42  ;;  %v2532_v16 = vsel %vm876_vm13, %v8739_v26, %v8737_v50 }
 0x240   : > { %2955 = vrot.lane.b32.xlu0 %v7502_v23, %s7744_s4  ;;  %v7497_v47 = vpack.c.bf16 %v2756_v55, %v2755_v19  ;;  %v3220_v19 = vsel %vm2119_vm7, %v8699_v8, %v8697_v6 }
 0x241   : > { %v8839_v46 = vpop.permute.xlu0 %2522  ;;  %v8842_v60 = vpop.permute.xlu1 %3215 }
 0x242   : > { %2103 = vrot.lane.b32.xlu1 %v7473_v11, %s7741_s28 }
 0x244   : > { %v1863_v41 = vpop.f32.mrf.mxu1  ;;  %3115 = vrot.lane.b32.xlu0 %v7507_v36, %s7746_s6 }
 0x245   : > { %v1864_v15 = vadd.f32 %v1863_v41, %v8695_v51  ;;  %v8844_v1 = vpop.permute.xlu0 %3213  ;;  %v8846_v11 = vpop.permute.xlu1 %2039  ;;  %v2390_v41 = vmul.f32 %v2373_v37, %v2311_v2 }
 0x246   : > { %v1865_v27 = vpop.f32.mrf.mxu1  ;;  %2269 = vrot.lane.b32.xlu1 %v7478_v39, %s7743_s30 }
 0x247   : > { %vm1954_vm9 = vcmp.gt.f32.partialorder %v1864_v15, 0.0  ;;  %v1962_v43 = vmul.f32 0.3, %v1864_v15  ;;  %v1866_v28 = vadd.f32 %v1865_v27, %v8695_v51 }
 0x248   : > { %v1867_v52 = vpop.f32.mrf.mxu1  ;;  %2796 = vrot.lane.b32.xlu0 %v7497_v47, %s7737_s22 }
 0x249   : > { %v1970_v35 = vsel %vm1954_vm9, %v1864_v15, %v1962_v43  ;;  %vm1955_vm14 = vcmp.gt.f32.partialorder %v1866_v28, 0.0  ;;  %v1963_v23 = vmul.f32 0.3, %v1866_v28  ;;  %v3219_v15 = vsel %vm2119_vm7, %v8693_v58, %v8699_v8  ;;  %v8863_v27 = vpop.permute.xlu0 %2037  ;;  %v2471_v43 = vld [vmem:[#allocation2 + $0x18] sm:$0x7f]  ;;  %v8875_v37 = vpop.permute.xlu1 %2205 }
 0x24a   : > { %1978 = vst [vmem:[#allocation2 + $0x20] sm:$0x7f] %v1970_v35  ;;  %v1868_v32 = vpop.f32.mrf.mxu1  ;;  %v2899_v58 = vsel %vm2445_vm10, %v8701_v31, %v8707_v38  ;;  %v2900_v8 = vsel %vm2445_vm10, %v8707_v38, %v8705_v63 }
 0x24b   : > { %v1971_v0 = vsel %vm1955_vm14, %v1866_v28, %v1963_v23 }
 0x24c   : > { %1979 = vst [vmem:[#allocation2 + $0x28] sm:$0x7f] %v1971_v0  ;;  %v2531_v0 = vsel %vm876_vm13, %v8735_v20, %v8739_v26  ;;  %v2048_v20 = vsel %vm2045_vm12, %v8756_v29, %v8753_v9 }
 0x24d   : > { %v2548_v38 = vmul.f32 %v2531_v0, %v2471_v43  ;;  %v3060_v43 = vsel %vm2285_vm3, %v8715_v33, %v8713_v4  ;;  %v2669_v0 = vld [vmem:[#allocation3 + $0x110] sm:$0xff] }
 0x251   : > { %v2312_v5 = vld [vmem:[#allocation2 + $0x20] sm:$0x7f] }
 0x252   : > { %v3157_v36 = vld [vmem:[#allocation2 + $0x20] sm:$0x7f]  ;;  %v2391_v39 = vmul.f32 %v2374_v44, %v2312_v5 }
 0x253   : > { %v2472_v55 = vld [vmem:[#allocation2 + $0x20] sm:$0x7f]  ;;  %v3158_v42 = vld [vmem:[#allocation2 + $0x28] sm:$0x7f]  ;;  %v3236_v35 = vmul.f32 %v3219_v15, %v3157_v36  ;;  %v1986_v36 = vld [vmem:[#allocation2 + $0x18] sm:$0x7f] }
 0x254   : > { %v2838_v28 = vld [vmem:[#allocation2 + $0x28] sm:$0x7f]  ;;  %v1904_v47 = vpop.f32.mrf.mxu0  ;;  %v7484_v52 = vpack.c.bf16 %v2391_v39, %v2390_v41  ;;  %v3237_v23 = vmul.f32 %v3220_v19, %v3158_v42  ;;  %v2549_v32 = vmul.f32 %v2532_v16, %v2472_v55  ;;  %v2837_v44 = vld [vmem:[#allocation2 + $0x20] sm:$0x7f]  ;;  %v2047_v55 = vsel %vm2045_vm12, %v8749_v22, %v8756_v29 }
 0x255   : > { %v1905_v2 = vadd.f32 %v1904_v47, %v8695_v51  ;;  %v1987_v5 = vld [vmem:[#allocation2 + $0x20] sm:$0x7f]  ;;  %v2917_v39 = vmul.f32 %v2900_v8, %v2838_v28  ;;  %v2998_v15 = vld [vmem:[#allocation2 + $0x28] sm:$0x7f]  ;;  %v2916_v47 = vmul.f32 %v2899_v58, %v2837_v44  ;;  %v2204_v28 = vpop.permute.xlu0 %2203 }
 0x256   : > { %v1906_v31 = vpop.f32.mrf.mxu0  ;;  %2431 = vrot.lane.b32.xlu0 %v7484_v52, %s7742_s29  ;;  %v7513_v41 = vpack.c.bf16 %v3237_v23, %v3236_v35  ;;  %v2629_v16 = vld [vmem:[#allocation2 + $0x28] sm:$0x7f]  ;;  %v7489_v22 = vpack.c.bf16 %v2549_v32, %v2548_v38  ;;  %v2065_v34 = vmul.f32 %v2048_v20, %v1987_v5  ;;  %v2997_v52 = vld [vmem:[#allocation2 + $0x20] sm:$0x7f]  ;;  %v3077_v58 = vmul.f32 %v3060_v43, %v2998_v15  ;;  %v8899_v38 = vpop.permute.xlu1 %2895 }
 0x257   : > { %vm1956_vm4 = vcmp.gt.f32.partialorder %v1905_v2, 0.0  ;;  %v1964_v26 = vmul.f32 0.3, %v1905_v2  ;;  %v1907_v19 = vadd.f32 %v1906_v31, %v8695_v51  ;;  %v2152_v35 = vld [vmem:[#allocation2 + $0x20] sm:$0x7f]  ;;  %v2064_v31 = vmul.f32 %v2047_v55, %v1986_v36 }
 0x258   : > { %v1908_v42 = vpop.f32.mrf.mxu0  ;;  %3277 = vrot.lane.b32.xlu1 %v7513_v41, %s7745_s5  ;;  %v2628_v8 = vld [vmem:[#allocation2 + $0x20] sm:$0x7f]  ;;  %v7503_v32 = vpack.c.bf16 %v2917_v39, %v2916_v47  ;;  %v3059_v5 = vsel %vm2285_vm3, %v8709_v17, %v8715_v33  ;;  %v2151_v41 = vld [vmem:[#allocation2 + $0x18] sm:$0x7f]  ;;  %v2214_v36 = vsel %vm2211_vm5, %v8767_v40, %v8763_v54  ;;  %v2681_v20 = vld [vmem:[#allocation2 + $0x28] sm:$0x7f] }
 0x259   : > { %v1972_v23 = vsel %vm1956_vm4, %v1905_v2, %v1964_v26  ;;  %vm1957_vm9 = vcmp.gt.f32.partialorder %v1907_v19, 0.0  ;;  %v1965_v29 = vmul.f32 0.3, %v1907_v19  ;;  %v7494_v44 = vpack.c.bf16 %v2629_v16, %v2628_v8  ;;  %v2680_v33 = vld [vmem:[#allocation2 + $0x20] sm:$0x7f] }
 0x25a   : > { %1980 = vst [vmem:[#allocation2 + $0x30] sm:$0x7f] %v1972_v23  ;;  %v1909_v42 = vpop.f32.mrf.mxu0  ;;  %2589 = vrot.lane.b32.xlu0 %v7489_v22, %s7735_s20  ;;  %v2213_v2 = vsel %vm2211_vm5, %v8759_v49, %v8767_v40  ;;  %v7474_v39 = vpack.c.bf16 %v2065_v34, %v2064_v31  ;;  %v3076_v15 = vmul.f32 %v3059_v5, %v2997_v52  ;;  %v8914_v22 = vpop.permute.xlu0 %2893  ;;  %v2473_v43 = vld [vmem:[#allocation2 + $0x28] sm:$0x7f] }
 0x25b   : > { %v1973_v55 = vsel %vm1957_vm9, %v1907_v19, %v1965_v29  ;;  %v2231_v26 = vmul.f32 %v2214_v36, %v2152_v35  ;;  %v8904_v17 = vsel %vm8800_vm8, %v7494_v44, %v2669_v0  ;;  %v2741_v49 = vsel %vm950_vm11, %v8723_v7, %v8721_v53  ;;  %v2313_v35 = vld [vmem:[#allocation2 + $0x28] sm:$0x7f] }
 0x25c   : > { %1981 = vst [vmem:[#allocation2 + $0x38] sm:$0x7f] %v1973_v55  ;;  %2957 = vrot.lane.b32.xlu1 %v7503_v32, %s7744_s4  ;;  %2671 = vst [vmem:[#allocation3 + $0x110] sm:$0xff] %v8904_v17  ;;  %v2230_v40 = vmul.f32 %v2213_v2, %v2151_v41  ;;  %v7508_v19 = vpack.c.bf16 %v3077_v58, %v3076_v15  ;;  %v2758_v16 = vmul.f32 %v2741_v49, %v2681_v20  ;;  %v2153_v2 = vld [vmem:[#allocation2 + $0x28] sm:$0x7f] }
 0x25d   : > { %v2740_v34 = vsel %vm950_vm11, %v8717_v3, %v8723_v7  ;;  %v2376_v23 = vsel %vm2371_vm6, %v8829_v48, %v8809_v45  ;;  %v2534_v29 = vsel %vm876_vm13, %v8839_v46, %v8832_v30  ;;  %v2216_v3 = vsel %vm2211_vm5, %v2204_v28, %v8875_v37  ;;  %v8925_v7 = vpop.permute.xlu1 %3055 }
 0x25e   : > { %2105 = vrot.lane.b32.xlu0 %v7474_v39, %s7741_s28  ;;  %v7479_v47 = vpack.c.bf16 %v2231_v26, %v2230_v40  ;;  %v2757_v52 = vmul.f32 %v2740_v34, %v2680_v33  ;;  %v2375_v42 = vsel %vm2371_vm6, %v8731_v13, %v8829_v48  ;;  %v2533_v5 = vsel %vm876_vm13, %v8737_v50, %v8839_v46  ;;  %v8940_v15 = vpop.permute.xlu0 %3053  ;;  %v1988_v46 = vld [vmem:[#allocation2 + $0x28] sm:$0x7f] }
 0x25f   : > { %v2050_v41 = vsel %vm2045_vm12, %v8863_v27, %v8846_v11  ;;  %v2392_v36 = vmul.f32 %v2375_v42, %v2313_v35  ;;  %v2550_v13 = vmul.f32 %v2533_v5, %v2473_v43  ;;  %v2215_v48 = vsel %vm2211_vm5, %v8763_v54, %v2204_v28 }
 0x260   : > { %3117 = vrot.lane.b32.xlu1 %v7508_v19, %s7746_s6  ;;  %v7498_v32 = vpack.c.bf16 %v2758_v16, %v2757_v52  ;;  %v2232_v49 = vmul.f32 %v2215_v48, %v2153_v2  ;;  %v3222_v43 = vsel %vm2119_vm7, %v8727_v14, %v8725_v10  ;;  %v3221_v5 = vsel %vm2119_vm7, %v8697_v6, %v8727_v14 }
 0x261   : > { %v2154_v8 = vld [vmem:[#allocation2 + $0x30] sm:$0x7f]  ;;  %v8946_v52 = vpop.permute.xlu1 %2737 }
 0x262   : > { %v2314_v0 = vld [vmem:[#allocation2 + $0x30] sm:$0x7f]  ;;  %2271 = vrot.lane.b32.xlu0 %v7479_v47, %s7743_s30  ;;  %v2233_v20 = vmul.f32 %v2216_v3, %v2154_v8  ;;  %v2049_v47 = vsel %vm2045_vm12, %v8753_v9, %v8863_v27 }
 0x263   : > { %v2474_v31 = vld [vmem:[#allocation2 + $0x30] sm:$0x7f]  ;;  %v2393_v58 = vmul.f32 %v2376_v23, %v2314_v0  ;;  %v3160_v16 = vld [vmem:[#allocation2 + $0x38] sm:$0x7f]  ;;  %v2902_v23 = vsel %vm2445_vm10, %v8743_v62, %v8741_v18  ;;  %v2066_v9 = vmul.f32 %v2049_v47, %v1988_v46 }
 0x264   : > { %v2551_v44 = vmul.f32 %v2534_v29, %v2474_v31  ;;  %v1989_v55 = vld [vmem:[#allocation2 + $0x30] sm:$0x7f]  ;;  %v1945_v39 = vpop.f32.mrf.mxu1  ;;  %2798 = vrot.lane.b32.xlu1 %v7498_v32, %s7737_s22  ;;  %v2840_v34 = vld [vmem:[#allocation2 + $0x38] sm:$0x7f]  ;;  %v7480_v29 = vpack.c.bf16 %v2233_v20, %v2232_v49  ;;  %v3239_v32 = vmul.f32 %v3222_v43, %v3160_v16 }
 0x265   : > { %v1946_v26 = vadd.f32 %v1945_v39, %v8695_v51  ;;  %v7485_v50 = vpack.c.bf16 %v2393_v58, %v2392_v36  ;;  %v2067_v19 = vmul.f32 %v2050_v41, %v1989_v55  ;;  %v2631_v35 = vld [vmem:[#allocation2 + $0x38] sm:$0x7f]  ;;  %v2843_v8 = vld [vmem:[#allocation2 + $0x50] sm:$0x7f]  ;;  %v2919_v2 = vmul.f32 %v2902_v23, %v2840_v34 }
 0x266   : > { %v1947_v33 = vpop.f32.mrf.mxu1  ;;  %v7490_v40 = vpack.c.bf16 %v2551_v44, %v2550_v13  ;;  %v3159_v27 = vld [vmem:[#allocation2 + $0x30] sm:$0x7f]  ;;  %v2672_v44 = vld [vmem:[#allocation3 + $0x8] sm:$0xff]  ;;  %v3000_v55 = vld [vmem:[#allocation2 + $0x38] sm:$0x7f]  ;;  %v2901_v39 = vsel %vm2445_vm10, %v8705_v63, %v8743_v62  ;;  %v2922_v6 = vmul.f32 %v8899_v38, %v2843_v8  ;;  %v8975_v63 = vpop.permute.xlu1 %2369  ;;  %v3224_v8 = vsel %vm2119_vm7, %v8844_v1, %v8842_v60 }
 0x267   : > { %vm1958_vm14 = vcmp.gt.f32.partialorder %v1946_v26, 0.0  ;;  %v1966_v54 = vmul.f32 0.3, %v1946_v26  ;;  %v1948_v28 = vadd.f32 %v1947_v33, %v8695_v51  ;;  %2433 = vrot.lane.b32.xlu0 %v7485_v50, %s7742_s29  ;;  %v2839_v0 = vld [vmem:[#allocation2 + $0x30] sm:$0x7f]  ;;  %v8957_v51 = vpop.permute.xlu0 %2735  ;;  %v7475_v41 = vpack.c.bf16 %v2067_v19, %v2066_v9 }
 0x268   : > { %2591 = vrot.lane.b32.xlu1 %v7490_v40, %s7735_s20  ;;  %v1949_v3 = vpop.f32.mrf.mxu1  ;;  %v2630_v58 = vld [vmem:[#allocation2 + $0x30] sm:$0x7f]  ;;  %v3238_v48 = vmul.f32 %v3221_v5, %v3159_v27  ;;  %v2918_v14 = vmul.f32 %v2901_v39, %v2839_v0  ;;  %v3061_v33 = vsel %vm2285_vm3, %v8713_v4, %v8747_v24  ;;  %v2683_v47 = vld [vmem:[#allocation2 + $0x38] sm:$0x7f] }
 0x269   : > { %v1974_v31 = vsel %vm1958_vm14, %v1946_v26, %v1966_v54  ;;  %vm1959_vm4 = vcmp.gt.f32.partialorder %v1948_v28, 0.0  ;;  %v1967_v42 = vmul.f32 0.3, %v1948_v28  ;;  %v7495_v20 = vpack.c.bf16 %v2631_v35, %v2630_v58  ;;  %v2999_v50 = vld [vmem:[#allocation2 + $0x30] sm:$0x7f]  ;;  %v2675_v39 = vld [vmem:[#allocation3 + $0x98] sm:$0xff] }
 0x26a   : > { %1982 = vst [vmem:[#allocation2 + $0x40] sm:$0x7f] %v1974_v31  ;;  %v1950_v36 = vpop.f32.mrf.mxu1  ;;  %v3062_v26 = vsel %vm2285_vm3, %v8747_v24, %v8745_v59  ;;  %v7514_v62 = vpack.c.bf16 %v3239_v32, %v3238_v48  ;;  %v3163_v40 = vld [vmem:[#allocation2 + $0x50] sm:$0x7f]  ;;  %v7504_v19 = vpack.c.bf16 %v2919_v2, %v2918_v14  ;;  %v3078_v34 = vmul.f32 %v3061_v33, %v2999_v50 }
 0x26b   : > { %v1975_v13 = vsel %vm1959_vm4, %v1948_v28, %v1967_v42  ;;  %2273 = vrot.lane.b32.xlu0 %v7480_v29, %s7743_s30  ;;  %v8973_v46 = vsel %vm8800_vm8, %v7495_v20, %v2672_v44  ;;  %v3079_v49 = vmul.f32 %v3062_v26, %v3000_v55  ;;  %v8981_v16 = vpop.permute.xlu0 %2367  ;;  %v7506_v54 = vpack.c.bf16 %v2922_v6, %v2922_v6  ;;  %v2682_v23 = vld [vmem:[#allocation2 + $0x30] sm:$0x7f]  ;;  %v8992_v29 = vpop.permute.xlu1 %2528 }
 0x26c   : > { %1983 = vst [vmem:[#allocation2 + $0x48] sm:$0x7f] %v1975_v13  ;;  %2107 = vrot.lane.b32.xlu1 %v7475_v41, %s7741_s28  ;;  %2674 = vst [vmem:[#allocation3 + $0x8] sm:$0xff] %v8973_v46  ;;  %v2743_v28 = vsel %vm950_vm11, %v8805_v25, %v8769_v21  ;;  %v3242_v35 = vmul.f32 %v8842_v60, %v3163_v40  ;;  %v2742_v24 = vsel %vm950_vm11, %v8721_v53, %v8805_v25  ;;  %v2686_v25 = vld [vmem:[#allocation2 + $0x50] sm:$0x7f] }
 0x26d   : > { %v7509_v43 = vpack.c.bf16 %v3079_v49, %v3078_v34  ;;  %v2760_v4 = vmul.f32 %v2743_v28, %v2683_v47  ;;  %v2759_v9 = vmul.f32 %v2742_v24, %v2682_v23  ;;  %v2904_v42 = vsel %vm2445_vm10, %v8914_v22, %v8899_v38 }
 0x26e   : > { %v7516_v31 = vpack.c.bf16 %v3242_v35, %v3242_v35  ;;  %v3223_v44 = vsel %vm2119_vm7, %v8725_v10, %v8844_v1  ;;  %v3064_v60 = vsel %vm2285_vm3, %v8940_v15, %v8925_v7  ;;  %v2903_v38 = vsel %vm2445_vm10, %v8741_v18, %v8914_v22  ;;  %v3003_v22 = vld [vmem:[#allocation2 + $0x50] sm:$0x7f] }
 0x26f   : > { %3279 = vrot.lane.b32.xlu0 %v7514_v62, %s7745_s5  ;;  %v2527_v53 = vpop.permute.xlu0 %2526  ;;  %v7499_v5 = vpack.c.bf16 %v2760_v4, %v2759_v9  ;;  %v2763_v13 = vmul.f32 %v8946_v52, %v2686_v25  ;;  %v9014_v26 = vpop.permute.xlu1 %2043  ;;  %v3063_v18 = vsel %vm2285_vm3, %v8745_v59, %v8940_v15  ;;  %v2745_v33 = vsel %vm950_vm11, %v8957_v51, %v8946_v52 }
 0x270   : > { %2959 = vrot.lane.b32.xlu1 %v7504_v19, %s7744_s4  ;;  %v3082_v59 = vmul.f32 %v8925_v7, %v3003_v22  ;;  %v2536_v28 = vsel %vm876_vm13, %v2527_v53, %v8992_v29  ;;  %v2744_v52 = vsel %vm950_vm11, %v8769_v21, %v8957_v51  ;;  %v2378_v23 = vsel %vm2371_vm6, %v8981_v16, %v8975_v63  ;;  %v2475_v7 = vld [vmem:[#allocation2 + $0x38] sm:$0x7f] }
 0x271   : > { %v3161_v27 = vld [vmem:[#allocation2 + $0x40] sm:$0x7f]  ;;  %v7501_v34 = vpack.c.bf16 %v2763_v13, %v2763_v13  ;;  %v2377_v25 = vsel %vm2371_vm6, %v8809_v45, %v8981_v16 }
 0x272   : > { %v2841_v58 = vld [vmem:[#allocation2 + $0x40] sm:$0x7f]  ;;  %v3240_v55 = vmul.f32 %v3223_v44, %v3161_v27  ;;  %v2315_v27 = vld [vmem:[#allocation2 + $0x38] sm:$0x7f] }
 0x273   : > { %3119 = vrot.lane.b32.xlu0 %v7509_v43, %s7746_s6  ;;  %v3162_v3 = vld [vmem:[#allocation2 + $0x48] sm:$0x7f]  ;;  %v2632_v20 = vld [vmem:[#allocation2 + $0x40] sm:$0x7f]  ;;  %v2920_v10 = vmul.f32 %v2903_v38, %v2841_v58  ;;  %v2042_v49 = vpop.permute.xlu0 %2041  ;;  %v2210_v4 = vpop.permute.xlu1 %2209 }
 0x274   : > { %2963 = vrot.lane.b32.xlu1 %v7506_v54, %s7744_s4  ;;  %v2842_v0 = vld [vmem:[#allocation2 + $0x48] sm:$0x7f]  ;;  %v3241_v32 = vmul.f32 %v3224_v8, %v3162_v3  ;;  %v3001_v1 = vld [vmem:[#allocation2 + $0x40] sm:$0x7f]  ;;  %v7511_v8 = vpack.c.bf16 %v3082_v59, %v3082_v59  ;;  %v2052_v44 = vsel %vm2045_vm12, %v2042_v49, %v9014_v26 }
 0x275   : > { %v2921_v41 = vmul.f32 %v2904_v42, %v2842_v0  ;;  %v3002_v2 = vld [vmem:[#allocation2 + $0x48] sm:$0x7f]  ;;  %v3080_v40 = vmul.f32 %v3063_v18, %v3001_v1  ;;  %v2684_v47 = vld [vmem:[#allocation2 + $0x40] sm:$0x7f]  ;;  %v2535_v0 = vsel %vm876_vm13, %v8832_v30, %v2527_v53  ;;  %v2394_v53 = vmul.f32 %v2377_v25, %v2315_v27 }
 0x276   : > { %v2633_v36 = vld [vmem:[#allocation2 + $0x48] sm:$0x7f]  ;;  %v7515_v6 = vpack.c.bf16 %v3241_v32, %v3240_v55  ;;  %v3081_v14 = vmul.f32 %v3064_v60, %v3002_v2  ;;  %v2476_v54 = vld [vmem:[#allocation2 + $0x40] sm:$0x7f]  ;;  %v2761_v24 = vmul.f32 %v2744_v52, %v2684_v47  ;;  %v2552_v32 = vmul.f32 %v2535_v0, %v2475_v7  ;;  %v2155_v60 = vld [vmem:[#allocation2 + $0x38] sm:$0x7f] }
 0x277   : > { %3283 = vrot.lane.b32.xlu0 %v7516_v31, %s7745_s5  ;;  %v7496_v48 = vpack.c.bf16 %v2633_v36, %v2632_v20  ;;  %v7505_v50 = vpack.c.bf16 %v2921_v41, %v2920_v10  ;;  %v2685_v19 = vld [vmem:[#allocation2 + $0x48] sm:$0x7f]  ;;  %v2316_v43 = vld [vmem:[#allocation2 + $0x40] sm:$0x7f]  ;;  %v2208_v9 = vpop.permute.xlu0 %2207  ;;  %v2553_v3 = vmul.f32 %v2536_v28, %v2476_v54  ;;  %v2051_v41 = vsel %vm2045_vm12, %v8846_v11, %v2042_v49 }
 0x278   : > { %2800 = vrot.lane.b32.xlu1 %v7499_v5, %s7737_s22  ;;  %v7510_v15 = vpack.c.bf16 %v3081_v14, %v3080_v40  ;;  %v2762_v35 = vmul.f32 %v2745_v33, %v2685_v19  ;;  %v2395_v21 = vmul.f32 %v2378_v23, %v2316_v43  ;;  %v2156_v51 = vld [vmem:[#allocation2 + $0x40] sm:$0x7f]  ;;  %v2218_v31 = vsel %vm2211_vm5, %v2208_v9, %v2210_v4  ;;  %v1990_v5 = vld [vmem:[#allocation2 + $0x38] sm:$0x7f]  ;;  %v2317_v38 = vld [vmem:[#allocation2 + $0x48] sm:$0x7f] }
 0x279   : > { %v9021_v62 = vsel %vm8800_vm8, %v7496_v48, %v2675_v39  ;;  %v1991_v58 = vld [vmem:[#allocation2 + $0x40] sm:$0x7f]  ;;  %v2217_v30 = vsel %vm2211_vm5, %v8875_v37, %v2208_v9  ;;  %v7491_v2 = vpack.c.bf16 %v2553_v3, %v2552_v32  ;;  %v2235_v45 = vmul.f32 %v2218_v31, %v2156_v51  ;;  %v2477_v20 = vld [vmem:[#allocation2 + $0x48] sm:$0x7f] }
 0x27a   : > { %2677 = vst [vmem:[#allocation3 + $0x98] sm:$0xff] %v9021_v62  ;;  %v7500_v42 = vpack.c.bf16 %v2762_v35, %v2761_v24  ;;  %v7486_v16 = vpack.c.bf16 %v2395_v21, %v2394_v53  ;;  %v2069_v36 = vmul.f32 %v2052_v44, %v1991_v58  ;;  %v2234_v55 = vmul.f32 %v2217_v30, %v2155_v60  ;;  %v1992_v1 = vld [vmem:[#allocation2 + $0x48] sm:$0x7f]  ;;  %v10717_v44 = vld [vmem:[#allocation20_spill] sm:$0xff] }
 0x27b   : > { %3281 = vrot.lane.b32.xlu0 %v7515_v6, %s7745_s5  ;;  %v2068_v39 = vmul.f32 %v2051_v41, %v1990_v5  ;;  %v2396_v13 = vmul.f32 %v8975_v63, %v2317_v38  ;;  %v2554_v10 = vmul.f32 %v8992_v29, %v2477_v20  ;;  %v2157_v11 = vld [vmem:[#allocation2 + $0x48] sm:$0x7f]  ;;  %v2070_v6 = vmul.f32 %v9014_v26, %v1992_v1  ;;  %v3352_v29 = vld [vmem:[%s10658_s2] sm:$0x7f] }
 0x27c   : > { %2961 = vrot.lane.b32.xlu1 %v7505_v50, %s7744_s4  ;;  %v7481_v37 = vpack.c.bf16 %v2235_v45, %v2234_v55  ;;  %v2236_v22 = vmul.f32 %v2210_v4, %v2157_v11  ;;  %v5320_v49 = vld [vmem:[#allocation4 + $0x5] ss:$8 sm:$0xf]  ;;  %v7747_v26 = vmov 1  }
 0x27d   : > { %v7476_v48 = vpack.c.bf16 %v2069_v36, %v2068_v39  ;;  %v7487_v14 = vpack.c.bf16 %v2396_v13, %v2396_v13  ;;  %v7492_v18 = vpack.c.bf16 %v2554_v10, %v2554_v10  ;;  %v7477_v50 = vpack.c.bf16 %v2070_v6, %v2070_v6  ;;  %v5321_v33 = vld [vmem:[#allocation4 + $0x5] ss:$8 sm:$0xf0]  ;;  %7647 = vset.pattern.permute.xlu0 %v7747_v26  ;;  %v5171_v19 = vld [vmem:[#allocation4 + $0x4] ss:$8 sm:$0xf] }
 0x27e   : > { %v7482_v63 = vpack.c.bf16 %v2236_v22, %v2236_v22  ;;  %v5322_v40 = vor.u32 %v5321_v33, %v5320_v49  ;;  %v10716_v35 = vld [vmem:[#allocation18_spill] sm:$0xff]  ;;  %v2457_v33 = vld [vmem:[#allocation3 + $0x80] sm:$0xff] }
 0x27f   : > { %3121 = vrot.lane.b32.xlu0 %v7510_v15, %s7746_s6  ;;  %v4829_v43 = vld [vmem:[#allocation4 + $0x2] ss:$8 sm:$0xf]  ;;  %v4978_v27 = vld [vmem:[#allocation4 + $0x3] ss:$8 sm:$0xf] }
 0x280   : > { %2804 = vrot.lane.b32.xlu1 %v7501_v34, %s7737_s22  ;;  %v5172_v34 = vld [vmem:[#allocation4 + $0x4] ss:$8 sm:$0xf0]  ;;  %v5327_v59 = vrot.slane %v5322_v40, %v7917_v57  ;;  %v5335_v15 = vrot.slane %v5322_v40, %v7914_v56  ;;  %v5331_v54 = vrot.slane %v5322_v40, %v7925_v61  ;;  %v5339_v52 = vrot.slane %v5322_v40, %v10716_v35  ;;  %v4830_v23 = vld [vmem:[#allocation4 + $0x2] ss:$8 sm:$0xf0] }
 0x281   : > { %v9070_v47 = vor.u32 %v5172_v34, %v5171_v19  ;;  %v9082_v7 = vor.u32 %v4830_v23, %v4829_v43  ;;  %v4979_v3 = vld [vmem:[#allocation4 + $0x3] ss:$8 sm:$0xf0] }
 0x282   : > { %v9096_v21 = vor.u32 %v4979_v3, %v4978_v27  ;;  %v10718_v53 = vld [vmem:[#allocation22_spill] sm:$0xff] }
 0x283   : > { %3123 = vrot.lane.b32.xlu0 %v7511_v8, %s7746_s6  ;;  %v5178_v28 = vrot.slane %v9070_v47, %v7917_v57  ;;  %v5186_v4 = vrot.slane %v9070_v47, %v7914_v56  ;;  %v5182_v24 = vrot.slane %v9070_v47, %v7925_v61  ;;  %v4836_v8 = vrot.slane %v9082_v7, %v7917_v57 }
 0x284   : > { %2802 = vrot.lane.b32.xlu1 %v7500_v42, %s7737_s22  ;;  %v5190_v9 = vrot.slane %v9070_v47, %v10716_v35  ;;  %v4844_v0 = vrot.slane %v9082_v7, %v7914_v56  ;;  %v4840_v51 = vrot.slane %v9082_v7, %v7925_v61  ;;  %v4985_v31 = vrot.slane %v9096_v21, %v7917_v57 }
 0x285   : > { %v4848_v42 = vrot.slane %v9082_v7, %v10716_v35  ;;  %v4993_v25 = vrot.slane %v9096_v21, %v7914_v56  ;;  %v4989_v32 = vrot.slane %v9096_v21, %v7925_v61  ;;  %v5343_v57 = vrot.slane %v5322_v40, %v10717_v44  ;;  %v10719_v61 = vld [vmem:[#allocation19_spill] sm:$0xff] }
 0x286   : > { %v4997_v30 = vrot.slane %v9096_v21, %v10716_v35  ;;  %v5351_v56 = vrot.slane %v5322_v40, %v10718_v53  ;;  %v5347_v41 = vrot.slane %v5322_v40, %v10719_v61  ;;  %v5194_v45 = vrot.slane %v9070_v47, %v10717_v44 }
 0x287   : > { %2593 = vrot.lane.b32.xlu0 %v7491_v2, %s7735_s20  ;;  %v5202_v55 = vrot.slane %v9070_v47, %v10718_v53  ;;  %v5198_v39 = vrot.slane %v9070_v47, %v10719_v61  ;;  %v4856_v6 = vrot.slane %v9082_v7, %v10719_v61 }
 0x288   : > { %2435 = vrot.lane.b32.xlu1 %v7486_v16, %s7742_s29  ;;  %v10720_v16 = vld [vmem:[#allocation21_spill] sm:$0xff] }
 0x289   : > { %v5355_v36 = vrot.slane %v5322_v40, %v10720_v16  ;;  %v5206_v10 = vrot.slane %v9070_v47, %v10720_v16  ;;  %v4864_v19 = vrot.slane %v9082_v7, %v10720_v16 }
 0x28b   : > { %2275 = vrot.lane.b32.xlu0 %v7481_v37, %s7743_s30  ;;  %v4852_v37 = vrot.slane %v9082_v7, %v10717_v44 }
 0x28c   : > { %2109 = vrot.lane.b32.xlu1 %v7476_v48, %s7741_s28  ;;  %v4860_v48 = vrot.slane %v9082_v7, %v10718_v53 }
 0x28f   : > { %2437 = vrot.lane.b32.xlu0 %v7487_v14, %s7742_s29 }
 0x290   : > { %2595 = vrot.lane.b32.xlu1 %v7492_v18, %s7735_s20 }
 0x293   : > { %2111 = vrot.lane.b32.xlu0 %v7477_v50, %s7741_s28 }
 0x294   : > { %2277 = vrot.lane.b32.xlu1 %v7482_v63, %s7743_s30 }
 0x297   : > { %3355 = vperm.xlu0 %7647, %v3352_v29   ;;  %v5001_v29 = vrot.slane %v9096_v21, %v10717_v44 }
 0x298   : > { %5356 = vrot.lane.b32.xlu1 %v5327_v59, %s7742_s29 }
 0x29b   : > { %5360 = vrot.lane.b32.xlu0 %v5335_v15, %s7742_s29 }
 0x29c   : > { %5358 = vrot.lane.b32.xlu1 %v5331_v54, %s7742_s29  ;;  %v3303_v54 = vld [vmem:[#allocation3 + $0x58] sm:$0xff] }
 0x29f   : > { %5207 = vrot.lane.b32.xlu0 %v5178_v28, %s7735_s20 }
 0x2a0   : > { %5362 = vrot.lane.b32.xlu1 %v5339_v52, %s7742_s29  ;;  %v5009_v52 = vrot.slane %v9096_v21, %v10718_v53 }
 0x2a3   : > { %5211 = vrot.lane.b32.xlu0 %v5186_v4, %s7735_s20 }
 0x2a4   : > { %5209 = vrot.lane.b32.xlu1 %v5182_v24, %s7735_s20  ;;  %v2614_v24 = vld [vmem:[#allocation3 + $0x18] sm:$0xff] }
 0x2a7   : > { %4865 = vrot.lane.b32.xlu0 %v4836_v8, %s7744_s4 }
 0x2a8   : > { %5213 = vrot.lane.b32.xlu1 %v5190_v9, %s7735_s20 }
 0x2ab   : > { %4869 = vrot.lane.b32.xlu0 %v4844_v0, %s7744_s4  ;;  %v5005_v0 = vrot.slane %v9096_v21, %v10719_v61 }
 0x2ac   : > { %4867 = vrot.lane.b32.xlu1 %v4840_v51, %s7744_s4  ;;  %v2430_v60 = vpop.permute.xlu1 %2429 }
 0x2ad   : > { %v2439_v14 = vrot.slane %v2430_v60, 4 }
 0x2ae   : > { %v3276_v58 = vpop.permute.xlu0 %3275 }
 0x2af   : > { %5014 = vrot.lane.b32.xlu0 %v4985_v31, %s7737_s22  ;;  %v3285_v50 = vrot.slane %v3276_v58, 4 }
 0x2b0   : > { %4871 = vrot.lane.b32.xlu1 %v4848_v42, %s7744_s4  ;;  %v2588_v2 = vpop.permute.xlu1 %2587 }
 0x2b1   : > { %v2597_v34 = vrot.slane %v2588_v2, 4 }
 0x2b2   : > { %v9120_v5 = vpop.permute.xlu0 %2955 }
 0x2b3   : > { %5018 = vrot.lane.b32.xlu0 %v4993_v25, %s7737_s22  ;;  %v2965_v43 = vrot.slane %v9120_v5, 4 }
 0x2b4   : > { %5016 = vrot.lane.b32.xlu1 %v4989_v32, %s7737_s22  ;;  %v9134_v20 = vpop.permute.xlu1 %2103  ;;  %v2983_v32 = vld [vmem:[#allocation3 + $0xc0] sm:$0xff] }
 0x2b5   : > { %v2113_v51 = vrot.slane %v9134_v20, 4 }
 0x2b6   : > { %v9129_v38 = vpop.permute.xlu0 %3115 }
 0x2b7   : > { %5364 = vrot.lane.b32.xlu0 %v5343_v57, %s7742_s29 }
 0x2b8   : > { %5020 = vrot.lane.b32.xlu1 %v4997_v30, %s7737_s22  ;;  %v9147_v1 = vpop.permute.xlu1 %2269 }
 0x2ba   : > { %v9142_v13 = vpop.permute.xlu0 %2796 }
 0x2bb   : > { %5368 = vrot.lane.b32.xlu0 %v5351_v56, %s7742_s29 }
 0x2bc   : > { %5366 = vrot.lane.b32.xlu1 %v5347_v41, %s7742_s29 }
 0x2bf   : > { %5215 = vrot.lane.b32.xlu0 %v5194_v45, %s7735_s20  ;;  %v2279_v45 = vrot.slane %v9147_v1, 4 }
 0x2c0   : > { %5370 = vrot.lane.b32.xlu1 %v5355_v36, %s7742_s29 }
 0x2c3   : > { %5219 = vrot.lane.b32.xlu0 %v5202_v55, %s7735_s20 }
 0x2c4   : > { %5217 = vrot.lane.b32.xlu1 %v5198_v39, %s7735_s20 }
 0x2c7   : > { %4873 = vrot.lane.b32.xlu0 %v4852_v37, %s7744_s4 }
 0x2c8   : > { %v9152_v11 = vpop.permute.xlu0 %2431  ;;  %5221 = vrot.lane.b32.xlu1 %v5206_v10, %s7735_s20 }
 0x2c9   : > { %v2440_v18 = vrot.slane %v9152_v11, 4 }
 0x2ca   : > { %v9158_v22 = vpop.permute.xlu1 %3277 }
 0x2cb   : > { %v2444_v63 = vsel %vm572_vm0, %v2439_v14, %v2440_v18  ;;  %v3286_v49 = vrot.slane %v9158_v22, 4  ;;  %4877 = vrot.lane.b32.xlu0 %v4860_v48, %s7744_s4  ;;  %v2297_v14 = vld [vmem:[#allocation3 + $0x120] sm:$0xff] }
 0x2cc   : > { %v2446_v26 = vsel %vm2445_vm10, %v2430_v60, %v2444_v63  ;;  %v9168_v40 = vpop.permute.xlu0 %2589  ;;  %4875 = vrot.lane.b32.xlu1 %v4856_v6, %s7744_s4  ;;  %v3125_v60 = vrot.slane %v9129_v38, 4 }
 0x2cd   : > { %v9175_v59 = vsel %vm8800_vm8, %v2446_v26, %v2457_v33  ;;  %v3290_v15 = vsel %vm572_vm0, %v3285_v50, %v3286_v49  ;;  %v2598_v47 = vrot.slane %v9168_v40, 4 }
 0x2ce   : > { %2459 = vst [vmem:[#allocation3 + $0x80] sm:$0xff] %v9175_v59  ;;  %v3292_v28 = vsel %vm2045_vm12, %v3276_v58, %v3290_v15  ;;  %v9183_v35 = vpop.permute.xlu1 %2957 }
 0x2cf   : > { %v3304_v23 = vsel %vm8800_vm8, %v3292_v28, %v3303_v54  ;;  %v2602_v4 = vsel %vm572_vm0, %v2597_v34, %v2598_v47  ;;  %v2966_v7 = vrot.slane %v9183_v35, 4  ;;  %5022 = vrot.lane.b32.xlu0 %v5001_v29, %s7737_s22 }
 0x2d0   : > { %3305 = vst [vmem:[#allocation3 + $0x58] sm:$0xff] %v3304_v23  ;;  %v2603_v8 = vsel %vm950_vm11, %v2588_v2, %v2602_v4  ;;  %v9196_v9 = vpop.permute.xlu0 %2105  ;;  %v7184_v27 = vcombine.high %v3304_v23, %v3304_v23  ;;  %v7183_v3 = vcombine.low %v3304_v23, %v3304_v23  ;;  %4879 = vrot.lane.b32.xlu1 %v4864_v19, %s7744_s4  ;;  %v2823_v19 = vld [vmem:[#allocation3 + $0xa8] sm:$0xff] }
 0x2d1   : > { %v9204_v31 = vsel %vm8800_vm8, %v2603_v8, %v2614_v24  ;;  %v2970_v42 = vsel %vm572_vm0, %v2965_v43, %v2966_v7  ;;  %v2114_v25 = vrot.slane %v9196_v9, 4  ;;  %v5013_v2 = vrot.slane %v9096_v21, %v10720_v16  ;;  %v10721_v43 = vld [vmem:[#allocation23_spill] sm:$0xff]  ;;  %v2460_v4 = vld [vmem:[#allocation3 + $0x108] sm:$0xff] }
 0x2d2   : > { %2616 = vst [vmem:[#allocation3 + $0x18] sm:$0xff] %v9204_v31  ;;  %v2972_v58 = vsel %vm2371_vm6, %v9120_v5, %v2970_v42  ;;  %v9213_v44 = vpop.permute.xlu1 %3117  ;;  %7191 = vmatprep.subr.msk.bf16.mxu0 %vm572_vm0, %v7184_v27  ;;  %v3542_v57 = vsel %vm572_vm0, %v7183_v3, 0  ;;  %v2137_v5 = vld [vmem:[#allocation3 + $0xb0] sm:$0xff]  ;;  %v2806_v21 = vrot.slane %v9142_v13, 4 }
 0x2d3   : > { %v2984_v30 = vsel %vm8800_vm8, %v2972_v58, %v2983_v32  ;;  %v2118_v53 = vsel %vm572_vm0, %v2113_v51, %v2114_v25  ;;  %v3126_v56 = vrot.slane %v9213_v44, 4  ;;  %3572 = vmatpush1.bf16.msra.mxu0 %v3542_v57  ;;  %5026 = vrot.lane.b32.xlu0 %v5009_v52, %s7737_s22  ;;  %v2300_v58 = vld [vmem:[#allocation3 + $0x38] sm:$0xff] }
 0x2d4   : > { %2985 = vst [vmem:[#allocation3 + $0xc0] sm:$0xff] %v2984_v30  ;;  %v2120_v61 = vsel %vm2119_vm7, %v9134_v20, %v2118_v53  ;;  %v2272_v41 = vpop.permute.xlu0 %2271  ;;  %5024 = vrot.lane.b32.xlu1 %v5005_v0, %s7737_s22  ;;  %v3143_v20 = vld [vmem:[#allocation3 + $0x68] sm:$0xff]  ;;  %v7159_v53 = vcombine.low %v9175_v59, %v9204_v31 }
 0x2d5   : > { %v9233_v36 = vsel %vm8800_vm8, %v2120_v61, %v2137_v5  ;;  %v3130_v55 = vsel %vm572_vm0, %v3125_v60, %v3126_v56  ;;  %v2280_v39 = vrot.slane %v2272_v41, 4  ;;  %v2140_v61 = vld [vmem:[#allocation3 + $0xd0] sm:$0xff] }
 0x2d6   : > { %2139 = vst [vmem:[#allocation3 + $0xb0] sm:$0xff] %v9233_v36  ;;  %v3132_v37 = vsel %vm2211_vm5, %v9129_v38, %v3130_v55  ;;  %v9241_v10 = vpop.permute.xlu1 %2798  ;;  %v3306_v55 = vld [vmem:[#allocation3 + $0x78] sm:$0xff] }
 0x2d7   : > { %v3144_v16 = vsel %vm8800_vm8, %v3132_v37, %v3143_v20  ;;  %v2284_v48 = vsel %vm572_vm0, %v2279_v45, %v2280_v39  ;;  %v2807_v6 = vrot.slane %v9241_v10, 4 }
 0x2d8   : > { %3145 = vst [vmem:[#allocation3 + $0x68] sm:$0xff] %v3144_v16  ;;  %v2286_v50 = vsel %vm2285_vm3, %v9147_v1, %v2284_v48  ;;  %v7176_v63 = vcombine.high %v2984_v30, %v3144_v16  ;;  %v7175_v29 = vcombine.low %v2984_v30, %v3144_v16  ;;  %5028 = vrot.lane.b32.xlu1 %v5013_v2, %s7737_s22  ;;  %v2986_v48 = vld [vmem:[#allocation3 + $0x118] sm:$0xff] }
 0x2d9   : > { %v9253_v38 = vsel %vm8800_vm8, %v2286_v50, %v2297_v14  ;;  %v2811_v33 = vsel %vm572_vm0, %v2806_v21, %v2807_v6  ;;  %v9258_v26 = vpop.permute.xlu0 %2433 }
 0x2da   : > { %2299 = vst [vmem:[#allocation3 + $0x120] sm:$0xff] %v9253_v38  ;;  %v2812_v1 = vsel %vm876_vm13, %v9142_v13, %v2811_v33  ;;  %v2441_v34 = vrot.slane %v9258_v26, 4  ;;  %v9264_v15 = vpop.permute.xlu1 %2591  ;;  %3573 = vmatprep.subr.bf16.mxu0 %v7176_v63  ;;  %v7151_v21 = vcombine.low %v9233_v36, %v9253_v38 }
 0x2db   : > { %v2824_v54 = vsel %vm8800_vm8, %v2812_v1, %v2823_v19  ;;  %v2599_v28 = vrot.slane %v9264_v15, 4  ;;  %3574 = vmatpush1.bf16.msra.mxu0 %v7175_v29  ;;  %v3146_v29 = vld [vmem:[#allocation3 + $0x130] sm:$0xff] }
 0x2dc   : > { %2825 = vst [vmem:[#allocation3 + $0xa8] sm:$0xff] %v2824_v54  ;;  %v2447_v52 = vsel %vm572_vm0, %v2440_v18, %v2441_v34  ;;  %v7168_v13 = vcombine.high %v10721_v43, %v2824_v54  ;;  %v7167_v23 = vcombine.low %v10721_v43, %v2824_v54  ;;  %v2617_v18 = vld [vmem:[#allocation3 + $0xc8] sm:$0xff] }
 0x2dd   : > { %v2448_v24 = vsel %vm2445_vm10, %v9152_v11, %v2447_v52  ;;  %v2604_v8 = vsel %vm572_vm0, %v2598_v47, %v2599_v28  ;;  %v9283_v27 = vpop.permute.xlu0 %2273  ;;  %v7160_v11 = vcombine.high %v9175_v59, %v9204_v31 }
 0x2de   : > { %v9287_v3 = vsel %vm8800_vm8, %v2448_v24, %v2460_v4  ;;  %v2605_v0 = vsel %vm950_vm11, %v9168_v40, %v2604_v8  ;;  %v2281_v51 = vrot.slane %v9283_v27, 4  ;;  %v9292_v42 = vpop.permute.xlu1 %2107  ;;  %3575 = vmatprep.subr.bf16.mxu0 %v7168_v13  ;;  %v2826_v24 = vld [vmem:[#allocation3 + $0x90] sm:$0xff] }
 0x2df   : > { %2462 = vst [vmem:[#allocation3 + $0x108] sm:$0xff] %v9287_v3  ;;  %v9299_v47 = vsel %vm8800_vm8, %v2605_v0, %v2617_v18  ;;  %v2115_v32 = vrot.slane %v9292_v42, 4  ;;  %3576 = vmatpush1.bf16.msra.mxu0 %v7167_v23 }
 0x2e0   : > { %2619 = vst [vmem:[#allocation3 + $0xc8] sm:$0xff] %v9299_v47  ;;  %v2287_v40 = vsel %vm572_vm0, %v2280_v39, %v2281_v51  ;;  %3577 = vmatprep.subr.bf16.mxu0 %v7160_v11 }
 0x2e1   : > { %v2288_v57 = vsel %vm2285_vm3, %v2272_v41, %v2287_v40  ;;  %v2121_v60 = vsel %vm572_vm0, %v2114_v25, %v2115_v32  ;;  %v9312_v30 = vpop.permute.xlu0 %3279  ;;  %v7152_v25 = vcombine.high %v9233_v36, %v9253_v38  ;;  %v9356_v36 = vld [vmem:[%s10657_s1 + $0x4] sm:$0xf] }
 0x2e2   : > { %v9318_v5 = vsel %vm8800_vm8, %v2288_v57, %v2300_v58  ;;  %v2122_v2 = vsel %vm2119_vm7, %v9196_v9, %v2121_v60  ;;  %v3287_v41 = vrot.slane %v9312_v30, 4  ;;  %v9323_v45 = vpop.permute.xlu1 %2959 }
 0x2e3   : > { %2302 = vst [vmem:[#allocation3 + $0x38] sm:$0xff] %v9318_v5  ;;  %v9330_v59 = vsel %vm8800_vm8, %v2122_v2, %v2140_v61  ;;  %v2967_v31 = vrot.slane %v9323_v45, 4  ;;  %3578 = vmatpush1.bf16.msra.mxu0 %v7159_v53  ;;  %v3309_v61 = vld [vmem:[#allocation3 + $0x30] sm:$0xff] }
 0x2e4   : > { %2142 = vst [vmem:[#allocation3 + $0xd0] sm:$0xff] %v9330_v59  ;;  %v3293_v9 = vsel %vm572_vm0, %v3286_v49, %v3287_v41  ;;  %3579 = vmatprep.subr.bf16.mxu0 %v7152_v25 }
 0x2e5   : > { %v3294_v39 = vsel %vm2045_vm12, %v9158_v22, %v3293_v9  ;;  %v2973_v20 = vsel %vm572_vm0, %v2966_v7, %v2967_v31  ;;  %v9342_v37 = vpop.permute.xlu0 %3119 }
 0x2e6   : > { %v3307_v16 = vsel %vm8800_vm8, %v3294_v39, %v3306_v55  ;;  %v2974_v49 = vsel %vm2371_vm6, %v9183_v35, %v2973_v20  ;;  %v3127_v14 = vrot.slane %v9342_v37, 4  ;;  %v2964_v50 = vpop.permute.xlu1 %2963  ;;  %v7162_v55 = vcombine.high %v9287_v3, %v9299_v47  ;;  %v2989_v20 = vld [vmem:[#allocation3 + $0xd8] sm:$0xff] }
 0x2e7   : > { %3308 = vst [vmem:[#allocation3 + $0x78] sm:$0xff] %v3307_v16  ;;  %v2987_v22 = vsel %vm8800_vm8, %v2974_v49, %v2986_v48  ;;  %3580 = vmatpush1.bf16.msra.mxu0 %v7151_v21  ;;  %v7186_v7 = vcombine.high %v3307_v16, %v3307_v16  ;;  %v7185_v63 = vcombine.low %v3307_v16, %v3307_v16  ;;  %v2969_v11 = vrot.slane %v2964_v50, 4  ;;  %v2992_v21 = vld [vmem:[#allocation3 + $0xa0] sm:$0xff] }
 0x2e8   : > { %2988 = vst [vmem:[#allocation3 + $0x118] sm:$0xff] %v2987_v22  ;;  %v3133_v35 = vsel %vm572_vm0, %v3126_v56, %v3127_v14  ;;  %v3312_v50 = vld [vmem:[#allocation3 + $0x40] sm:$0xff] }
 0x2e9   : > { %v3134_v38 = vsel %vm2211_vm5, %v9213_v44, %v3133_v35  ;;  %v3284_v33 = vpop.permute.xlu0 %3283  ;;  %7193 = vmatprep.subr.msk.bf16.mxu1 %vm572_vm0, %v7186_v7  ;;  %v3548_v19 = vsel %vm572_vm0, %v7185_v63, 0  ;;  %v9374_v44 = vld [vmem:[#allocation3 + $0x28] sm:$0xff] }
 0x2ea   : > { %v3147_v1 = vsel %vm8800_vm8, %v3134_v38, %v3146_v29  ;;  %v9369_v54 = vpop.permute.xlu1 %2800  ;;  %3613 = vmatpush1.bf16.msra.mxu1 %v3548_v19  ;;  %7192 = vmatmul.mubr.msk.bf16.vlgmr.msra.gmra.mxu0 %vm1759_vm2, %v9356_v36  ;;  %v3289_v4 = vrot.slane %v3284_v33, 4  ;;  %v7161_v29 = vcombine.low %v9287_v3, %v9299_v47  ;;  %v3149_v38 = vld [vmem:[#allocation3 + $0x50] sm:$0xff]  ;;  %v7153_v3 = vcombine.low %v9330_v59, %v9318_v5 }
 0x2eb   : > { %3148 = vst [vmem:[#allocation3 + $0x130] sm:$0xff] %v3147_v1  ;;  %v2808_v56 = vrot.slane %v9369_v54, 4  ;;  %v7178_v52 = vcombine.high %v2987_v22, %v3147_v1  ;;  %v7177_v43 = vcombine.low %v2987_v22, %v3147_v1  ;;  %3679 = vmatprep.mubr.bf16.mxu0 %v9374_v44 }
 0x2ed   : > { %v2813_v13 = vsel %vm572_vm0, %v2807_v6, %v2808_v56  ;;  %v3282_v23 = vpop.permute.xlu0 %3281  ;;  %3614 = vmatprep.subr.bf16.mxu1 %v7178_v52 }
 0x2ee   : > { %v2814_v8 = vsel %vm876_vm13, %v9241_v10, %v2813_v13  ;;  %v3288_v18 = vrot.slane %v3282_v23, 4  ;;  %v2962_v0 = vpop.permute.xlu1 %2961  ;;  %3615 = vmatpush1.bf16.msra.mxu1 %v7177_v43  ;;  %v7154_v43 = vcombine.high %v9330_v59, %v9318_v5 }
 0x2ef   : > { %v2827_v40 = vsel %vm8800_vm8, %v2814_v8, %v2826_v24  ;;  %v2968_v58 = vrot.slane %v2962_v0, 4  ;;  %v3152_v8 = vld [vmem:[#allocation3 + $0xe8] sm:$0xff] }
 0x2f0   : > { %2828 = vst [vmem:[#allocation3 + $0x90] sm:$0xff] %v2827_v40  ;;  %v3295_v57 = vsel %vm572_vm0, %v3287_v41, %v3288_v18  ;;  %v3297_v6 = vsel %vm572_vm0, %v3288_v18, %v3289_v4  ;;  %v7170_v60 = vcombine.high %v8904_v17, %v2827_v40  ;;  %v7169_v53 = vcombine.low %v8904_v17, %v2827_v40 }
 0x2f1   : > { %v3296_v10 = vsel %vm2045_vm12, %v9312_v30, %v3295_v57  ;;  %v2975_v2 = vsel %vm572_vm0, %v2967_v31, %v2968_v58  ;;  %v2977_v25 = vsel %vm572_vm0, %v2968_v58, %v2969_v11  ;;  %v3122_v9 = vpop.permute.xlu0 %3121  ;;  %v3298_v41 = vsel %vm2045_vm12, %v3282_v23, %v3297_v6  ;;  %v2829_v58 = vld [vmem:[#allocation3 + $0xe0] sm:$0xff]  ;;  %v2832_v57 = vld [vmem:[#allocation3 + $0x88] sm:$0xff] }
 0x2f2   : > { %v3310_v39 = vsel %vm8800_vm8, %v3296_v10, %v3309_v61  ;;  %v2976_v17 = vsel %vm2371_vm6, %v9323_v45, %v2975_v2  ;;  %v2978_v30 = vsel %vm2371_vm6, %v2962_v0, %v2977_v25  ;;  %v2805_v16 = vpop.permute.xlu1 %2804  ;;  %3616 = vmatprep.subr.bf16.mxu1 %v7170_v60  ;;  %v3128_v49 = vrot.slane %v3122_v9, 4 }
 0x2f3   : > { %3311 = vst [vmem:[#allocation3 + $0x30] sm:$0xff] %v3310_v39  ;;  %v2990_v31 = vsel %vm8800_vm8, %v2976_v17, %v2989_v20  ;;  %v9406_v48 = vsel %vm8800_vm8, %v2978_v30, %v2992_v21  ;;  %3617 = vmatpush1.bf16.msra.mxu1 %v7169_v53  ;;  %v7188_v45 = vcombine.high %v3310_v39, %v3310_v39  ;;  %v2810_v13 = vrot.slane %v2805_v16, 4  ;;  %v2463_v17 = vld [vmem:[#allocation3 + $0x138] sm:$0xff] }
 0x2f4   : > { %2991 = vst [vmem:[#allocation3 + $0xd8] sm:$0xff] %v2990_v31  ;;  %2994 = vst [vmem:[#allocation3 + $0xa0] sm:$0xff] %v9406_v48  ;;  %3618 = vmatprep.subr.bf16.mxu1 %v7162_v55  ;;  %v7187_v22 = vcombine.low %v3310_v39, %v3310_v39  ;;  %v9411_v7 = vsel %vm8800_vm8, %v3298_v41, %v3312_v50  ;;  %v3135_v63 = vsel %vm572_vm0, %v3127_v14, %v3128_v49  ;;  %v2620_v55 = vld [vmem:[#allocation3 + $0x70] sm:$0xff] }
 0x2f5   : > { %v3124_v35 = vpop.permute.xlu0 %3123  ;;  %v3136_v33 = vsel %vm2211_vm5, %v9342_v37, %v3135_v63  ;;  %7195 = vmatprep.subr.msk.bf16.mxu0 %vm572_vm0, %v7188_v45  ;;  %v7190_v24 = vcombine.high %v9411_v7, %v9411_v7  ;;  %v7189_v5 = vcombine.low %v9411_v7, %v9411_v7  ;;  %v2303_v45 = vld [vmem:[#allocation3 + $0xf8] sm:$0xff] }
 0x2f6   : > { %v3129_v19 = vrot.slane %v3124_v35, 4  ;;  %v2803_v1 = vpop.permute.xlu1 %2802  ;;  %v3554_v52 = vsel %vm572_vm0, %v7187_v22, 0  ;;  %v3150_v14 = vsel %vm8800_vm8, %v3136_v33, %v3149_v38 }
 0x2f7   : > { %v2809_v23 = vrot.slane %v2803_v1, 4  ;;  %3654 = vmatpush1.bf16.msra.mxu0 %v3554_v52  ;;  %3619 = vmatpush1.bf16.msra.mxu1 %v7161_v29  ;;  %3151 = vst [vmem:[#allocation3 + $0x50] sm:$0xff] %v3150_v14  ;;  %v7180_v37 = vcombine.high %v2990_v31, %v3150_v14  ;;  %v7179_v4 = vcombine.low %v2990_v31, %v3150_v14  ;;  %v3560_v21 = vsel %vm572_vm0, %v7189_v5, 0 }
 0x2f8   : > { %v3137_v47 = vsel %vm572_vm0, %v3128_v49, %v3129_v19  ;;  %3620 = vmatprep.subr.bf16.mxu1 %v7154_v43 }
 0x2f9   : > { %v3138_v18 = vsel %vm2211_vm5, %v3122_v9, %v3137_v47  ;;  %v2815_v0 = vsel %vm572_vm0, %v2808_v56, %v2809_v23  ;;  %v2817_v11 = vsel %vm572_vm0, %v2809_v23, %v2810_v13  ;;  %v9436_v40 = vpop.permute.xlu0 %2593  ;;  %3655 = vmatprep.subr.bf16.mxu0 %v7180_v37 }
 0x2fa   : > { %v3153_v59 = vsel %vm8800_vm8, %v3138_v18, %v3152_v8  ;;  %v2816_v6 = vsel %vm876_vm13, %v9369_v54, %v2815_v0  ;;  %v2818_v60 = vsel %vm876_vm13, %v2803_v1, %v2817_v11  ;;  %v2600_v53 = vrot.slane %v9436_v40, 4  ;;  %v2436_v56 = vpop.permute.xlu1 %2435 }
 0x2fb   : > { %3154 = vst [vmem:[#allocation3 + $0xe8] sm:$0xff] %v3153_v59  ;;  %v2830_v61 = vsel %vm8800_vm8, %v2816_v6, %v2829_v58  ;;  %v9450_v10 = vsel %vm8800_vm8, %v2818_v60, %v2832_v57  ;;  %v2442_v2 = vrot.slane %v2436_v56, 4  ;;  %3656 = vmatpush1.bf16.msra.mxu0 %v7179_v4  ;;  %3621 = vmatpush1.bf16.msra.mxu1 %v7153_v3  ;;  %v2623_v4 = vld [vmem:[#allocation3 + $0x20] sm:$0xff]  ;;  %v2146_v58 = vld [vmem:[#allocation3 + $0x48] sm:$0xff] }
 0x2fc   : > { %2831 = vst [vmem:[#allocation3 + $0xe0] sm:$0xff] %v2830_v61  ;;  %2834 = vst [vmem:[#allocation3 + $0x88] sm:$0xff] %v9450_v10  ;;  %v2606_v54 = vsel %vm572_vm0, %v2599_v28, %v2600_v53  ;;  %7197 = vmatprep.subr.msk.bf16.mxu1 %vm572_vm0, %v7190_v24  ;;  %v7172_v25 = vcombine.high %v8973_v46, %v2830_v61  ;;  %v7171_v9 = vcombine.low %v8973_v46, %v2830_v61  ;;  %v2306_v60 = vld [vmem:[#allocation3 + $0x100] sm:$0xff] }
 0x2fd   : > { %v2607_v41 = vsel %vm950_vm11, %v9264_v15, %v2606_v54  ;;  %v2449_v39 = vsel %vm572_vm0, %v2441_v34, %v2442_v2  ;;  %v9466_v20 = vpop.permute.xlu0 %2275  ;;  %v7182_v34 = vcombine.high %v9406_v48, %v3153_v59  ;;  %v7181_v29 = vcombine.low %v9406_v48, %v3153_v59 }
 0x2fe   : > { %v2621_v28 = vsel %vm8800_vm8, %v2607_v41, %v2620_v55  ;;  %v2450_v30 = vsel %vm2445_vm10, %v9258_v26, %v2449_v39  ;;  %v2282_v46 = vrot.slane %v9466_v20, 4  ;;  %v2110_v16 = vpop.permute.xlu1 %2109  ;;  %7194 = vmatmul.mubr.msk.bf16.vlgmr.msra.gmra.mxu1 %vm1759_vm2, %v9356_v36  ;;  %3657 = vmatprep.subr.bf16.mxu0 %v7172_v25  ;;  %v7173_v47 = vcombine.low %v9021_v62, %v9450_v10  ;;  %v4114_v25 = vld [vmem:[#allocation2 + $0x50] sm:$0x7f] }
 0x2ff   : > { %2622 = vst [vmem:[#allocation3 + $0x70] sm:$0xff] %v2621_v28  ;;  %v2464_v15 = vsel %vm8800_vm8, %v2450_v30, %v2463_v17  ;;  %v2116_v31 = vrot.slane %v2110_v16, 4  ;;  %3658 = vmatpush1.bf16.msra.mxu0 %v7171_v9  ;;  %3695 = vmatpush1.bf16.msra.mxu1 %v3560_v21  ;;  %v7544_v9 = vpack.c.bf16 %v4114_v25, %v4114_v25  ;;  %v4274_v55 = vld [vmem:[#allocation2 + $0x50] sm:$0x7f] }
 0x300   : > { %2465 = vst [vmem:[#allocation3 + $0x138] sm:$0xff] %v2464_v15  ;;  %v2289_v26 = vsel %vm572_vm0, %v2281_v51, %v2282_v46  ;;  %3696 = vmatprep.subr.bf16.mxu1 %v7182_v34  ;;  %v7164_v49 = vcombine.high %v2464_v15, %v2621_v28  ;;  %v7163_v50 = vcombine.low %v2464_v15, %v2621_v28  ;;  %v2143_v51 = vld [vmem:[#allocation3 + $0x10] sm:$0xff]  ;;  %v3761_v15 = vld [vmem:[#allocation2 + $0x8] sm:$0x7f] }
 0x301   : > { %3720 = vmatprep.mubr.bf16.mxu1 %v9374_v44  ;;  %v2290_v22 = vsel %vm2285_vm3, %v9283_v27, %v2289_v26  ;;  %v2123_v63 = vsel %vm572_vm0, %v2115_v32, %v2116_v31  ;;  %v2438_v35 = vpop.permute.xlu0 %2437  ;;  %v7174_v27 = vcombine.high %v9021_v62, %v9450_v10  ;;  %v7554_v41 = vpack.c.bf16 %v4274_v55, %v4274_v55 }
 0x302   : > { %v2304_v38 = vsel %vm8800_vm8, %v2290_v22, %v2303_v45  ;;  %v2124_v33 = vsel %vm2119_vm7, %v9292_v42, %v2123_v63  ;;  %v2443_v19 = vrot.slane %v2438_v35, 4  ;;  %v2596_v1 = vpop.permute.xlu1 %2595  ;;  %3659 = vmatprep.subr.bf16.mxu0 %v7164_v49  ;;  %v2466_v42 = vld [vmem:[#allocation3 + $0xf0] sm:$0xff] }
 0x303   : > { %2305 = vst [vmem:[#allocation3 + $0xf8] sm:$0xff] %v2304_v38  ;;  %v2144_v32 = vsel %vm8800_vm8, %v2124_v33, %v2143_v51  ;;  %v2601_v52 = vrot.slane %v2596_v1, 4  ;;  %3660 = vmatpush1.bf16.msra.mxu0 %v7163_v50  ;;  %3697 = vmatpush1.bf16.msra.mxu1 %v7181_v29  ;;  %v3893_v50 = vld [vmem:[#allocation2 + $0x8] sm:$0x7f]  ;;  %v3801_v22 = vld [vmem:[#allocation3 + $0xb0] sm:$0xff] }
 0x304   : > { %2145 = vst [vmem:[#allocation3 + $0x10] sm:$0xff] %v2144_v32  ;;  %v2451_v48 = vsel %vm572_vm0, %v2442_v2, %v2443_v19  ;;  %3698 = vmatprep.subr.bf16.mxu1 %v7174_v27  ;;  %v7156_v43 = vcombine.high %v2144_v32, %v2304_v38  ;;  %v7155_v14 = vcombine.low %v2144_v32, %v2304_v38  ;;  %v4194_v2 = vld [vmem:[#allocation2 + $0x50] sm:$0x7f]  ;;  %v3974_v32 = vld [vmem:[#allocation2 + $0x8] sm:$0x7f] }
 0x305   : > { %v2452_v13 = vsel %vm2445_vm10, %v2436_v56, %v2451_v48  ;;  %v2608_v23 = vsel %vm572_vm0, %v2600_v53, %v2601_v52  ;;  %v2112_v3 = vpop.permute.xlu0 %2111  ;;  %v7549_v54 = vpack.c.bf16 %v4194_v2, %v4194_v2  ;;  %4315 = vrot.lane.b32.xlu1 %v7554_v41, %s7740_s25  ;;  %v4094_v52 = vld [vmem:[#allocation3 + $0x128] sm:$0xff] }
 0x306   : > { %v2467_v37 = vsel %vm8800_vm8, %v2452_v13, %v2466_v42  ;;  %v2609_v24 = vsel %vm950_vm11, %v9436_v40, %v2608_v23  ;;  %v2117_v8 = vrot.slane %v2112_v3, 4  ;;  %v2278_v18 = vpop.permute.xlu1 %2277  ;;  %3661 = vmatprep.subr.bf16.mxu0 %v7156_v43  ;;  %v10722_v3 = vld [vmem:[#allocation13_spill] sm:$0xff] }
 0x307   : > { %2468 = vst [vmem:[#allocation3 + $0xf0] sm:$0xff] %v2467_v37  ;;  %v2624_v0 = vsel %vm8800_vm8, %v2609_v24, %v2623_v4  ;;  %v2283_v11 = vrot.slane %v2278_v18, 4  ;;  %3662 = vmatpush1.bf16.msra.mxu0 %v7155_v14  ;;  %3699 = vmatpush1.bf16.msra.mxu1 %v7173_v47 }
 0x308   : > { %2625 = vst [vmem:[#allocation3 + $0x20] sm:$0xff] %v2624_v0  ;;  %v2125_v62 = vsel %vm572_vm0, %v2116_v31, %v2117_v8  ;;  %v7166_v5 = vcombine.high %v2467_v37, %v2624_v0  ;;  %v7165_v59 = vcombine.low %v2467_v37, %v2624_v0  ;;  %4235 = vrot.lane.b32.xlu0 %v7549_v54, %s7748_s16  ;;  %v10723_v8 = vld [vmem:[#allocation5_spill] sm:$0xff] }
 0x309   : > { %v2126_v57 = vsel %vm2119_vm7, %v2110_v16, %v2125_v62  ;;  %v2291_v40 = vsel %vm572_vm0, %v2282_v46, %v2283_v11 }
 0x30a   : > { %v2147_v6 = vsel %vm8800_vm8, %v2126_v57, %v2146_v58  ;;  %v2292_v53 = vsel %vm2285_vm3, %v9466_v20, %v2291_v40  ;;  %7196 = vmatmul.mubr.msk.bf16.vlgmr.msra.gmra.mxu0 %vm1759_vm2, %v9356_v36  ;;  %3700 = vmatprep.subr.bf16.mxu1 %v7166_v5  ;;  %v9532_v31 = vpop.permute.xlu1 %5356 }
 0x30b   : > { %2148 = vst [vmem:[#allocation3 + $0x48] sm:$0xff] %v2147_v6  ;;  %v2307_v56 = vsel %vm8800_vm8, %v2292_v53, %v2306_v60  ;;  %3701 = vmatpush1.bf16.msra.mxu1 %v7165_v59  ;;  %4680 = vmatprep.mubr.bf16.mxu0 %v9374_v44  ;;  %v3813_v59 = vld [vmem:[#allocation2 + $0x8] sm:$0x7f] }
 0x30c   : > { %2308 = vst [vmem:[#allocation3 + $0x100] sm:$0xff] %v2307_v56  ;;  %v7158_v61 = vcombine.high %v2147_v6, %v2307_v56  ;;  %v7157_v10 = vcombine.low %v2147_v6, %v2307_v56  ;;  %4155 = vrot.lane.b32.xlu0 %v7544_v9, %s7739_s24 }
 0x30e   : > { %3702 = vmatprep.subr.bf16.mxu1 %v7158_v61  ;;  %v9558_v4 = vpop.permute.xlu1 %5358 }
 0x30f   : > { %3703 = vmatpush1.bf16.msra.mxu1 %v7157_v10 }
 0x312   : > { %7198 = vmatmul.mubr.msk.bf16.vlgmr.msra.gmra.mxu1 %vm1759_vm2, %v9356_v36  ;;  %v9528_v39 = vpop.permute.xlu0 %3355  ;;  %v9571_v60 = vpop.permute.xlu1 %5362 }
 0x313   : > { %4721 = vmatprep.mubr.bf16.mxu1 %v9374_v44 }
 0x316   : > { %v9569_v40 = vpop.permute.xlu0 %5360  ;;  %v9577_v9 = vpop.permute.xlu1 %5209 }
 0x31a   : > { %v9575_v25 = vpop.permute.xlu0 %5207 }
 0x3aa   : > { %v3599_v20 = vpop.f32.mrf.mxu0 }
 0x3ab   : > { %v3600_v36 = vadd.f32 %v3599_v20, %v9528_v39 }
 0x3ac   : > { %v3601_v21 = vpop.f32.mrf.mxu0 }
 0x3ad   : > { %vm3729_vm7 = vcmp.gt.f32.partialorder %v3600_v36, 0.0  ;;  %v3737_v44 = vmul.f32 0.3, %v3600_v36  ;;  %v3602_v28 = vadd.f32 %v3601_v21, %v9528_v39  ;;  %v3804_v21 = vld [vmem:[#allocation3 + $0xd0] sm:$0xff] }
 0x3ae   : > { %v3603_v17 = vpop.f32.mrf.mxu0 }
 0x3af   : > { %v3745_v30 = vsel %vm3729_vm7, %v3600_v36, %v3737_v44  ;;  %vm3730_vm12 = vcmp.gt.f32.partialorder %v3602_v28, 0.0  ;;  %v3738_v46 = vmul.f32 0.3, %v3602_v28 }
 0x3b0   : > { %3753 = vst [vmem:[#allocation2 + $0x10] sm:$0x7f] %v3745_v30  ;;  %v3604_v16 = vpop.f32.mrf.mxu0 }
 0x3b1   : > { %v3746_v34 = vsel %vm3730_vm12, %v3602_v28, %v3738_v46  ;;  %vm3950_vm12 = vcmask 523264  }
 0x3b2   : > { %3754 = vst [vmem:[#allocation2 + $0x18] sm:$0x7f] %v3746_v34 }
 0x3b7   : > { %v3762_v26 = vld [vmem:[#allocation2 + $0x10] sm:$0x7f] }
 0x3b8   : > { %v4054_v49 = vld [vmem:[#allocation2 + $0x10] sm:$0x7f]  ;;  %v7517_v45 = vpack.c.bf16 %v3762_v26, %v3761_v15 }
 0x3b9   : > { %v9534_v63 = vld [vmem:[#allocation2 + $0x18] sm:$0x7f]  ;;  %v3814_v38 = vld [vmem:[#allocation2 + $0x10] sm:$0x7f] }
 0x3ba   : > { %v9536_v35 = vld [vmem:[#allocation2 + $0x18] sm:$0x7f]  ;;  %v9540_v51 = vld [vmem:[#allocation2 + $0x10] sm:$0x7f]  ;;  %v9548_v48 = vsel %vm8800_vm8, %v7517_v45, %v3801_v22  ;;  %v7521_v61 = vpack.c.bf16 %v3814_v38, %v3813_v59  ;;  %v9594_v22 = vpop.permute.xlu0 %5211 }
 0x3bb   : > { %v9538_v29 = vld [vmem:[#allocation2 + $0x18] sm:$0x7f]  ;;  %v4186_v33 = vld [vmem:[#allocation2 + $0x10] sm:$0x7f]  ;;  %3803 = vst [vmem:[#allocation3 + $0xb0] sm:$0xff] %v9548_v48 }
 0x3bc   : > { %v9542_v19 = vld [vmem:[#allocation2 + $0x18] sm:$0x7f]  ;;  %v9555_v23 = vld [vmem:[#allocation2 + $0x10] sm:$0x7f] }
 0x3bd   : > { %v4055_v1 = vld [vmem:[#allocation2 + $0x18] sm:$0x7f]  ;;  %v3894_v47 = vld [vmem:[#allocation2 + $0x10] sm:$0x7f] }
 0x3be   : > { %v9544_v27 = vld [vmem:[#allocation2 + $0x18] sm:$0x7f]  ;;  %v7536_v13 = vpack.c.bf16 %v4055_v1, %v4054_v49  ;;  %v3975_v37 = vld [vmem:[#allocation2 + $0x10] sm:$0x7f]  ;;  %v7526_v24 = vpack.c.bf16 %v3894_v47, %v3893_v50  ;;  %v3640_v0 = vpop.f32.mrf.mxu1 }
 0x3bf   : > { %v4187_v43 = vld [vmem:[#allocation2 + $0x18] sm:$0x7f]  ;;  %7289 = vst.sshfl [vmem:[#allocation2 + $0x10] sm:$0x3 pattern:$0x76325410] %v10723_v8  ;;  %v7531_v11 = vpack.c.bf16 %v3975_v37, %v3974_v32  ;;  %v3641_v62 = vadd.f32 %v3640_v0, %v9528_v39  ;;  %v9604_v32 = vpop.permute.xlu1 %5213 }
 0x3c0   : > { %v9550_v14 = vld [vmem:[#allocation2 + $0x18] sm:$0x7f]  ;;  %v9563_v18 = vsel %vm8800_vm8, %v7536_v13, %v4094_v52  ;;  %3934 = vrot.lane.b32.xlu0 %v7526_v24, %s7748_s16  ;;  %v3642_v5 = vpop.f32.mrf.mxu1  ;;  %v7545_v54 = vpack.c.bf16 %v4187_v43, %v4186_v33  ;;  %v10724_v33 = vld [vmem:[#allocation6_spill] sm:$0xff]  ;;  %v10725_v59 = vld [vmem:[#allocation15_spill] sm:$0xff] }
 0x3c1   : > { %v9552_v42 = vld [vmem:[#allocation2 + $0x18] sm:$0x7f]  ;;  %4096 = vst [vmem:[#allocation3 + $0x128] sm:$0xff] %v9563_v18  ;;  %vm3731_vm3 = vcmp.gt.f32.partialorder %v3641_v62, 0.0  ;;  %v3739_v58 = vmul.f32 0.3, %v3641_v62  ;;  %v3643_v57 = vadd.f32 %v3642_v5, %v9528_v39  ;;  %v7550_v49 = vpack.c.bf16 %v9550_v14, %v9555_v23 }
 0x3c2   : > { %4813 = vst [vmem:[#allocation2 + $0x18] sm:$0x3] %v10722_v3  ;;  %v3644_v6 = vpop.f32.mrf.mxu1  ;;  %v4386_v38 = vld [vmem:[#allocation3 + $0x58] sm:$0xff] }
 0x3c3   : > { %v3747_v53 = vsel %vm3731_vm3, %v3641_v62, %v3739_v58  ;;  %vm3732_vm5 = vcmp.gt.f32.partialorder %v3643_v57, 0.0  ;;  %v3740_v56 = vmul.f32 0.3, %v3643_v57  ;;  %vm5587_vm3 = vcmask 326656  }
 0x3c4   : > { %4015 = vrot.lane.b32.xlu0 %v7531_v11, %s7740_s25  ;;  %3755 = vst [vmem:[#allocation2 + $0x20] sm:$0x7f] %v3747_v53  ;;  %v3645_v10 = vpop.f32.mrf.mxu1 }
 0x3c5   : > { %v3748_v2 = vsel %vm3732_vm5, %v3643_v57, %v3740_v56  ;;  %v9628_v10 = vpop.permute.xlu0 %4865 }
 0x3c6   : > { %3756 = vst [vmem:[#allocation2 + $0x28] sm:$0x7f] %v3748_v2 }
 0x3c8   : > { %3854 = vrot.lane.b32.xlu0 %v7521_v61, %s7739_s24 }
 0x3ca   : > { %v3681_v55 = vpop.f32.mrf.mxu0 }
 0x3cb   : > { %v3764_v41 = vld [vmem:[#allocation2 + $0x20] sm:$0x7f]  ;;  %v3682_v50 = vadd.f32 %v3681_v55, %v9528_v39  ;;  %v9634_v55 = vpop.permute.xlu1 %4867 }
 0x3cc   : > { %v9579_v20 = vld [vmem:[#allocation2 + $0x20] sm:$0x7f]  ;;  %4227 = vrot.lane.b32.xlu0 %v7545_v54, %s7748_s16  ;;  %v3683_v30 = vpop.f32.mrf.mxu0  ;;  %v7518_v16 = vpack.c.bf16 %v3764_v41, %v9534_v63 }
 0x3cd   : > { %v3896_v36 = vld [vmem:[#allocation2 + $0x20] sm:$0x7f]  ;;  %v3684_v45 = vadd.f32 %v3683_v30, %v9528_v39  ;;  %v9599_v63 = vld [vmem:[#allocation2 + $0x28] sm:$0x7f]  ;;  %vm3733_vm9 = vcmp.gt.f32.partialorder %v3682_v50, 0.0  ;;  %v7522_v41 = vpack.c.bf16 %v9579_v20, %v9536_v35 }
 0x3ce   : > { %v3977_v44 = vld [vmem:[#allocation2 + $0x20] sm:$0x7f]  ;;  %v7527_v46 = vpack.c.bf16 %v3896_v36, %v9538_v29  ;;  %v9597_v29 = vld [vmem:[#allocation2 + $0x28] sm:$0x7f]  ;;  %v3685_v52 = vpop.f32.mrf.mxu0  ;;  %v9609_v14 = vsel %vm8800_vm8, %v7518_v16, %v3804_v21  ;;  %v3741_v58 = vmul.f32 0.3, %v3682_v50 }
 0x3cf   : > { %v4056_v28 = vld [vmem:[#allocation2 + $0x20] sm:$0x7f]  ;;  %v9601_v1 = vld [vmem:[#allocation2 + $0x28] sm:$0x7f]  ;;  %3806 = vst [vmem:[#allocation3 + $0xd0] sm:$0xff] %v9609_v14  ;;  %v7532_v0 = vpack.c.bf16 %v3977_v44, %v9542_v19  ;;  %vm3734_vm14 = vcmp.gt.f32.partialorder %v3684_v45, 0.0 }
 0x3d0   : > { %v9582_v17 = vld [vmem:[#allocation2 + $0x20] sm:$0x7f]  ;;  %3936 = vrot.lane.b32.xlu1 %v7527_v46, %s7748_s16  ;;  %v9611_v13 = vld [vmem:[#allocation2 + $0x28] sm:$0x7f]  ;;  %4307 = vrot.lane.b32.xlu0 %v7550_v49, %s7740_s25  ;;  %v3686_v11 = vpop.f32.mrf.mxu0  ;;  %v3742_v57 = vmul.f32 0.3, %v3684_v45  ;;  %v9646_v49 = vpop.permute.xlu1 %4871 }
 0x3d1   : > { %v9586_v34 = vld [vmem:[#allocation2 + $0x20] sm:$0x7f]  ;;  %v4057_v23 = vld [vmem:[#allocation2 + $0x28] sm:$0x7f]  ;;  %v3807_v52 = vld [vmem:[#allocation3 + $0x10] sm:$0xff] }
 0x3d2   : > { %v9588_v15 = vld [vmem:[#allocation2 + $0x20] sm:$0x7f]  ;;  %v9613_v47 = vld [vmem:[#allocation2 + $0x28] sm:$0x7f]  ;;  %v7537_v5 = vpack.c.bf16 %v4057_v23, %v4056_v28  ;;  %v3722_v6 = vpop.f32.mrf.mxu1  ;;  %v3750_v19 = vsel %vm3734_vm14, %v3684_v45, %v3742_v57  ;;  %v4389_v23 = vld [vmem:[#allocation3 + $0x78] sm:$0xff] }
 0x3d3   : > { %v4347_v26 = vld [vmem:[#allocation2 + $0x20] sm:$0x7f]  ;;  %v4189_v37 = vld [vmem:[#allocation2 + $0x28] sm:$0x7f]  ;;  %v3723_v61 = vadd.f32 %v3722_v6, %v9528_v39  ;;  %3758 = vst [vmem:[#allocation2 + $0x38] sm:$0x7f] %v3750_v19  ;;  %v7541_v57 = vpack.c.bf16 %v9613_v47, %v9582_v17 }
 0x3d4   : > { %7290 = vst.sshfl [vmem:[#allocation2 + $0x20] sm:$0x3 pattern:$0x76325410] %v10724_v33  ;;  %v7555_v43 = vpack.c.bf16 %v4347_v26, %v9552_v42  ;;  %v4269_v24 = vld [vmem:[#allocation2 + $0x28] sm:$0x7f]  ;;  %v7540_v42 = vpack.c.bf16 %v9544_v27, %v9540_v51  ;;  %4017 = vrot.lane.b32.xlu1 %v7532_v0, %s7740_s25  ;;  %v3749_v27 = vsel %vm3733_vm9, %v3682_v50, %v3741_v58  ;;  %v3724_v54 = vpop.f32.mrf.mxu1  ;;  %v9644_v26 = vpop.permute.xlu0 %4869 }
 0x3d5   : > { %v9617_v8 = vld [vmem:[#allocation2 + $0x28] sm:$0x7f]  ;;  %v4097_v51 = vld [vmem:[#allocation3 + $0x110] sm:$0xff]  ;;  %3757 = vst [vmem:[#allocation2 + $0x30] sm:$0x7f] %v3749_v27  ;;  %vm3735_vm4 = vcmp.gt.f32.partialorder %v3723_v61, 0.0  ;;  %v3725_v21 = vadd.f32 %v3724_v54, %v9528_v39  ;;  %v7546_v16 = vpack.c.bf16 %v4189_v37, %v9586_v34  ;;  %v7551_v45 = vpack.c.bf16 %v4269_v24, %v9588_v15  ;;  %v9659_v58 = vpop.permute.xlu1 %5016 }
 0x3d6   : > { %v4387_v62 = vsel %vm8800_vm8, %v7555_v43, %v4386_v38  ;;  %4815 = vst [vmem:[#allocation2 + $0x28] sm:$0x3] %v10725_v59  ;;  %4147 = vrot.lane.b32.xlu0 %v7540_v42, %s7739_s24  ;;  %v9632_v2 = vsel %vm8800_vm8, %v7537_v5, %v4097_v51  ;;  %v3743_v44 = vmul.f32 0.3, %v3723_v61  ;;  %v3726_v28 = vpop.f32.mrf.mxu1  ;;  %v4100_v15 = vld [vmem:[#allocation3 + $0x8] sm:$0xff] }
 0x3d7   : > { %4388 = vst [vmem:[#allocation3 + $0x58] sm:$0xff] %v4387_v62  ;;  %v7274_v53 = vcombine.high %v4387_v62, %v4387_v62  ;;  %v7273_v56 = vcombine.low %v4387_v62, %v4387_v62  ;;  %4099 = vst [vmem:[#allocation3 + $0x110] sm:$0xff] %v9632_v2  ;;  %vm3736_vm7 = vcmp.gt.f32.partialorder %v3725_v21, 0.0  ;;  %v3744_v30 = vmul.f32 0.3, %v3725_v21 }
 0x3d8   : > { %3856 = vrot.lane.b32.xlu1 %v7522_v41, %s7739_s24  ;;  %v3751_v46 = vsel %vm3735_vm4, %v3723_v61, %v3743_v44  ;;  %v3727_v35 = vpop.f32.mrf.mxu1  ;;  %v9657_v5 = vpop.permute.xlu0 %5014 }
 0x3d9   : > { %7281 = vmatprep.subr.msk.bf16.mxu0 %vm572_vm0, %v7274_v53  ;;  %v4625_v36 = vsel %vm572_vm0, %v7273_v56, 0  ;;  %3759 = vst [vmem:[#allocation2 + $0x40] sm:$0x7f] %v3751_v46  ;;  %v3752_v20 = vsel %vm3736_vm7, %v3725_v21, %v3744_v30  ;;  %v3810_v53 = vld [vmem:[#allocation3 + $0x48] sm:$0xff]  ;;  %v4392_v30 = vld [vmem:[#allocation3 + $0x30] sm:$0xff] }
 0x3da   : > { %4655 = vmatpush1.bf16.msra.mxu0 %v4625_v36  ;;  %3760 = vst [vmem:[#allocation2 + $0x48] sm:$0x7f] %v3752_v20  ;;  %v4059_v43 = vld [vmem:[#allocation2 + $0x38] sm:$0x7f]  ;;  %v4353_v46 = vld [vmem:[#allocation2 + $0x50] sm:$0x7f] }
 0x3db   : > { %v4191_v0 = vld [vmem:[#allocation2 + $0x38] sm:$0x7f] }
 0x3dc   : > { %4229 = vrot.lane.b32.xlu1 %v7546_v16, %s7748_s16  ;;  %v3766_v39 = vld [vmem:[#allocation2 + $0x30] sm:$0x7f]  ;;  %v9663_v51 = vld [vmem:[#allocation2 + $0x38] sm:$0x7f] }
 0x3dd   : > { %v4349_v50 = vld [vmem:[#allocation2 + $0x30] sm:$0x7f]  ;;  %v7519_v38 = vpack.c.bf16 %v3766_v39, %v9597_v29  ;;  %v3767_v29 = vld [vmem:[#allocation2 + $0x38] sm:$0x7f] }
 0x3de   : > { %v7556_v33 = vpack.c.bf16 %v4349_v50, %v9617_v8  ;;  %v4058_v34 = vld [vmem:[#allocation2 + $0x30] sm:$0x7f]  ;;  %v9665_v27 = vld [vmem:[#allocation2 + $0x38] sm:$0x7f] }
 0x3df   : > { %v3808_v37 = vsel %vm8800_vm8, %v7519_v38, %v3807_v52  ;;  %v4190_v42 = vld [vmem:[#allocation2 + $0x30] sm:$0x7f]  ;;  %v7538_v62 = vpack.c.bf16 %v4059_v43, %v4058_v34  ;;  %v9667_v19 = vld [vmem:[#allocation2 + $0x38] sm:$0x7f] }
 0x3e0   : > { %4309 = vrot.lane.b32.xlu1 %v7551_v45, %s7740_s25  ;;  %v4390_v11 = vsel %vm8800_vm8, %v7556_v33, %v4389_v23  ;;  %3809 = vst [vmem:[#allocation3 + $0x10] sm:$0xff] %v3808_v37  ;;  %v3768_v24 = vld [vmem:[#allocation2 + $0x40] sm:$0x7f]  ;;  %v7547_v8 = vpack.c.bf16 %v4191_v0, %v4190_v42  ;;  %v4270_v56 = vld [vmem:[#allocation2 + $0x30] sm:$0x7f] }
 0x3e1   : > { %4391 = vst [vmem:[#allocation3 + $0x78] sm:$0xff] %v4390_v11  ;;  %v7276_v6 = vcombine.high %v4390_v11, %v4390_v11  ;;  %v4271_v61 = vld [vmem:[#allocation2 + $0x38] sm:$0x7f]  ;;  %v9671_v54 = vsel %vm8800_vm8, %v7538_v62, %v4100_v15  ;;  %v7520_v41 = vpack.c.bf16 %v3768_v24, %v3767_v29  ;;  %v3818_v36 = vld [vmem:[#allocation2 + $0x30] sm:$0x7f]  ;;  %v7275_v28 = vcombine.low %v4390_v11, %v4390_v11 }
 0x3e2   : > { %v3898_v21 = vld [vmem:[#allocation2 + $0x30] sm:$0x7f]  ;;  %v4350_v44 = vld [vmem:[#allocation2 + $0x38] sm:$0x7f]  ;;  %v4060_v17 = vld [vmem:[#allocation2 + $0x40] sm:$0x7f]  ;;  %4231 = vrot.lane.b32.xlu0 %v7547_v8, %s7748_s16  ;;  %v7552_v0 = vpack.c.bf16 %v4271_v61, %v4270_v56 }
 0x3e3   : > { %v4351_v47 = vld [vmem:[#allocation2 + $0x40] sm:$0x7f]  ;;  %4102 = vst [vmem:[#allocation3 + $0x8] sm:$0xff] %v9671_v54  ;;  %v9676_v16 = vld [vmem:[#allocation2 + $0x48] sm:$0x7f]  ;;  %7283 = vmatprep.subr.msk.bf16.mxu1 %vm572_vm0, %v7276_v6  ;;  %v3811_v45 = vsel %vm8800_vm8, %v7520_v41, %v3810_v53  ;;  %v9699_v53 = vpop.permute.xlu0 %5018  ;;  %v9701_v41 = vpop.permute.xlu1 %5020  ;;  %v4631_v56 = vsel %vm572_vm0, %v7275_v28, 0 }
 0x3e4   : > { %4149 = vrot.lane.b32.xlu1 %v7541_v57, %s7739_s24  ;;  %v9678_v35 = vld [vmem:[#allocation2 + $0x48] sm:$0x7f]  ;;  %v7557_v50 = vpack.c.bf16 %v4351_v47, %v4350_v44  ;;  %v3820_v38 = vld [vmem:[#allocation2 + $0x40] sm:$0x7f]  ;;  %3812 = vst [vmem:[#allocation3 + $0x48] sm:$0xff] %v3811_v45  ;;  %v10728_v47 = vld [vmem:[#allocation7_spill] sm:$0xff]  ;;  %4696 = vmatpush1.bf16.msra.mxu1 %v4631_v56  ;;  %v7528_v45 = vpack.c.bf16 %v3898_v21, %v9601_v1 }
 0x3e5   : > { %v9680_v20 = vld [vmem:[#allocation2 + $0x48] sm:$0x7f]  ;;  %v3900_v33 = vld [vmem:[#allocation2 + $0x40] sm:$0x7f]  ;;  %v4110_v15 = vld [vmem:[#allocation2 + $0x30] sm:$0x7f]  ;;  %v7523_v1 = vpack.c.bf16 %v3818_v36, %v9599_v63  ;;  %v5373_v63 = vsel %vm2445_vm10, %v9558_v4, %v9569_v40 }
 0x3e6   : > { %v4061_v39 = vld [vmem:[#allocation2 + $0x48] sm:$0x7f]  ;;  %v9685_v52 = vld [vmem:[#allocation2 + $0x40] sm:$0x7f]  ;;  %v4111_v29 = vld [vmem:[#allocation2 + $0x38] sm:$0x7f]  ;;  %v9695_v24 = vsel %vm8800_vm8, %v7557_v50, %v4392_v30 }
 0x3e7   : > { %v9687_v34 = vld [vmem:[#allocation2 + $0x40] sm:$0x7f]  ;;  %v9689_v23 = vld [vmem:[#allocation2 + $0x48] sm:$0x7f]  ;;  %v7539_v11 = vpack.c.bf16 %v4061_v39, %v4060_v17  ;;  %v7542_v57 = vpack.c.bf16 %v4111_v29, %v4110_v15  ;;  %v3979_v44 = vld [vmem:[#allocation2 + $0x30] sm:$0x7f] }
 0x3e8   : > { %v4272_v43 = vld [vmem:[#allocation2 + $0x40] sm:$0x7f]  ;;  %v9691_v37 = vld [vmem:[#allocation2 + $0x48] sm:$0x7f]  ;;  %4311 = vrot.lane.b32.xlu1 %v7552_v0, %s7740_s25  ;;  %4394 = vst [vmem:[#allocation3 + $0x30] sm:$0xff] %v9695_v24  ;;  %v4103_v17 = vld [vmem:[#allocation3 + $0x98] sm:$0xff]  ;;  %v7533_v0 = vpack.c.bf16 %v3979_v44, %v9611_v13  ;;  %v7543_v56 = vpack.c.bf16 %v9689_v23, %v9685_v52 }
 0x3e9   : > { %v4273_v42 = vld [vmem:[#allocation2 + $0x48] sm:$0x7f]  ;;  %v10726_v8 = vld [vmem:[#allocation17_spill] sm:$0xff]  ;;  %v10729_v30 = vld [vmem:[#allocation12_spill] sm:$0xff]  ;;  %v9710_v50 = vsel %vm8800_vm8, %v7539_v11, %v4103_v17  ;;  %4151 = vrot.lane.b32.xlu0 %v7542_v57, %s7739_s24  ;;  %v9726_v11 = vpop.permute.xlu1 %5366  ;;  %v7548_v52 = vpack.c.bf16 %v9691_v37, %v9687_v34 }
 0x3ea   : > { %v4352_v62 = vld [vmem:[#allocation2 + $0x48] sm:$0x7f]  ;;  %v3981_v61 = vld [vmem:[#allocation2 + $0x40] sm:$0x7f]  ;;  %4105 = vst [vmem:[#allocation3 + $0x98] sm:$0xff] %v9710_v50  ;;  %v7553_v15 = vpack.c.bf16 %v4273_v42, %v4272_v43  ;;  %v5372_v43 = vsel %vm2445_vm10, %v9532_v31, %v9558_v4 }
 0x3eb   : > { %4819 = vst [vmem:[#allocation2 + $0x48] sm:$0x3] %v10726_v8  ;;  %v10727_v6 = vld [vmem:[#allocation14_spill] sm:$0xff]  ;;  %v7558_v39 = vpack.c.bf16 %v4353_v46, %v4352_v62  ;;  %v9724_v46 = vpop.permute.xlu0 %5364  ;;  %v7534_v21 = vpack.c.bf16 %v3981_v61, %v9667_v19  ;;  %v5313_v29 = vld [vmem:[#allocation2 + $0x20] sm:$0x3]  ;;  %v5374_v19 = vsel %vm2445_vm10, %v9569_v40, %v9571_v60  ;;  %v5224_v40 = vsel %vm950_vm11, %v9577_v9, %v9594_v22 }
 0x3ec   : > { %4817 = vst [vmem:[#allocation2 + $0x38] sm:$0x3] %v10727_v6  ;;  %7291 = vst.sshfl [vmem:[#allocation2 + $0x30] sm:$0x3 pattern:$0x76325410] %v10728_v47  ;;  %3938 = vrot.lane.b32.xlu1 %v7528_v45, %s7748_s16  ;;  %v5390_v42 = vmul.f32 %v5373_v63, %v5313_v29  ;;  %v5223_v45 = vsel %vm950_vm11, %v9575_v25, %v9577_v9  ;;  %v4882_v9 = vsel %vm2371_vm6, %v9634_v55, %v9644_v26 }
 0x3ed   : > { %7292 = vst.sshfl [vmem:[#allocation2 + $0x40] sm:$0x3 pattern:$0x76325410] %v10729_v30  ;;  %v9718_v28 = vsel %vm8800_vm8, %v7558_v39, %v9411_v7  ;;  %4019 = vrot.lane.b32.xlu0 %v7533_v0, %s7740_s25  ;;  %v7529_v7 = vpack.c.bf16 %v3900_v33, %v9665_v27  ;;  %v9735_v62 = vpop.permute.xlu1 %5370  ;;  %v5314_v36 = vld [vmem:[#allocation2 + $0x28] sm:$0x3]  ;;  %v7524_v27 = vpack.c.bf16 %v3820_v38, %v9663_v51 }
 0x3ee   : > { %4397 = vst [vmem:[#allocation3 + $0x40] sm:$0xff] %v9718_v28  ;;  %v5311_v33 = vld [vmem:[#allocation2 + $0x10] sm:$0x3]  ;;  %v5312_v57 = vld [vmem:[#allocation2 + $0x18] sm:$0x3]  ;;  %v5391_v44 = vmul.f32 %v5374_v19, %v5314_v36  ;;  %v5225_v51 = vsel %vm950_vm11, %v9594_v22, %v9604_v32  ;;  %v4883_v36 = vsel %vm2371_vm6, %v9644_v26, %v9646_v49 }
 0x3ef   : > { %v9733_v13 = vpop.permute.xlu0 %5368  ;;  %v5164_v61 = vld [vmem:[#allocation2 + $0x20] sm:$0x3]  ;;  %v5165_v17 = vld [vmem:[#allocation2 + $0x28] sm:$0x3]  ;;  %v5388_v38 = vmul.f32 %v9532_v31, %v5311_v33  ;;  %v5389_v4 = vmul.f32 %v5372_v43, %v5312_v57  ;;  %v5162_v23 = vld [vmem:[#allocation2 + $0x10] sm:$0x3] }
 0x3f0   : > { %3858 = vrot.lane.b32.xlu1 %v7523_v1, %s7739_s24  ;;  %v5163_v39 = vld [vmem:[#allocation2 + $0x18] sm:$0x3]  ;;  %v7579_v0 = vpack.c.bf16 %v5391_v44, %v5390_v42  ;;  %v5241_v22 = vmul.f32 %v5224_v40, %v5164_v61  ;;  %v5242_v1 = vmul.f32 %v5225_v51, %v5165_v17  ;;  %v4820_v31 = vld [vmem:[#allocation2 + $0x8] sm:$0x3]  ;;  %v5239_v34 = vmul.f32 %v9575_v25, %v5162_v23  ;;  %v4823_v63 = vld [vmem:[#allocation2 + $0x20] sm:$0x3] }
 0x3f1   : > { %4021 = vrot.lane.b32.xlu0 %v7534_v21, %s7740_s25  ;;  %v9761_v30 = vpop.permute.xlu1 %5217  ;;  %v4821_v21 = vld [vmem:[#allocation2 + $0x10] sm:$0x3]  ;;  %v5240_v37 = vmul.f32 %v5223_v45, %v5163_v39  ;;  %v4822_v29 = vld [vmem:[#allocation2 + $0x18] sm:$0x3]  ;;  %v4900_v44 = vmul.f32 %v4883_v36, %v4823_v63  ;;  %v7535_v45 = vpack.c.bf16 %v9680_v20, %v9680_v20 }
 0x3f2   : > { %v7574_v19 = vpack.c.bf16 %v5242_v1, %v5241_v22  ;;  %v4899_v42 = vmul.f32 %v4882_v9, %v4822_v29  ;;  %v4970_v26 = vld [vmem:[#allocation2 + $0x10] sm:$0x3]  ;;  %v4971_v51 = vld [vmem:[#allocation2 + $0x18] sm:$0x3]  ;;  %v5376_v22 = vsel %vm2445_vm10, %v9724_v46, %v9726_v11 }
 0x3f3   : > { %v9759_v47 = vpop.permute.xlu0 %5215  ;;  %v7573_v43 = vpack.c.bf16 %v5240_v37, %v5239_v34  ;;  %v5166_v34 = vld [vmem:[#allocation2 + $0x30] sm:$0x3]  ;;  %v5167_v29 = vld [vmem:[#allocation2 + $0x38] sm:$0x3] }
 0x3f4   : > { %3940 = vrot.lane.b32.xlu1 %v7529_v7, %s7748_s16  ;;  %v4881_v7 = vsel %vm2371_vm6, %v9628_v10, %v9634_v55  ;;  %v7560_v61 = vpack.c.bf16 %v4900_v44, %v4899_v42  ;;  %v5226_v37 = vsel %vm950_vm11, %v9604_v32, %v9759_v47  ;;  %v4827_v36 = vld [vmem:[#allocation2 + $0x40] sm:$0x3]  ;;  %v4824_v32 = vld [vmem:[#allocation2 + $0x28] sm:$0x3]  ;;  %v4825_v42 = vld [vmem:[#allocation2 + $0x30] sm:$0x3] }
 0x3f5   : > { %4313 = vrot.lane.b32.xlu0 %v7553_v15, %s7740_s25  ;;  %v7578_v15 = vpack.c.bf16 %v5389_v4, %v5388_v38  ;;  %v4898_v33 = vmul.f32 %v4881_v7, %v4821_v21  ;;  %v9784_v25 = vpop.permute.xlu1 %5221  ;;  %v5031_v38 = vsel %vm876_vm13, %v9659_v58, %v9699_v53  ;;  %v4972_v4 = vld [vmem:[#allocation2 + $0x20] sm:$0x3] }
 0x3f6   : > { %v5048_v1 = vmul.f32 %v5031_v38, %v4971_v51  ;;  %v5317_v51 = vld [vmem:[#allocation2 + $0x40] sm:$0x3]  ;;  %v5377_v38 = vsel %vm2445_vm10, %v9726_v11, %v9733_v13 }
 0x3f7   : > { %v9782_v57 = vpop.permute.xlu0 %5219 }
 0x3f8   : > { %3860 = vrot.lane.b32.xlu1 %v7524_v27, %s7739_s24  ;;  %v4897_v27 = vmul.f32 %v9628_v10, %v4820_v31  ;;  %v5030_v10 = vsel %vm876_vm13, %v9657_v5, %v9659_v58  ;;  %v5315_v31 = vld [vmem:[#allocation2 + $0x30] sm:$0x3] }
 0x3f9   : > { %4153 = vrot.lane.b32.xlu0 %v7543_v56, %s7739_s24  ;;  %v4969_v56 = vld [vmem:[#allocation2 + $0x8] sm:$0x3]  ;;  %v4876_v17 = vpop.permute.xlu1 %4875  ;;  %v5047_v39 = vmul.f32 %v5030_v10, %v4970_v26 }
 0x3fa   : > { %v7559_v55 = vpack.c.bf16 %v4898_v33, %v4897_v27  ;;  %v5046_v23 = vmul.f32 %v9657_v5, %v4969_v56  ;;  %v5375_v5 = vsel %vm2445_vm10, %v9571_v60, %v9724_v46  ;;  %v4826_v60 = vld [vmem:[#allocation2 + $0x38] sm:$0x3]  ;;  %v5243_v33 = vmul.f32 %v5226_v37, %v5166_v34 }
 0x3fb   : > { %v4874_v40 = vpop.permute.xlu0 %4873  ;;  %v5392_v63 = vmul.f32 %v5375_v5, %v5315_v31 }
 0x3fc   : > { %4233 = vrot.lane.b32.xlu1 %v7548_v52, %s7748_s16  ;;  %v5032_v52 = vsel %vm876_vm13, %v9699_v53, %v9701_v41  ;;  %v7530_v53 = vpack.c.bf16 %v9678_v35, %v9678_v35  ;;  %v7564_v20 = vpack.c.bf16 %v5047_v39, %v5046_v23  ;;  %v5227_v35 = vsel %vm950_vm11, %v9759_v47, %v9761_v30  ;;  %v4973_v23 = vld [vmem:[#allocation2 + $0x28] sm:$0x3] }
 0x3fd   : > { %5431 = vrot.lane.b32.xlu0 %v7579_v0, %s7744_s4  ;;  %v5316_v0 = vld [vmem:[#allocation2 + $0x38] sm:$0x3]  ;;  %v5049_v58 = vmul.f32 %v5032_v52, %v4972_v4  ;;  %v4884_v47 = vsel %vm2371_vm6, %v9646_v49, %v4874_v40  ;;  %v4885_v44 = vsel %vm2371_vm6, %v4874_v40, %v4876_v17  ;;  %v5318_v4 = vld [vmem:[#allocation2 + $0x48] sm:$0x3]  ;;  %v5378_v49 = vsel %vm2445_vm10, %v9733_v13, %v9735_v62 }
 0x3fe   : > { %v5393_v21 = vmul.f32 %v5376_v22, %v5316_v0  ;;  %v4902_v52 = vmul.f32 %v4885_v44, %v4825_v42  ;;  %v5394_v0 = vmul.f32 %v5377_v38, %v5317_v51  ;;  %v5395_v22 = vmul.f32 %v5378_v49, %v5318_v4  ;;  %v4977_v42 = vld [vmem:[#allocation2 + $0x48] sm:$0x3] }
 0x3ff   : > { %v4878_v7 = vpop.permute.xlu0 %4877  ;;  %v7565_v9 = vpack.c.bf16 %v5049_v58, %v5048_v1  ;;  %v5168_v1 = vld [vmem:[#allocation2 + $0x40] sm:$0x3]  ;;  %v5228_v13 = vsel %vm950_vm11, %v9761_v30, %v9782_v57  ;;  %v5169_v58 = vld [vmem:[#allocation2 + $0x48] sm:$0x3] }
 0x400   : > { %5429 = vrot.lane.b32.xlu1 %v7578_v15, %s7744_s4  ;;  %v9812_v15 = vpop.permute.xlu1 %4879  ;;  %v4886_v46 = vsel %vm2371_vm6, %v4876_v17, %v4878_v7  ;;  %v7580_v27 = vpack.c.bf16 %v5393_v21, %v5392_v63  ;;  %v4901_v17 = vmul.f32 %v4884_v47, %v4824_v32  ;;  %v7581_v34 = vpack.c.bf16 %v5395_v22, %v5394_v0  ;;  %v3962_v22 = vld [vmem:[#allocation3 + $0x80] sm:$0xff] }
 0x401   : > { %5282 = vrot.lane.b32.xlu0 %v7574_v19, %s7737_s22  ;;  %v4887_v19 = vsel %vm2371_vm6, %v4878_v7, %v9812_v15  ;;  %v5319_v7 = vld [vmem:[#allocation2 + $0x50] sm:$0x3]  ;;  %v5245_v37 = vmul.f32 %v5228_v13, %v5168_v1 }
 0x402   : > { %v4904_v56 = vmul.f32 %v4887_v19, %v4827_v36  ;;  %v7561_v31 = vpack.c.bf16 %v4902_v52, %v4901_v17  ;;  %v5118_v17 = vld [vmem:[#allocation2 + $0x10] sm:$0x3]  ;;  %v5119_v52 = vld [vmem:[#allocation2 + $0x18] sm:$0x3] }
 0x403   : > { %v5023_v26 = vpop.permute.xlu0 %5022 }
 0x404   : > { %5280 = vrot.lane.b32.xlu1 %v7573_v43, %s7737_s22  ;;  %v5244_v43 = vmul.f32 %v5227_v35, %v5167_v29  ;;  %v5025_v10 = vpop.permute.xlu1 %5024  ;;  %v5033_v39 = vsel %vm876_vm13, %v9701_v41, %v5023_v26  ;;  %v4975_v35 = vld [vmem:[#allocation2 + $0x38] sm:$0x3] }
 0x405   : > { %4938 = vrot.lane.b32.xlu0 %v7559_v55, %s7742_s29  ;;  %v4903_v55 = vmul.f32 %v4886_v46, %v4826_v60  ;;  %v5050_v41 = vmul.f32 %v5033_v39, %v4973_v23  ;;  %v4828_v46 = vld [vmem:[#allocation2 + $0x48] sm:$0x3] }
 0x406   : > { %v7575_v40 = vpack.c.bf16 %v5244_v43, %v5243_v33  ;;  %v5170_v33 = vld [vmem:[#allocation2 + $0x50] sm:$0x3]  ;;  %v4905_v32 = vmul.f32 %v9812_v15, %v4828_v46 }
 0x407   : > { %v7562_v11 = vpack.c.bf16 %v4904_v56, %v4903_v55  ;;  %v5247_v47 = vmul.f32 %v9784_v25, %v5170_v33 }
 0x408   : > { %4940 = vrot.lane.b32.xlu1 %v7560_v61, %s7742_s29  ;;  %v7525_v61 = vpack.c.bf16 %v9676_v16, %v9676_v16  ;;  %v4974_v16 = vld [vmem:[#allocation2 + $0x30] sm:$0x3]  ;;  %v5029_v21 = vpop.permute.xlu1 %5028  ;;  %v7563_v44 = vpack.c.bf16 %v4905_v32, %v4905_v32 }
 0x409   : > { %4023 = vrot.lane.b32.xlu0 %v7535_v45, %s7740_s25  ;;  %v5034_v45 = vsel %vm876_vm13, %v5023_v26, %v5025_v10  ;;  %v7577_v55 = vpack.c.bf16 %v5247_v47, %v5247_v47  ;;  %v5054_v56 = vmul.f32 %v5029_v21, %v4977_v42 }
 0x40a   : > { %v5051_v5 = vmul.f32 %v5034_v45, %v4974_v16  ;;  %v7569_v45 = vpack.c.bf16 %v5119_v52, %v5118_v17 }
 0x40b   : > { %v7568_v15 = vpack.c.bf16 %v5054_v56, %v5054_v56 }
 0x40c   : > { %3942 = vrot.lane.b32.xlu1 %v7530_v53, %s7748_s16  ;;  %v5229_v53 = vsel %vm950_vm11, %v9782_v57, %v9784_v25  ;;  %v5396_v57 = vmul.f32 %v9735_v62, %v5319_v7  ;;  %v7566_v60 = vpack.c.bf16 %v5051_v5, %v5050_v41  ;;  %v5481_v25 = vld [vmem:[%s10658_s2] sm:$0x7f]  ;;  %v9871_v4 = vpop.permute.xlu1 %4315  ;;  %v4042_v41 = vld [vmem:[#allocation3 + $0x18] sm:$0xff] }
 0x40d   : > { %5087 = vrot.lane.b32.xlu0 %v7564_v20, %s7735_s20  ;;  %v5027_v20 = vpop.permute.xlu0 %5026  ;;  %v5246_v29 = vmul.f32 %v5229_v53, %v5169_v58 }
 0x40e   : > { %v5035_v30 = vsel %vm876_vm13, %v5025_v10, %v5027_v20  ;;  %v5036_v63 = vsel %vm876_vm13, %v5027_v20, %v5029_v21  ;;  %v7582_v43 = vpack.c.bf16 %v5396_v57, %v5396_v57 }
 0x40f   : > { %v7576_v36 = vpack.c.bf16 %v5246_v29, %v5245_v37  ;;  %v5052_v19 = vmul.f32 %v5035_v30, %v4975_v35  ;;  %v3881_v35 = vld [vmem:[#allocation3 + $0x120] sm:$0xff] }
 0x410   : > { %5089 = vrot.lane.b32.xlu1 %v7565_v9, %s7735_s20  ;;  %v4976_v9 = vld [vmem:[#allocation2 + $0x40] sm:$0x3] }
 0x411   : > { %5433 = vrot.lane.b32.xlu0 %v7580_v27, %s7744_s4  ;;  %v5053_v27 = vmul.f32 %v5036_v63, %v4976_v9  ;;  %v9862_v26 = vpop.permute.xlu0 %4235 }
 0x413   : > { %v7567_v62 = vpack.c.bf16 %v5053_v27, %v5052_v19  ;;  %v4254_v19 = vld [vmem:[#allocation3 + $0xc0] sm:$0xff] }
 0x414   : > { %3862 = vrot.lane.b32.xlu1 %v7525_v61, %s7739_s24  ;;  %v7749_v61 = vmov 3  }
 0x415   : > { %5284 = vrot.lane.b32.xlu0 %v7575_v40, %s7737_s22  ;;  %v9866_v10 = vpop.permute.xlu0 %4155 }
 0x416   : > { %7648 = vset.pattern.permute.xlu0 %v7749_v61 }
 0x418   : > { %4944 = vrot.lane.b32.xlu1 %v7562_v11, %s7742_s29 }
 0x419   : > { %4942 = vrot.lane.b32.xlu0 %v7561_v31, %s7742_s29 }
 0x41c   : > { %5435 = vrot.lane.b32.xlu1 %v7581_v34, %s7744_s4 }
 0x41d   : > { %5091 = vrot.lane.b32.xlu0 %v7566_v60, %s7735_s20 }
 0x420   : > { %5286 = vrot.lane.b32.xlu1 %v7576_v36, %s7737_s22 }
 0x421   : > { %5437 = vrot.lane.b32.xlu0 %v7582_v43, %s7744_s4 }
 0x424   : > { %5093 = vrot.lane.b32.xlu1 %v7567_v62, %s7735_s20 }
 0x425   : > { %4946 = vrot.lane.b32.xlu0 %v7563_v44, %s7742_s29  ;;  %v4334_v44 = vld [vmem:[#allocation3 + $0x68] sm:$0xff] }
 0x428   : > { %5288 = vrot.lane.b32.xlu1 %v7577_v55, %s7737_s22 }
 0x429   : > { %5484 = vperm.xlu0 %7648, %v5481_v25  }
 0x42c   : > { %5095 = vrot.lane.b32.xlu1 %v7568_v15, %s7735_s20 }
 0x432   : > { %v3935_v51 = vpop.permute.xlu0 %3934 }
 0x433   : > { %v3944_v23 = vrot.slane %v3935_v51, 4 }
 0x436   : > { %v4016_v38 = vpop.permute.xlu0 %4015 }
 0x437   : > { %v4025_v13 = vrot.slane %v4016_v38, 4 }
 0x43a   : > { %v3855_v49 = vpop.permute.xlu0 %3854 }
 0x43b   : > { %v3864_v21 = vrot.slane %v3855_v49, 4 }
 0x43e   : > { %v4228_v0 = vpop.permute.xlu0 %4227 }
 0x43f   : > { %v4237_v63 = vrot.slane %v4228_v0, 4 }
 0x442   : > { %v9873_v40 = vpop.permute.xlu1 %3936  ;;  %v4308_v37 = vpop.permute.xlu0 %4307 }
 0x443   : > { %v3945_v39 = vrot.slane %v9873_v40, 4  ;;  %v4317_v43 = vrot.slane %v4308_v37, 4 }
 0x445   : > { %v3949_v16 = vsel %vm572_vm0, %v3944_v23, %v3945_v39  ;;  %v4257_v23 = vld [vmem:[#allocation3 + $0x118] sm:$0xff] }
 0x446   : > { %v3951_v11 = vsel %vm3950_vm12, %v3935_v51, %v3949_v16  ;;  %v9880_v1 = vpop.permute.xlu1 %4017 }
 0x447   : > { %v9884_v58 = vsel %vm8800_vm8, %v3951_v11, %v3962_v22  ;;  %v4026_v53 = vrot.slane %v9880_v1, 4 }
 0x448   : > { %3964 = vst [vmem:[#allocation3 + $0x80] sm:$0xff] %v9884_v58  ;;  %v4148_v36 = vpop.permute.xlu0 %4147 }
 0x449   : > { %v4030_v31 = vsel %vm572_vm0, %v4025_v13, %v4026_v53  ;;  %5158 = vst [vmem:[#allocation3 + $0x80] sm:$0x11] %v7569_v45  ;;  %v4157_v15 = vrot.slane %v4148_v36, 4  ;;  %v4174_v45 = vld [vmem:[#allocation3 + $0xa8] sm:$0xff] }
 0x44a   : > { %v4031_v5 = vsel %vm647_vm1, %v4016_v38, %v4030_v31  ;;  %v9892_v20 = vpop.permute.xlu1 %3856 }
 0x44b   : > { %v9896_v7 = vsel %vm8800_vm8, %v4031_v5, %v4042_v41  ;;  %v3865_v34 = vrot.slane %v9892_v20, 4 }
 0x44c   : > { %4044 = vst [vmem:[#allocation3 + $0x18] sm:$0xff] %v9896_v7 }
 0x44d   : > { %v3869_v29 = vsel %vm572_vm0, %v3864_v21, %v3865_v34 }
 0x44e   : > { %v3870_v30 = vsel %vm1369_vm15, %v3855_v49, %v3869_v29  ;;  %v4230_v9 = vpop.permute.xlu1 %4229 }
 0x44f   : > { %v9906_v57 = vsel %vm8800_vm8, %v3870_v30, %v3881_v35  ;;  %v4238_v60 = vrot.slane %v4230_v9, 4  ;;  %v5120_v35 = vld [vmem:[#allocation2 + $0x20] sm:$0x3]  ;;  %v5121_v30 = vld [vmem:[#allocation2 + $0x28] sm:$0x3] }
 0x450   : > { %3883 = vst [vmem:[#allocation3 + $0x120] sm:$0xff] %v9906_v57 }
 0x451   : > { %v4242_v46 = vsel %vm572_vm0, %v4237_v63, %v4238_v60 }
 0x452   : > { %v4243_v27 = vsel %vm3950_vm12, %v4228_v0, %v4242_v46  ;;  %v4310_v33 = vpop.permute.xlu1 %4309  ;;  %v7250_v46 = vcombine.high %v9884_v58, %v9896_v7 }
 0x453   : > { %v4255_v32 = vsel %vm8800_vm8, %v4243_v27, %v4254_v19  ;;  %v4318_v47 = vrot.slane %v4310_v33, 4  ;;  %v4177_v27 = vld [vmem:[#allocation3 + $0x90] sm:$0xff] }
 0x454   : > { %4256 = vst [vmem:[#allocation3 + $0xc0] sm:$0xff] %v4255_v32  ;;  %v9914_v42 = vpop.permute.xlu0 %4231 }
 0x455   : > { %v4322_v62 = vsel %vm572_vm0, %v4317_v43, %v4318_v47  ;;  %v4239_v25 = vrot.slane %v9914_v42, 4 }
 0x456   : > { %v4323_v55 = vsel %vm647_vm1, %v4308_v37, %v4322_v62  ;;  %v4150_v56 = vpop.permute.xlu1 %4149  ;;  %v7570_v62 = vpack.c.bf16 %v5121_v30, %v5120_v35  ;;  %v7277_v35 = vcombine.low %v9695_v24, %v9695_v24 }
 0x457   : > { %v4335_v61 = vsel %vm8800_vm8, %v4323_v55, %v4334_v44  ;;  %v4158_v51 = vrot.slane %v4150_v56, 4  ;;  %v4244_v17 = vsel %vm572_vm0, %v4238_v60, %v4239_v25 }
 0x458   : > { %4336 = vst [vmem:[#allocation3 + $0x68] sm:$0xff] %v4335_v61  ;;  %v7265_v38 = vcombine.low %v4255_v32, %v4335_v61  ;;  %v7266_v49 = vcombine.high %v4255_v32, %v4335_v61  ;;  %v4245_v16 = vsel %vm3950_vm12, %v4230_v9, %v4244_v17  ;;  %v4337_v9 = vld [vmem:[#allocation3 + $0x130] sm:$0xff]  ;;  %v7249_v61 = vcombine.low %v9884_v58, %v9896_v7 }
 0x459   : > { %v4162_v52 = vsel %vm572_vm0, %v4157_v15, %v4158_v51  ;;  %v4258_v11 = vsel %vm8800_vm8, %v4245_v16, %v4257_v23  ;;  %v7241_v16 = vcombine.low %v9548_v48, %v9906_v57 }
 0x45a   : > { %v4163_v0 = vsel %vm1369_vm15, %v4148_v36, %v4162_v52  ;;  %v9926_v22 = vpop.permute.xlu1 %4311  ;;  %4656 = vmatprep.subr.bf16.mxu0 %v7266_v49  ;;  %4259 = vst [vmem:[#allocation3 + $0x118] sm:$0xff] %v4258_v11  ;;  %v7242_v49 = vcombine.high %v9548_v48, %v9906_v57 }
 0x45b   : > { %v4175_v13 = vsel %vm8800_vm8, %v4163_v0, %v4174_v45  ;;  %v4319_v31 = vrot.slane %v9926_v22, 4  ;;  %4657 = vmatpush1.bf16.msra.mxu0 %v7265_v38  ;;  %v9933_v41 = vpop.permute.xlu0 %4151 }
 0x45c   : > { %4176 = vst [vmem:[#allocation3 + $0xa8] sm:$0xff] %v4175_v13  ;;  %v7257_v5 = vcombine.low %v9563_v18, %v4175_v13  ;;  %v7258_v21 = vcombine.high %v9563_v18, %v4175_v13  ;;  %v4159_v37 = vrot.slane %v9933_v41, 4  ;;  %v5123_v13 = vld [vmem:[#allocation2 + $0x38] sm:$0x3] }
 0x45d   : > { %v4324_v29 = vsel %vm572_vm0, %v4318_v47, %v4319_v31 }
 0x45e   : > { %v4325_v63 = vsel %vm647_vm1, %v4310_v33, %v4324_v29  ;;  %v9942_v60 = vpop.permute.xlu1 %3938  ;;  %4658 = vmatprep.subr.bf16.mxu0 %v7258_v21  ;;  %v4164_v18 = vsel %vm572_vm0, %v4158_v51, %v4159_v37  ;;  %v7278_v29 = vcombine.high %v9695_v24, %v9695_v24 }
 0x45f   : > { %v4338_v36 = vsel %vm8800_vm8, %v4325_v63, %v4337_v9  ;;  %v3946_v19 = vrot.slane %v9942_v60, 4  ;;  %4659 = vmatpush1.bf16.msra.mxu0 %v7257_v5  ;;  %v4165_v43 = vsel %vm1369_vm15, %v4150_v56, %v4164_v18  ;;  %v4020_v33 = vpop.permute.xlu0 %4019  ;;  %v3965_v56 = vld [vmem:[#allocation3 + $0x108] sm:$0xff]  ;;  %v3884_v5 = vld [vmem:[#allocation3 + $0x38] sm:$0xff]  ;;  %v4321_v9 = vrot.slane %v9871_v4, 4  ;;  %v4048_v63 = vld [vmem:[#allocation3 + $0x70] sm:$0xff] }
 0x460   : > { %4339 = vst [vmem:[#allocation3 + $0x130] sm:$0xff] %v4338_v36  ;;  %4660 = vmatprep.subr.bf16.mxu0 %v7250_v46  ;;  %v7267_v32 = vcombine.low %v4258_v11, %v4338_v36  ;;  %v7268_v47 = vcombine.high %v4258_v11, %v4338_v36  ;;  %v4178_v44 = vsel %vm8800_vm8, %v4165_v43, %v4177_v27  ;;  %v4027_v55 = vrot.slane %v4020_v33, 4  ;;  %v5122_v11 = vld [vmem:[#allocation2 + $0x30] sm:$0x3] }
 0x461   : > { %v3952_v15 = vsel %vm572_vm0, %v3945_v39, %v3946_v19  ;;  %4179 = vst [vmem:[#allocation3 + $0x90] sm:$0xff] %v4178_v44  ;;  %v7260_v17 = vcombine.high %v9632_v2, %v4178_v44  ;;  %v7571_v18 = vpack.c.bf16 %v5123_v13, %v5122_v11 }
 0x462   : > { %v3953_v51 = vsel %vm3950_vm12, %v9873_v40, %v3952_v15  ;;  %v9964_v38 = vpop.permute.xlu1 %3858  ;;  %4697 = vmatprep.subr.bf16.mxu1 %v7268_v47  ;;  %v4032_v39 = vsel %vm572_vm0, %v4026_v53, %v4027_v55  ;;  %v4045_v40 = vld [vmem:[#allocation3 + $0xc8] sm:$0xff] }
 0x463   : > { %v3966_v58 = vsel %vm8800_vm8, %v3953_v51, %v3965_v56  ;;  %v3866_v7 = vrot.slane %v9964_v38, 4  ;;  %4661 = vmatpush1.bf16.msra.mxu0 %v7249_v61  ;;  %4698 = vmatpush1.bf16.msra.mxu1 %v7267_v32  ;;  %v4033_v52 = vsel %vm647_vm1, %v9880_v1, %v4032_v39  ;;  %v9977_v23 = vpop.permute.xlu0 %4021  ;;  %v7259_v1 = vcombine.low %v9632_v2, %v4178_v44  ;;  %v4340_v56 = vld [vmem:[#allocation3 + $0x50] sm:$0xff]  ;;  %v4343_v51 = vld [vmem:[#allocation3 + $0xe8] sm:$0xff] }
 0x464   : > { %3967 = vst [vmem:[#allocation3 + $0x108] sm:$0xff] %v3966_v58  ;;  %4662 = vmatprep.subr.bf16.mxu0 %v7242_v49  ;;  %4699 = vmatprep.subr.bf16.mxu1 %v7260_v17  ;;  %v4046_v53 = vsel %vm8800_vm8, %v4033_v52, %v4045_v40  ;;  %v4028_v45 = vrot.slane %v9977_v23, 4  ;;  %v4161_v61 = vrot.slane %v9866_v10, 4  ;;  %v10056_v52 = vld [vmem:[#allocation3 + $0x28] sm:$0xff] }
 0x465   : > { %v3871_v0 = vsel %vm572_vm0, %v3865_v34, %v3866_v7  ;;  %5159 = vst [vmem:[#allocation3 + $0x108] sm:$0x11] %v7570_v62  ;;  %4047 = vst [vmem:[#allocation3 + $0xc8] sm:$0xff] %v4046_v53  ;;  %v7252_v21 = vcombine.high %v3966_v58, %v4046_v53  ;;  %v7251_v43 = vcombine.low %v3966_v58, %v4046_v53  ;;  %v4637_v62 = vsel %vm572_vm0, %v7277_v35, 0 }
 0x466   : > { %v3872_v48 = vsel %vm1369_vm15, %v9892_v20, %v3871_v0  ;;  %v9992_v57 = vpop.permute.xlu1 %3940  ;;  %v4034_v2 = vsel %vm572_vm0, %v4027_v55, %v4028_v45  ;;  %v10007_v20 = vld [vmem:[%s10657_s1 + $0x8] sm:$0xf]  ;;  %v7280_v0 = vcombine.high %v9718_v28, %v9718_v28 }
 0x467   : > { %v3885_v34 = vsel %vm8800_vm8, %v3872_v48, %v3884_v5  ;;  %v3947_v30 = vrot.slane %v9992_v57, 4  ;;  %4663 = vmatpush1.bf16.msra.mxu0 %v7241_v16  ;;  %4700 = vmatpush1.bf16.msra.mxu1 %v7259_v1  ;;  %v4035_v24 = vsel %vm647_vm1, %v4020_v33, %v4034_v2  ;;  %v4314_v46 = vpop.permute.xlu0 %4313  ;;  %v3968_v33 = vld [vmem:[#allocation3 + $0x138] sm:$0xff]  ;;  %v7279_v1 = vcombine.low %v9718_v28, %v9718_v28  ;;  %v4180_v48 = vld [vmem:[#allocation3 + $0xe0] sm:$0xff] }
 0x468   : > { %3886 = vst [vmem:[#allocation3 + $0x38] sm:$0xff] %v3885_v34  ;;  %4701 = vmatprep.subr.bf16.mxu1 %v7252_v21  ;;  %7285 = vmatprep.subr.msk.bf16.mxu0 %vm572_vm0, %v7278_v29  ;;  %v10014_v36 = vsel %vm8800_vm8, %v4035_v24, %v4048_v63  ;;  %v4320_v27 = vrot.slane %v4314_v46, 4  ;;  %v7244_v44 = vcombine.high %v9609_v14, %v3885_v34  ;;  %v4183_v21 = vld [vmem:[#allocation3 + $0x88] sm:$0xff] }
 0x469   : > { %v3954_v4 = vsel %vm572_vm0, %v3946_v19, %v3947_v30  ;;  %4050 = vst [vmem:[#allocation3 + $0x70] sm:$0xff] %v10014_v36  ;;  %v7243_v39 = vcombine.low %v9609_v14, %v3885_v34  ;;  %v3887_v14 = vld [vmem:[#allocation3 + $0xf8] sm:$0xff]  ;;  %v4643_v24 = vsel %vm572_vm0, %v7279_v1, 0 }
 0x46a   : > { %v3955_v32 = vsel %vm3950_vm12, %v9942_v60, %v3954_v4  ;;  %v10024_v47 = vpop.permute.xlu1 %3860  ;;  %7282 = vmatmul.mubr.msk.bf16.vlgmr.msra.gmra.mxu0 %vm1759_vm2, %v10007_v20  ;;  %v4326_v19 = vsel %vm572_vm0, %v4319_v31, %v4320_v27  ;;  %v4328_v55 = vsel %vm572_vm0, %v4320_v27, %v4321_v9 }
 0x46b   : > { %v10036_v15 = vsel %vm8800_vm8, %v3955_v32, %v3968_v33  ;;  %v3867_v60 = vrot.slane %v10024_v47, 4  ;;  %4702 = vmatpush1.bf16.msra.mxu1 %v7251_v43  ;;  %4737 = vmatpush1.bf16.msra.mxu0 %v4637_v62  ;;  %v4327_v49 = vsel %vm647_vm1, %v9926_v22, %v4326_v19  ;;  %v4329_v17 = vsel %vm647_vm1, %v4314_v46, %v4328_v55  ;;  %v4154_v31 = vpop.permute.xlu0 %4153 }
 0x46c   : > { %3970 = vst [vmem:[#allocation3 + $0x138] sm:$0xff] %v10036_v15  ;;  %4703 = vmatprep.subr.bf16.mxu1 %v7244_v44  ;;  %v4341_v58 = vsel %vm8800_vm8, %v4327_v49, %v4340_v56  ;;  %v10049_v40 = vsel %vm8800_vm8, %v4329_v17, %v4343_v51  ;;  %v4160_v10 = vrot.slane %v4154_v31, 4  ;;  %4762 = vmatprep.mubr.bf16.mxu0 %v10056_v52 }
 0x46d   : > { %v3873_v22 = vsel %vm572_vm0, %v3866_v7, %v3867_v60  ;;  %5160 = vst [vmem:[#allocation3 + $0x138] sm:$0x11] %v7571_v18  ;;  %4342 = vst [vmem:[#allocation3 + $0x50] sm:$0xff] %v4341_v58  ;;  %v4263_v18 = vld [vmem:[#allocation3 + $0xa0] sm:$0xff] }
 0x46e   : > { %4345 = vst [vmem:[#allocation3 + $0xe8] sm:$0xff] %v10049_v40  ;;  %v3874_v16 = vsel %vm1369_vm15, %v9964_v38, %v3873_v22  ;;  %v4234_v53 = vpop.permute.xlu1 %4233  ;;  %v4166_v7 = vsel %vm572_vm0, %v4159_v37, %v4160_v10  ;;  %v4168_v11 = vsel %vm572_vm0, %v4160_v10, %v4161_v61  ;;  %v4241_v38 = vrot.slane %v9862_v26, 4 }
 0x46f   : > { %v10072_v13 = vsel %vm8800_vm8, %v3874_v16, %v3887_v14  ;;  %v4240_v5 = vrot.slane %v4234_v53, 4  ;;  %4704 = vmatpush1.bf16.msra.mxu1 %v7243_v39  ;;  %v4167_v29 = vsel %vm1369_vm15, %v9933_v41, %v4166_v7  ;;  %v4169_v28 = vsel %vm1369_vm15, %v4154_v31, %v4168_v11  ;;  %v10078_v35 = vpop.permute.xlu0 %5431  ;;  %v4260_v41 = vld [vmem:[#allocation3 + $0xd8] sm:$0xff] }
 0x470   : > { %3889 = vst [vmem:[#allocation3 + $0xf8] sm:$0xff] %v10072_v13  ;;  %7287 = vmatprep.subr.msk.bf16.mxu1 %vm572_vm0, %v7280_v0  ;;  %v4181_v37 = vsel %vm8800_vm8, %v4167_v29, %v4180_v48  ;;  %v4184_v2 = vsel %vm8800_vm8, %v4169_v28, %v4183_v21  ;;  %v5440_v46 = vrot.slane %v10078_v35, 4  ;;  %v7254_v14 = vcombine.high %v10036_v15, %v10014_v36  ;;  %v5124_v48 = vld [vmem:[#allocation2 + $0x40] sm:$0x3]  ;;  %v5125_v21 = vld [vmem:[#allocation2 + $0x48] sm:$0x3] }
 0x471   : > { %v4246_v26 = vsel %vm572_vm0, %v4239_v25, %v4240_v5  ;;  %4182 = vst [vmem:[#allocation3 + $0xe0] sm:$0xff] %v4181_v37  ;;  %4185 = vst [vmem:[#allocation3 + $0x88] sm:$0xff] %v4184_v2  ;;  %v4248_v9 = vsel %vm572_vm0, %v4240_v5, %v4241_v38  ;;  %v7262_v56 = vcombine.high %v9671_v54, %v4181_v37  ;;  %v7719_v5 = vld [vmem:[#allocation3 + $0x10] sm:$0xff] }
 0x472   : > { %v4247_v34 = vsel %vm3950_vm12, %v9914_v42, %v4246_v26  ;;  %v5430_v63 = vpop.permute.xlu1 %5429  ;;  %7284 = vmatmul.mubr.msk.bf16.vlgmr.msra.gmra.mxu1 %vm1759_vm2, %v10007_v20  ;;  %v4249_v27 = vsel %vm3950_vm12, %v4234_v53, %v4248_v9  ;;  %v7264_v17 = vcombine.high %v9710_v50, %v4184_v2  ;;  %v7263_v22 = vcombine.low %v9710_v50, %v4184_v2  ;;  %v4051_v2 = vld [vmem:[#allocation3 + $0x20] sm:$0xff]  ;;  %v3971_v9 = vld [vmem:[#allocation3 + $0xf0] sm:$0xff] }
 0x473   : > { %v4261_v25 = vsel %vm8800_vm8, %v4247_v34, %v4260_v41  ;;  %v5439_v4 = vrot.slane %v5430_v63, 4  ;;  %4778 = vmatpush1.bf16.msra.mxu1 %v4643_v24  ;;  %4803 = vmatprep.mubr.bf16.mxu1 %v10056_v52  ;;  %v10100_v42 = vpop.permute.xlu0 %5282  ;;  %v4264_v43 = vsel %vm8800_vm8, %v4249_v27, %v4263_v18  ;;  %v7253_v7 = vcombine.low %v10036_v15, %v10014_v36 }
 0x474   : > { %4262 = vst [vmem:[#allocation3 + $0xd8] sm:$0xff] %v4261_v25  ;;  %v7269_v33 = vcombine.low %v4261_v25, %v4341_v58  ;;  %v7270_v32 = vcombine.high %v4261_v25, %v4341_v58  ;;  %4265 = vst [vmem:[#allocation3 + $0xa0] sm:$0xff] %v4264_v43  ;;  %v7271_v44 = vcombine.low %v4264_v43, %v10049_v40  ;;  %v5291_v51 = vrot.slane %v10100_v42, 4 }
 0x475   : > { %v5444_v62 = vsel %vm572_vm0, %v5439_v4, %v5440_v46  ;;  %v7272_v19 = vcombine.high %v4264_v43, %v10049_v40  ;;  %v7261_v58 = vcombine.low %v9671_v54, %v4181_v37  ;;  %v7246_v38 = vcombine.high %v7719_v5, %v10072_v13 }
 0x476   : > { %v5445_v55 = vsel %vm2371_vm6, %v5430_v63, %v5444_v62  ;;  %v5281_v61 = vpop.permute.xlu1 %5280  ;;  %4738 = vmatprep.subr.bf16.mxu0 %v7270_v32  ;;  %v7572_v34 = vpack.c.bf16 %v5125_v21, %v5124_v48 }
 0x477   : > { %5456 = vst [vmem:[#allocation3 + $0x128] sm:$0x11] %v5445_v55  ;;  %v5290_v49 = vrot.slane %v5281_v61, 4  ;;  %4779 = vmatprep.subr.bf16.mxu1 %v7272_v19  ;;  %4739 = vmatpush1.bf16.msra.mxu0 %v7269_v33  ;;  %v4939_v31 = vpop.permute.xlu0 %4938  ;;  %v10160_v33 = vld [vmem:[#allocation3 + $0x80] sm:$0xff] }
 0x478   : > { %4780 = vmatpush1.bf16.msra.mxu1 %v7271_v44  ;;  %4740 = vmatprep.subr.bf16.mxu0 %v7262_v56  ;;  %v4948_v16 = vrot.slane %v4939_v31, 4 }
 0x479   : > { %v5295_v39 = vsel %vm572_vm0, %v5290_v49, %v5291_v51  ;;  %4781 = vmatprep.subr.bf16.mxu1 %v7264_v17 }
 0x47a   : > { %v5296_v40 = vsel %vm876_vm13, %v5281_v61, %v5295_v39  ;;  %v10118_v10 = vpop.permute.xlu1 %4940 }
 0x47b   : > { %5307 = vst [vmem:[#allocation3 + $0x18] sm:$0x11] %v5296_v40  ;;  %v4949_v53 = vrot.slane %v10118_v10, 4  ;;  %4741 = vmatpush1.bf16.msra.mxu0 %v7261_v58  ;;  %v4024_v0 = vpop.permute.xlu0 %4023  ;;  %v3890_v40 = vld [vmem:[#allocation3 + $0x100] sm:$0xff] }
 0x47c   : > { %4782 = vmatpush1.bf16.msra.mxu1 %v7263_v22  ;;  %4742 = vmatprep.subr.bf16.mxu0 %v7254_v14  ;;  %v4029_v1 = vrot.slane %v4024_v0, 4 }
 0x47d   : > { %v4953_v54 = vsel %vm572_vm0, %v4948_v16, %v4949_v53 }
 0x47e   : > { %v4954_v50 = vsel %vm2445_vm10, %v4939_v31, %v4953_v54  ;;  %v3943_v11 = vpop.permute.xlu1 %3942  ;;  %v4036_v29 = vsel %vm572_vm0, %v4028_v45, %v4029_v1  ;;  %v10134_v37 = vld [vmem:[#allocation3 + $0x128] sm:$0xff]  ;;  %v7245_v45 = vcombine.low %v7719_v5, %v10072_v13 }
 0x47f   : > { %4965 = vst [vmem:[#allocation3 + $0xb0] sm:$0x11] %v4954_v50  ;;  %v3948_v28 = vrot.slane %v3943_v11, 4  ;;  %4743 = vmatpush1.bf16.msra.mxu0 %v7253_v7  ;;  %v4037_v36 = vsel %vm647_vm1, %v9977_v23, %v4036_v29  ;;  %v5088_v15 = vpop.permute.xlu0 %5087  ;;  %v7334_v23 = vcombine.high %v10134_v37, %v10134_v37  ;;  %v7333_v18 = vcombine.low %v10134_v37, %v10134_v37  ;;  %v7720_v54 = vld [vmem:[#allocation3 + $0x48] sm:$0xff] }
 0x480   : > { %4744 = vmatprep.subr.bf16.mxu0 %v7246_v38  ;;  %v4052_v26 = vsel %vm8800_vm8, %v4037_v36, %v4051_v2  ;;  %v5097_v27 = vrot.slane %v5088_v15, 4 }
 0x481   : > { %v3956_v41 = vsel %vm572_vm0, %v3947_v30, %v3948_v28  ;;  %4053 = vst [vmem:[#allocation3 + $0x20] sm:$0xff] %v4052_v26  ;;  %v5592_v55 = vsel %vm572_vm0, %v7333_v18, 0 }
 0x482   : > { %v3957_v63 = vsel %vm3950_vm12, %v9992_v57, %v3956_v41  ;;  %v10146_v24 = vpop.permute.xlu1 %5089  ;;  %v10155_v25 = vld [vmem:[#allocation3 + $0x18] sm:$0xff] }
 0x483   : > { %v3972_v30 = vsel %vm8800_vm8, %v3957_v63, %v3971_v9  ;;  %v5098_v13 = vrot.slane %v10146_v24, 4  ;;  %4745 = vmatpush1.bf16.msra.mxu0 %v7245_v45  ;;  %v10157_v4 = vpop.permute.xlu0 %5433  ;;  %v7326_v61 = vcombine.high %v10160_v33, %v10155_v25  ;;  %v10229_v9 = vld [vmem:[%s10657_s1 + $0xc] sm:$0xf] }
 0x484   : > { %3973 = vst [vmem:[#allocation3 + $0xf0] sm:$0xff] %v3972_v30  ;;  %7341 = vmatprep.subr.msk.bf16.mxu0 %vm572_vm0, %v7334_v23  ;;  %v7256_v57 = vcombine.high %v3972_v30, %v4052_v26  ;;  %v7255_v43 = vcombine.low %v3972_v30, %v4052_v26  ;;  %v5441_v32 = vrot.slane %v10157_v4, 4 }
 0x485   : > { %v5102_v62 = vsel %vm572_vm0, %v5097_v27, %v5098_v13  ;;  %5161 = vst [vmem:[#allocation3 + $0xf0] sm:$0x11] %v7572_v34  ;;  %v10237_v27 = vld [vmem:[#allocation3 + $0x108] sm:$0xff] }
 0x486   : > { %v5103_v44 = vsel %vm950_vm11, %v5088_v15, %v5102_v62  ;;  %v3863_v19 = vpop.permute.xlu1 %3862  ;;  %4783 = vmatprep.subr.bf16.mxu1 %v7256_v57  ;;  %7286 = vmatmul.mubr.msk.bf16.vlgmr.msra.gmra.mxu0 %vm1759_vm2, %v10007_v20  ;;  %v5446_v56 = vsel %vm572_vm0, %v5440_v46, %v5441_v32  ;;  %v7325_v46 = vcombine.low %v10160_v33, %v10155_v25  ;;  %v10198_v5 = vld [vmem:[#allocation3 + $0xb0] sm:$0xff] }
 0x487   : > { %5114 = vst [vmem:[#allocation3 + $0x120] sm:$0x11] %v5103_v44  ;;  %v3868_v49 = vrot.slane %v3863_v19, 4  ;;  %4784 = vmatpush1.bf16.msra.mxu1 %v7255_v43  ;;  %5626 = vmatpush1.bf16.msra.mxu0 %v5592_v55  ;;  %v5447_v17 = vsel %vm2371_vm6, %v10078_v35, %v5446_v56  ;;  %v10177_v31 = vpop.permute.xlu0 %5284 }
 0x488   : > { %5627 = vmatprep.subr.bf16.mxu0 %v7326_v61  ;;  %5647 = vmatprep.mubr.bf16.mxu0 %v10056_v52  ;;  %5457 = vst [vmem:[#allocation3 + $0x110] sm:$0x11] %v5447_v17  ;;  %v5292_v39 = vrot.slane %v10177_v31, 4 }
 0x489   : > { %v3875_v58 = vsel %vm572_vm0, %v3867_v60, %v3868_v49 }
 0x48a   : > { %v3876_v22 = vsel %vm1369_vm15, %v10024_v47, %v3875_v58  ;;  %v10188_v35 = vpop.permute.xlu1 %4944  ;;  %v5297_v14 = vsel %vm572_vm0, %v5291_v51, %v5292_v39 }
 0x48b   : > { %v3891_v16 = vsel %vm8800_vm8, %v3876_v22, %v3890_v40  ;;  %v4951_v0 = vrot.slane %v10188_v35, 4  ;;  %5628 = vmatpush1.bf16.msra.mxu0 %v7325_v46  ;;  %v5298_v60 = vsel %vm876_vm13, %v10100_v42, %v5297_v14  ;;  %v4943_v1 = vpop.permute.xlu0 %4942 }
 0x48c   : > { %3892 = vst [vmem:[#allocation3 + $0x100] sm:$0xff] %v3891_v16  ;;  %v7248_v7 = vcombine.high %v7720_v54, %v3891_v16  ;;  %v7247_v47 = vcombine.low %v7720_v54, %v3891_v16  ;;  %5308 = vst [vmem:[#allocation3 + $0xc8] sm:$0x11] %v5298_v60  ;;  %v4950_v50 = vrot.slane %v4943_v1, 4 }
 0x48e   : > { %v5436_v11 = vpop.permute.xlu1 %5435  ;;  %v10200_v51 = vld [vmem:[#allocation3 + $0x120] sm:$0xff]  ;;  %4785 = vmatprep.subr.bf16.mxu1 %v7248_v7  ;;  %v4955_v38 = vsel %vm572_vm0, %v4949_v53, %v4950_v50  ;;  %v4957_v42 = vsel %vm572_vm0, %v4950_v50, %v4951_v0  ;;  %v10277_v7 = vld [vmem:[#allocation3 + $0x138] sm:$0xff] }
 0x48f   : > { %v5442_v48 = vrot.slane %v5436_v11, 4  ;;  %v7318_v21 = vcombine.high %v10198_v5, %v10200_v51  ;;  %4786 = vmatpush1.bf16.msra.mxu1 %v7247_v47  ;;  %v4956_v29 = vsel %vm2445_vm10, %v10118_v10, %v4955_v38  ;;  %v5092_v28 = vpop.permute.xlu0 %5091  ;;  %v4958_v2 = vsel %vm2445_vm10, %v4943_v1, %v4957_v42  ;;  %v10215_v15 = vld [vmem:[#allocation3 + $0x110] sm:$0xff] }
 0x490   : > { %v7317_v36 = vcombine.low %v10198_v5, %v10200_v51  ;;  %4966 = vst [vmem:[#allocation3 + $0xd0] sm:$0x11] %v4956_v29  ;;  %v5099_v53 = vrot.slane %v5092_v28, 4  ;;  %4967 = vst [vmem:[#allocation3 + $0x10] sm:$0x11] %v4958_v2  ;;  %v7336_v41 = vcombine.high %v10215_v15, %v10215_v15  ;;  %v7335_v10 = vcombine.low %v10215_v15, %v10215_v15 }
 0x491   : > { %v5448_v26 = vsel %vm572_vm0, %v5441_v32, %v5442_v48  ;;  %5629 = vmatprep.subr.bf16.mxu0 %v7318_v21 }
 0x492   : > { %v5449_v45 = vsel %vm2371_vm6, %v10157_v4, %v5448_v26  ;;  %v5287_v34 = vpop.permute.xlu1 %5286  ;;  %5630 = vmatpush1.bf16.msra.mxu0 %v7317_v36  ;;  %7288 = vmatmul.mubr.msk.bf16.vlgmr.msra.gmra.mxu1 %vm1759_vm2, %v10007_v20  ;;  %v5104_v63 = vsel %vm572_vm0, %v5098_v13, %v5099_v53  ;;  %v5598_v18 = vsel %vm572_vm0, %v7335_v10, 0 }
 0x493   : > { %5458 = vst [vmem:[#allocation3 + $0x8] sm:$0x11] %v5449_v45  ;;  %v5293_v23 = vrot.slane %v5287_v34, 4  ;;  %7343 = vmatprep.subr.msk.bf16.mxu1 %vm572_vm0, %v7336_v41  ;;  %5688 = vmatprep.mubr.bf16.mxu1 %v10056_v52  ;;  %v5105_v20 = vsel %vm950_vm11, %v10146_v24, %v5104_v63  ;;  %v5438_v30 = vpop.permute.xlu0 %5437  ;;  %v10241_v4 = vld [vmem:[#allocation3 + $0xc8] sm:$0xff] }
 0x494   : > { %5667 = vmatpush1.bf16.msra.mxu1 %v5598_v18  ;;  %5115 = vst [vmem:[#allocation3 + $0x38] sm:$0x11] %v5105_v20  ;;  %v5443_v57 = vrot.slane %v5438_v30, 4  ;;  %v7328_v43 = vcombine.high %v10237_v27, %v10241_v4  ;;  %v7327_v24 = vcombine.low %v10237_v27, %v10241_v4 }
 0x495   : > { %v5299_v13 = vsel %vm572_vm0, %v5292_v39, %v5293_v23  ;;  %7342 = vmatmul.mubr.msk.bf16.vlgmr.msra.gmra.mxu0 %vm5587_vm3, %v10229_v9 }
 0x496   : > { %v5300_v32 = vsel %vm876_vm13, %v10177_v31, %v5299_v13  ;;  %v5094_v62 = vpop.permute.xlu1 %5093  ;;  %5729 = vmatprep.mubr.bf16.mxu0 %v10056_v52  ;;  %v5450_v44 = vsel %vm572_vm0, %v5442_v48, %v5443_v57  ;;  %5668 = vmatprep.subr.bf16.mxu1 %v7328_v43  ;;  %v7750_v43 = vmov 2  }
 0x497   : > { %5309 = vst [vmem:[#allocation3 + $0x70] sm:$0x11] %v5300_v32  ;;  %v5100_v19 = vrot.slane %v5094_v62, 4  ;;  %v5451_v55 = vsel %vm2371_vm6, %v5436_v11, %v5450_v44  ;;  %v4947_v61 = vpop.permute.xlu0 %4946  ;;  %v10268_v16 = vld [vmem:[#allocation3 + $0xd0] sm:$0xff]  ;;  %7649 = vset.pattern.permute.xlu0 %v7750_v43 }
 0x498   : > { %5669 = vmatpush1.bf16.msra.mxu1 %v7327_v24  ;;  %5459 = vst [vmem:[#allocation3 + $0x98] sm:$0x11] %v5451_v55  ;;  %v4952_v56 = vrot.slane %v4947_v61, 4 }
 0x499   : > { %v5106_v49 = vsel %vm572_vm0, %v5099_v53, %v5100_v19  ;;  %v10296_v53 = vld [vmem:[#allocation3 + $0x10] sm:$0xff] }
 0x49a   : > { %v5107_v17 = vsel %vm950_vm11, %v5092_v28, %v5106_v49  ;;  %v5289_v31 = vpop.permute.xlu1 %5288  ;;  %v10257_v39 = vld [vmem:[#allocation3 + $0x8] sm:$0xff]  ;;  %v4959_v58 = vsel %vm572_vm0, %v4951_v0, %v4952_v56 }
 0x49b   : > { %5116 = vst [vmem:[#allocation3 + $0xf8] sm:$0x11] %v5107_v17  ;;  %v5294_v46 = vrot.slane %v5289_v31, 4  ;;  %v7338_v40 = vcombine.high %v10257_v39, %v10257_v39  ;;  %v7337_v22 = vcombine.low %v10257_v39, %v10257_v39  ;;  %v4960_v14 = vsel %vm2445_vm10, %v10188_v35, %v4959_v58  ;;  %v10270_v60 = vld [vmem:[#allocation3 + $0x38] sm:$0xff] }
 0x49c   : > { %4968 = vst [vmem:[#allocation3 + $0x48] sm:$0x11] %v4960_v14  ;;  %v7320_v54 = vcombine.high %v10268_v16, %v10270_v60  ;;  %v7319_v11 = vcombine.low %v10268_v16, %v10270_v60 }
 0x49d   : > { %v5301_v1 = vsel %vm572_vm0, %v5293_v23, %v5294_v46  ;;  %7345 = vmatprep.subr.msk.bf16.mxu0 %vm572_vm0, %v7338_v40  ;;  %v5604_v0 = vsel %vm572_vm0, %v7337_v22, 0 }
 0x49e   : > { %v5302_v47 = vsel %vm876_vm13, %v5287_v34, %v5301_v1  ;;  %5708 = vmatpush1.bf16.msra.mxu0 %v5604_v0  ;;  %v5096_v35 = vpop.permute.xlu1 %5095  ;;  %v10280_v50 = vld [vmem:[#allocation3 + $0x70] sm:$0xff]  ;;  %5670 = vmatprep.subr.bf16.mxu1 %v7320_v54 }
 0x49f   : > { %5310 = vst [vmem:[#allocation3 + $0x20] sm:$0x11] %v5302_v47  ;;  %v5101_v38 = vrot.slane %v5096_v35, 4  ;;  %v7330_v42 = vcombine.high %v10277_v7, %v10280_v50  ;;  %v7329_v48 = vcombine.low %v10277_v7, %v10280_v50  ;;  %5671 = vmatpush1.bf16.msra.mxu1 %v7319_v11  ;;  %v10288_v21 = vld [vmem:[#allocation3 + $0x98] sm:$0xff]  ;;  %v10309_v34 = vld [vmem:[#allocation3 + $0xf0] sm:$0xff] }
 0x4a0   : > { %v7340_v28 = vcombine.high %v10288_v21, %v10288_v21  ;;  %v7339_v2 = vcombine.low %v10288_v21, %v10288_v21 }
 0x4a1   : > { %v5108_v29 = vsel %vm572_vm0, %v5100_v19, %v5101_v38  ;;  %5709 = vmatprep.subr.bf16.mxu0 %v7330_v42 }
 0x4a2   : > { %v5109_v36 = vsel %vm950_vm11, %v5094_v62, %v5108_v29  ;;  %5710 = vmatpush1.bf16.msra.mxu0 %v7329_v48  ;;  %v10298_v26 = vld [vmem:[#allocation3 + $0xf8] sm:$0xff]  ;;  %7347 = vmatprep.subr.msk.bf16.mxu1 %vm572_vm0, %v7340_v28  ;;  %v5610_v45 = vsel %vm572_vm0, %v7339_v2, 0  ;;  %v5891_v29 = vld [vmem:[#allocation2 + $0x8] sm:$0x7f] }
 0x4a3   : > { %5117 = vst [vmem:[#allocation3 + $0x100] sm:$0x11] %v5109_v36  ;;  %v7322_v41 = vcombine.high %v10296_v53, %v10298_v26  ;;  %7344 = vmatmul.mubr.msk.bf16.vlgmr.msra.gmra.mxu1 %vm5587_vm3, %v10229_v9  ;;  %v7321_v10 = vcombine.low %v10296_v53, %v10298_v26  ;;  %v10319_v20 = vld [vmem:[#allocation3 + $0x48] sm:$0xff] }
 0x4a4   : > { %5749 = vmatpush1.bf16.msra.mxu1 %v5610_v45  ;;  %5770 = vmatprep.mubr.bf16.mxu1 %v10056_v52  ;;  %v10345_v58 = vpop.permute.xlu0 %5484  ;;  %v5811_v28 = vld [vmem:[#allocation2 + $0x8] sm:$0x7f] }
 0x4a5   : > { %5711 = vmatprep.subr.bf16.mxu0 %v7322_v41 }
 0x4a6   : > { %5712 = vmatpush1.bf16.msra.mxu0 %v7321_v10  ;;  %v10311_v63 = vld [vmem:[#allocation3 + $0x20] sm:$0xff] }
 0x4a7   : > { %v7332_v23 = vcombine.high %v10309_v34, %v10311_v63  ;;  %v7331_v18 = vcombine.low %v10309_v34, %v10311_v63 }
 0x4a9   : > { %7346 = vmatmul.mubr.msk.bf16.vlgmr.msra.gmra.mxu0 %vm5587_vm3, %v10229_v9  ;;  %5750 = vmatprep.subr.bf16.mxu1 %v7332_v23 }
 0x4aa   : > { %5751 = vmatpush1.bf16.msra.mxu1 %v7331_v18  ;;  %v10321_v30 = vld [vmem:[#allocation3 + $0x100] sm:$0xff]  ;;  %6369 = vmatprep.mubr.bf16.mxu0 %v10056_v52 }
 0x4ab   : > { %v7324_v57 = vcombine.high %v10319_v20, %v10321_v30  ;;  %v7323_v13 = vcombine.low %v10319_v20, %v10321_v30 }
 0x4ad   : > { %5752 = vmatprep.subr.bf16.mxu1 %v7324_v57 }
 0x4ae   : > { %5753 = vmatpush1.bf16.msra.mxu1 %v7323_v13 }
 0x4b1   : > { %7348 = vmatmul.mubr.msk.bf16.vlgmr.msra.gmra.mxu1 %vm5587_vm3, %v10229_v9 }
 0x4b2   : > { %6410 = vmatprep.mubr.bf16.mxu1 %v10056_v52 }
 0x52a   : > { %v10331_v32 = vpop.f32.mrf.mxu0 }
 0x52c   : > { %v10333_v62 = vpop.f32.mrf.mxu0 }
 0x52e   : > { %v4686_v24 = vpop.f32.mrf.mxu0 }
 0x530   : > { %v4687_v44 = vpop.f32.mrf.mxu0 }
 0x532   : > { %v10335_v19 = vpop.f32.mrf.mxu1 }
 0x534   : > { %v10337_v55 = vpop.f32.mrf.mxu1 }
 0x536   : > { %v4727_v61 = vpop.f32.mrf.mxu1 }
 0x538   : > { %v4728_v56 = vpop.f32.mrf.mxu1 }
 0x546   : > { %v10339_v49 = vpop.f32.mrf.mxu0 }
 0x548   : > { %v10341_v17 = vpop.f32.mrf.mxu0 }
 0x54a   : > { %v4768_v9 = vpop.f32.mrf.mxu0 }
 0x54c   : > { %v4769_v52 = vpop.f32.mrf.mxu0 }
 0x552   : > { %v10343_v31 = vpop.f32.mrf.mxu1 }
 0x554   : > { %v10347_v46 = vpop.f32.mrf.mxu1 }
 0x555   : > { %v5649_v40 = vpop.f32.mrf.mxu0 }
 0x556   : > { %v5650_v22 = vadd.f32 %v5649_v40, %v10345_v58  ;;  %v4809_v14 = vpop.f32.mrf.mxu1 }
 0x557   : > { %v5651_v1 = vpop.f32.mrf.mxu0 }
 0x558   : > { %vm5779_vm11 = vcmp.gt.f32.partialorder %v5650_v22, 0.0  ;;  %v5787_v0 = vmul.f32 0.3, %v5650_v22  ;;  %v5652_v54 = vadd.f32 %v5651_v1, %v10345_v58  ;;  %v4810_v47 = vpop.f32.mrf.mxu1 }
 0x559   : > { %v5653_v35 = vpop.f32.mrf.mxu0 }
 0x55a   : > { %v5795_v11 = vsel %vm5779_vm11, %v5650_v22, %v5787_v0  ;;  %vm5780_vm13 = vcmp.gt.f32.partialorder %v5652_v54, 0.0  ;;  %v5788_v38 = vmul.f32 0.3, %v5652_v54 }
 0x55b   : > { %5803 = vst [vmem:[#allocation2 + $0x10] sm:$0x7f] %v5795_v11  ;;  %v5654_v42 = vpop.f32.mrf.mxu0 }
 0x55c   : > { %v5796_v48 = vsel %vm5780_vm13, %v5652_v54, %v5788_v38 }
 0x55d   : > { %5804 = vst [vmem:[#allocation2 + $0x18] sm:$0x7f] %v5796_v48 }
 0x562   : > { %v5892_v2 = vld [vmem:[#allocation2 + $0x10] sm:$0x7f] }
 0x563   : > { %v5812_v36 = vld [vmem:[#allocation2 + $0x10] sm:$0x7f]  ;;  %v5690_v41 = vpop.f32.mrf.mxu1  ;;  %v7588_v10 = vpack.c.bf16 %v5892_v2, %v5891_v29 }
 0x564   : > { %v7583_v45 = vpack.c.bf16 %v5812_v36, %v5811_v28  ;;  %v5971_v23 = vld [vmem:[#allocation2 + $0x10] sm:$0x7f]  ;;  %v5691_v18 = vadd.f32 %v5690_v41, %v10345_v58  ;;  %v6104_v13 = vld [vmem:[#allocation2 + $0x18] sm:$0x7f] }
 0x565   : > { %v6103_v57 = vld [vmem:[#allocation2 + $0x10] sm:$0x7f]  ;;  %v5692_v43 = vpop.f32.mrf.mxu1  ;;  %5932 = vrot.lane.b32.xlu1 %v7588_v10, %s7740_s25  ;;  %v5972_v24 = vld [vmem:[#allocation2 + $0x18] sm:$0x7f] }
 0x566   : > { %5852 = vrot.lane.b32.xlu0 %v7583_v45, %s7748_s16  ;;  %vm5781_vm2 = vcmp.gt.f32.partialorder %v5691_v18, 0.0  ;;  %v5789_v44 = vmul.f32 0.3, %v5691_v18  ;;  %v5693_v61 = vadd.f32 %v5692_v43, %v10345_v58  ;;  %v7593_v56 = vpack.c.bf16 %v5972_v24, %v5971_v23  ;;  %v6023_v43 = vld [vmem:[#allocation2 + $0x10] sm:$0x7f] }
 0x567   : > { %v5694_v9 = vpop.f32.mrf.mxu1  ;;  %v7602_v52 = vpack.c.bf16 %v6104_v13, %v6103_v57 }
 0x568   : > { %v5797_v40 = vsel %vm5781_vm2, %v5691_v18, %v5789_v44  ;;  %vm5782_vm6 = vcmp.gt.f32.partialorder %v5693_v61, 0.0  ;;  %v5790_v22 = vmul.f32 0.3, %v5693_v61  ;;  %v10358_v14 = vsel %vm8800_vm8, %v7593_v56, %v10160_v33  ;;  %v6024_v9 = vld [vmem:[#allocation2 + $0x18] sm:$0x7f] }
 0x569   : > { %5805 = vst [vmem:[#allocation2 + $0x20] sm:$0x7f] %v5797_v40  ;;  %v5731_v1 = vpop.f32.mrf.mxu0  ;;  %v5695_v0 = vpop.f32.mrf.mxu1  ;;  %6144 = vrot.lane.b32.xlu1 %v7602_v52, %s7748_s16  ;;  %6013 = vst [vmem:[#allocation3 + $0x80] sm:$0xff] %v10358_v14 }
 0x56a   : > { %v5798_v54 = vsel %vm5782_vm6, %v5693_v61, %v5790_v22  ;;  %v5732_v47 = vadd.f32 %v5731_v1, %v10345_v58 }
 0x56b   : > { %5806 = vst [vmem:[#allocation2 + $0x28] sm:$0x7f] %v5798_v54  ;;  %v5733_v35 = vpop.f32.mrf.mxu0 }
 0x56c   : > { %vm5783_vm10 = vcmp.gt.f32.partialorder %v5732_v47, 0.0  ;;  %v5791_v11 = vmul.f32 0.3, %v5732_v47  ;;  %v5734_v38 = vadd.f32 %v5733_v35, %v10345_v58 }
 0x56d   : > { %v5735_v42 = vpop.f32.mrf.mxu0 }
 0x56e   : > { %v5799_v48 = vsel %vm5783_vm10, %v5732_v47, %v5791_v11  ;;  %vm5784_vm5 = vcmp.gt.f32.partialorder %v5734_v38, 0.0  ;;  %v5792_v33 = vmul.f32 0.3, %v5734_v38 }
 0x56f   : > { %5807 = vst [vmem:[#allocation2 + $0x30] sm:$0x7f] %v5799_v48  ;;  %v5736_v29 = vpop.f32.mrf.mxu0 }
 0x570   : > { %v5800_v28 = vsel %vm5784_vm5, %v5734_v38, %v5792_v33  ;;  %v6105_v36 = vld [vmem:[#allocation2 + $0x20] sm:$0x7f]  ;;  %vm6692_vm5 = vcmask 130048  }
 0x571   : > { %5808 = vst [vmem:[#allocation2 + $0x38] sm:$0x7f] %v5800_v28  ;;  %v5772_v2 = vpop.f32.mrf.mxu1  ;;  %v6025_v45 = vld [vmem:[#allocation2 + $0x20] sm:$0x7f]  ;;  %v5813_v28 = vld [vmem:[#allocation2 + $0x18] sm:$0x7f] }
 0x572   : > { %v5773_v41 = vadd.f32 %v5772_v2, %v10345_v58  ;;  %v6106_v10 = vld [vmem:[#allocation2 + $0x28] sm:$0x7f]  ;;  %v5973_v24 = vld [vmem:[#allocation2 + $0x20] sm:$0x7f] }
 0x573   : > { %v6026_v23 = vld [vmem:[#allocation2 + $0x28] sm:$0x7f]  ;;  %v5774_v18 = vpop.f32.mrf.mxu1  ;;  %v7603_v57 = vpack.c.bf16 %v6106_v10, %v6105_v36  ;;  %v5814_v42 = vld [vmem:[#allocation2 + $0x20] sm:$0x7f] }
 0x574   : > { %v7598_v13 = vpack.c.bf16 %v6026_v23, %v6025_v45  ;;  %v5974_v44 = vld [vmem:[#allocation2 + $0x28] sm:$0x7f]  ;;  %vm5785_vm9 = vcmp.gt.f32.partialorder %v5773_v41, 0.0  ;;  %v5793_v61 = vmul.f32 0.3, %v5773_v41  ;;  %v5775_v56 = vadd.f32 %v5774_v18, %v10345_v58 }
 0x575   : > { %v7594_v52 = vpack.c.bf16 %v5974_v44, %v5973_v24  ;;  %6146 = vrot.lane.b32.xlu1 %v7603_v57, %s7748_s16  ;;  %v5776_v40 = vpop.f32.mrf.mxu1  ;;  %v5815_v22 = vld [vmem:[#allocation2 + $0x28] sm:$0x7f]  ;;  %v7597_v58 = vpack.c.bf16 %v6024_v9, %v6023_v43  ;;  %v7584_v36 = vpack.c.bf16 %v5814_v42, %v5813_v28  ;;  %v5894_v45 = vld [vmem:[#allocation2 + $0x20] sm:$0x7f]  ;;  %v5893_v57 = vld [vmem:[#allocation2 + $0x18] sm:$0x7f] }
 0x576   : > { %6066 = vrot.lane.b32.xlu0 %v7598_v13, %s7739_s24  ;;  %v5801_v1 = vsel %vm5785_vm9, %v5773_v41, %v5793_v61  ;;  %vm5786_vm14 = vcmp.gt.f32.partialorder %v5775_v56, 0.0  ;;  %v5794_v0 = vmul.f32 0.3, %v5775_v56  ;;  %v5816_v54 = vld [vmem:[#allocation2 + $0x30] sm:$0x7f]  ;;  %v7589_v43 = vpack.c.bf16 %v5894_v45, %v5893_v57 }
 0x577   : > { %v10371_v47 = vsel %vm8800_vm8, %v7594_v52, %v10237_v27  ;;  %5809 = vst [vmem:[#allocation2 + $0x40] sm:$0x7f] %v5801_v1  ;;  %v5777_v35 = vpop.f32.mrf.mxu1  ;;  %v7585_v11 = vpack.c.bf16 %v5816_v54, %v5815_v22  ;;  %v5975_v33 = vld [vmem:[#allocation2 + $0x30] sm:$0x7f]  ;;  %v5895_v18 = vld [vmem:[#allocation2 + $0x28] sm:$0x7f] }
 0x578   : > { %6016 = vst [vmem:[#allocation3 + $0x108] sm:$0xff] %v10371_v47  ;;  %v5802_v38 = vsel %vm5786_vm14, %v5775_v56, %v5794_v0  ;;  %v6108_v48 = vld [vmem:[#allocation2 + $0x38] sm:$0x7f]  ;;  %v6107_v2 = vld [vmem:[#allocation2 + $0x30] sm:$0x7f]  ;;  %v7751_v57 = vmov 4  }
 0x579   : > { %5810 = vst [vmem:[#allocation2 + $0x48] sm:$0x7f] %v5802_v38  ;;  %6064 = vrot.lane.b32.xlu1 %v7597_v58, %s7739_s24  ;;  %v5976_v29 = vld [vmem:[#allocation2 + $0x38] sm:$0x7f]  ;;  %v7604_v41 = vpack.c.bf16 %v6108_v48, %v6107_v2  ;;  %v5896_v10 = vld [vmem:[#allocation2 + $0x30] sm:$0x7f] }
 0x57a   : > { %5856 = vrot.lane.b32.xlu0 %v7585_v11, %s7748_s16  ;;  %v7595_v27 = vpack.c.bf16 %v5976_v29, %v5975_v33  ;;  %v7590_v13 = vpack.c.bf16 %v5896_v10, %v5895_v18  ;;  %v6028_v24 = vld [vmem:[#allocation2 + $0x38] sm:$0x7f]  ;;  %v6111_v52 = vld [vmem:[#allocation2 + $0x50] sm:$0x7f]  ;;  %v4435_v10 = vld [vmem:[%s10658_s2] sm:$0x7f]  ;;  %7650 = vset.pattern.permute.xlu1 %v7751_v57 }
 0x57b   : > { %v7606_v35 = vpack.c.bf16 %v6111_v52, %v6111_v52  ;;  %v6031_v11 = vld [vmem:[#allocation2 + $0x50] sm:$0x7f]  ;;  %v5817_v33 = vld [vmem:[#allocation2 + $0x38] sm:$0x7f]  ;;  %v6204_v18 = vld [vmem:[%s10658_s2] sm:$0x7f] }
 0x57c   : > { %v10379_v23 = vsel %vm8800_vm8, %v7595_v27, %v10277_v7  ;;  %v6027_v7 = vld [vmem:[#allocation2 + $0x30] sm:$0x7f]  ;;  %v7601_v48 = vpack.c.bf16 %v6031_v11, %v6031_v11  ;;  %v5897_v2 = vld [vmem:[#allocation2 + $0x38] sm:$0x7f] }
 0x57d   : > { %5854 = vrot.lane.b32.xlu1 %v7584_v36, %s7748_s16  ;;  %6019 = vst [vmem:[#allocation3 + $0x138] sm:$0xff] %v10379_v23  ;;  %v7599_v22 = vpack.c.bf16 %v6028_v24, %v6027_v7 }
 0x57e   : > { %6148 = vrot.lane.b32.xlu0 %v7604_v41, %s7748_s16  ;;  %v5977_v61 = vld [vmem:[#allocation2 + $0x40] sm:$0x7f] }
 0x57f   : > { %v6109_v9 = vld [vmem:[#allocation2 + $0x40] sm:$0x7f] }
 0x580   : > { %v6110_v44 = vld [vmem:[#allocation2 + $0x48] sm:$0x7f]  ;;  %v6029_v58 = vld [vmem:[#allocation2 + $0x40] sm:$0x7f] }
 0x581   : > { %5936 = vrot.lane.b32.xlu1 %v7590_v13, %s7740_s25  ;;  %v5978_v56 = vld [vmem:[#allocation2 + $0x48] sm:$0x7f]  ;;  %v7605_v1 = vpack.c.bf16 %v6110_v44, %v6109_v9  ;;  %v5818_v42 = vld [vmem:[#allocation2 + $0x40] sm:$0x7f] }
 0x582   : > { %5934 = vrot.lane.b32.xlu0 %v7589_v43, %s7740_s25  ;;  %v7596_v40 = vpack.c.bf16 %v5978_v56, %v5977_v61  ;;  %v6030_v0 = vld [vmem:[#allocation2 + $0x48] sm:$0x7f]  ;;  %v7586_v29 = vpack.c.bf16 %v5818_v42, %v5817_v33  ;;  %v5898_v28 = vld [vmem:[#allocation2 + $0x40] sm:$0x7f] }
 0x583   : > { %v7600_v38 = vpack.c.bf16 %v6030_v0, %v6029_v58  ;;  %v7591_v36 = vpack.c.bf16 %v5898_v28, %v5897_v2  ;;  %v5899_v41 = vld [vmem:[#allocation2 + $0x48] sm:$0x7f] }
 0x584   : > { %v10389_v54 = vsel %vm8800_vm8, %v7596_v40, %v10309_v34  ;;  %v5819_v34 = vld [vmem:[#allocation2 + $0x48] sm:$0x7f]  ;;  %v7592_v45 = vpack.c.bf16 %v5899_v41, %v5899_v41 }
 0x585   : > { %6068 = vrot.lane.b32.xlu1 %v7599_v22, %s7739_s24  ;;  %6022 = vst [vmem:[#allocation3 + $0xf0] sm:$0xff] %v10389_v54  ;;  %v7587_v27 = vpack.c.bf16 %v5819_v34, %v5819_v34 }
 0x586   : > { %6150 = vrot.lane.b32.xlu0 %v7605_v1, %s7748_s16 }
 0x589   : > { %6152 = vrot.lane.b32.xlu1 %v7606_v35, %s7748_s16 }
 0x58a   : > { %6070 = vrot.lane.b32.xlu0 %v7600_v38, %s7739_s24 }
 0x58d   : > { %6072 = vrot.lane.b32.xlu1 %v7601_v48, %s7739_s24 }
 0x58e   : > { %5858 = vrot.lane.b32.xlu0 %v7586_v29, %s7748_s16 }
 0x591   : > { %5860 = vrot.lane.b32.xlu1 %v7587_v27, %s7748_s16 }
 0x592   : > { %5938 = vrot.lane.b32.xlu0 %v7591_v36, %s7740_s25 }
 0x595   : > { %5940 = vrot.lane.b32.xlu1 %v7592_v45, %s7740_s25 }
 0x596   : > { %4438 = vperm.xlu0 %7649, %v4435_v10  }
 0x599   : > { %6207 = vperm.xlu1 %7650, %v6204_v18  }
 0x5d7   : > { %v5933_v13 = vpop.permute.xlu1 %5932 }
 0x5d8   : > { %v5853_v43 = vpop.permute.xlu0 %5852 }
 0x5d9   : > { %v5862_v34 = vrot.slane %v5853_v43, 4 }
 0x5db   : > { %v6145_v24 = vpop.permute.xlu1 %6144 }
 0x5dc   : > { %v6154_v56 = vrot.slane %v6145_v24, 4 }
 0x5e7   : > { %v6147_v61 = vpop.permute.xlu1 %6146 }
 0x5e8   : > { %v10407_v44 = vpop.permute.xlu0 %6066  ;;  %v6155_v7 = vrot.slane %v6147_v61, 4 }
 0x5e9   : > { %v6075_v1 = vrot.slane %v10407_v44, 4 }
 0x5ea   : > { %v6159_v9 = vsel %vm572_vm0, %v6154_v56, %v6155_v7 }
 0x5eb   : > { %v6160_v52 = vsel %vm3950_vm12, %v6145_v24, %v6159_v9  ;;  %v6065_v22 = vpop.permute.xlu1 %6064 }
 0x5ec   : > { %v10411_v40 = vpop.permute.xlu0 %5856  ;;  %v6172_v0 = vsel %vm8800_vm8, %v6160_v52, %v10134_v37  ;;  %v6074_v35 = vrot.slane %v6065_v22, 4 }
 0x5ed   : > { %6173 = vst [vmem:[#allocation3 + $0x128] sm:$0xff] %v6172_v0  ;;  %v7390_v58 = vcombine.high %v6172_v0, %v6172_v0  ;;  %v7389_v11 = vcombine.low %v6172_v0, %v6172_v0  ;;  %v5864_v41 = vrot.slane %v10411_v40, 4 }
 0x5ee   : > { %v6079_v38 = vsel %vm572_vm0, %v6074_v35, %v6075_v1 }
 0x5ef   : > { %v6080_v42 = vsel %vm1369_vm15, %v6065_v22, %v6079_v38  ;;  %v5855_v33 = vpop.permute.xlu1 %5854  ;;  %7397 = vmatprep.subr.msk.bf16.mxu0 %vm572_vm0, %v7390_v58  ;;  %v6314_v29 = vsel %vm572_vm0, %v7389_v11, 0 }
 0x5f0   : > { %v6149_v48 = vpop.permute.xlu0 %6148  ;;  %v6092_v28 = vsel %vm8800_vm8, %v6080_v42, %v10155_v25  ;;  %v5863_v2 = vrot.slane %v5855_v33, 4  ;;  %6348 = vmatpush1.bf16.msra.mxu0 %v6314_v29  ;;  %v5942_v25 = vrot.slane %v5933_v13, 4 }
 0x5f1   : > { %v6156_v37 = vrot.slane %v6149_v48, 4  ;;  %6093 = vst [vmem:[#allocation3 + $0x18] sm:$0xff] %v6092_v28  ;;  %v7381_v27 = vcombine.low %v10358_v14, %v6092_v28  ;;  %v7382_v36 = vcombine.high %v10358_v14, %v6092_v28 }
 0x5f2   : > { %v5867_v45 = vsel %vm572_vm0, %v5862_v34, %v5863_v2 }
 0x5f3   : > { %v6161_v10 = vsel %vm572_vm0, %v6155_v7, %v6156_v37  ;;  %v10430_v24 = vpop.permute.xlu1 %5936  ;;  %6349 = vmatprep.subr.bf16.mxu0 %v7382_v36  ;;  %v5868_v9 = vsel %vm3950_vm12, %v5853_v43, %v5867_v45 }
 0x5f4   : > { %v6162_v18 = vsel %vm3950_vm12, %v6147_v61, %v6161_v10  ;;  %v5935_v57 = vpop.permute.xlu0 %5934  ;;  %6350 = vmatpush1.bf16.msra.mxu0 %v7381_v27  ;;  %v5944_v7 = vrot.slane %v10430_v24, 4  ;;  %v5869_v61 = vsel %vm572_vm0, %v5863_v2, %v5864_v41  ;;  %v10444_v35 = vsel %vm8800_vm8, %v5868_v9, %v10198_v5 }
 0x5f5   : > { %v6175_v56 = vsel %vm8800_vm8, %v6162_v18, %v10215_v15  ;;  %v5943_v14 = vrot.slane %v5935_v57, 4  ;;  %v5870_v36 = vsel %vm3950_vm12, %v5855_v33, %v5869_v61 }
 0x5f6   : > { %6176 = vst [vmem:[#allocation3 + $0x110] sm:$0xff] %v6175_v56  ;;  %v7392_v52 = vcombine.high %v6175_v56, %v6175_v56  ;;  %v7391_v22 = vcombine.low %v6175_v56, %v6175_v56 }
 0x5f7   : > { %v5947_v0 = vsel %vm572_vm0, %v5942_v25, %v5943_v14  ;;  %v5949_v43 = vsel %vm572_vm0, %v5943_v14, %v5944_v7  ;;  %v6069_v11 = vpop.permute.xlu1 %6068 }
 0x5f8   : > { %v5948_v15 = vsel %vm647_vm1, %v5933_v13, %v5947_v0  ;;  %v6151_v58 = vpop.permute.xlu0 %6150  ;;  %7399 = vmatprep.subr.msk.bf16.mxu1 %vm572_vm0, %v7392_v52  ;;  %v6320_v38 = vsel %vm572_vm0, %v7391_v22, 0  ;;  %v5950_v5 = vsel %vm647_vm1, %v5935_v57, %v5949_v43  ;;  %v6076_v34 = vrot.slane %v6069_v11, 4 }
 0x5f9   : > { %v10455_v42 = vsel %vm8800_vm8, %v5948_v15, %v10200_v51  ;;  %v6157_v29 = vrot.slane %v6151_v58, 4  ;;  %6389 = vmatpush1.bf16.msra.mxu1 %v6320_v38  ;;  %v10468_v51 = vsel %vm8800_vm8, %v5950_v5, %v10270_v60  ;;  %v10482_v60 = vld [vmem:[%s10657_s1 + $0x10] sm:$0xf] }
 0x5fa   : > { %v7374_v13 = vcombine.high %v10444_v35, %v10455_v42  ;;  %v7373_v28 = vcombine.low %v10444_v35, %v10455_v42  ;;  %v6081_v27 = vsel %vm572_vm0, %v6075_v1, %v6076_v34 }
 0x5fb   : > { %v6163_v2 = vsel %vm572_vm0, %v6156_v37, %v6157_v29  ;;  %v6082_v45 = vsel %vm1369_vm15, %v10407_v44, %v6081_v27  ;;  %v6153_v57 = vpop.permute.xlu1 %6152 }
 0x5fc   : > { %v6164_v10 = vsel %vm3950_vm12, %v6149_v48, %v6163_v2  ;;  %v6071_v18 = vpop.permute.xlu0 %6070  ;;  %6351 = vmatprep.subr.bf16.mxu0 %v7374_v13  ;;  %v6095_v1 = vsel %vm8800_vm8, %v6082_v45, %v10241_v4  ;;  %v6158_v25 = vrot.slane %v6153_v57, 4 }
 0x5fd   : > { %v6178_v37 = vsel %vm8800_vm8, %v6164_v10, %v10257_v39  ;;  %v6077_v33 = vrot.slane %v6071_v18, 4  ;;  %6352 = vmatpush1.bf16.msra.mxu0 %v7373_v28  ;;  %6096 = vst [vmem:[#allocation3 + $0xc8] sm:$0xff] %v6095_v1  ;;  %v7384_v44 = vcombine.high %v10371_v47, %v6095_v1  ;;  %v10488_v39 = vsel %vm8800_vm8, %v5870_v36, %v10268_v16 }
 0x5fe   : > { %6179 = vst [vmem:[#allocation3 + $0x8] sm:$0xff] %v6178_v37  ;;  %v7394_v48 = vcombine.high %v6178_v37, %v6178_v37  ;;  %v7393_v56 = vcombine.low %v6178_v37, %v6178_v37  ;;  %v6165_v9 = vsel %vm572_vm0, %v6157_v29, %v6158_v25  ;;  %v7383_v14 = vcombine.low %v10371_v47, %v6095_v1 }
 0x5ff   : > { %v6083_v4 = vsel %vm572_vm0, %v6076_v34, %v6077_v33  ;;  %v6166_v22 = vsel %vm3950_vm12, %v6151_v58, %v6165_v9  ;;  %v6073_v0 = vpop.permute.xlu1 %6072  ;;  %6390 = vmatprep.subr.bf16.mxu1 %v7384_v44  ;;  %v7376_v16 = vcombine.high %v10488_v39, %v10468_v51  ;;  %v10515_v34 = vld [vmem:[#allocation3 + $0x28] sm:$0xff] }
 0x600   : > { %v6084_v52 = vsel %vm1369_vm15, %v6069_v11, %v6083_v4  ;;  %v5859_v61 = vpop.permute.xlu0 %5858  ;;  %7398 = vmatmul.mubr.msk.bf16.vlgmr.msra.gmra.mxu0 %vm5587_vm3, %v10482_v60  ;;  %v6326_v15 = vsel %vm572_vm0, %v7393_v56, 0  ;;  %v6181_v47 = vsel %vm8800_vm8, %v6166_v22, %v10288_v21  ;;  %v6078_v11 = vrot.slane %v6073_v0, 4  ;;  %7401 = vmatprep.subr.msk.bf16.mxu0 %vm572_vm0, %v7394_v48 }
 0x601   : > { %v6098_v43 = vsel %vm8800_vm8, %v6084_v52, %v10280_v50  ;;  %v5865_v58 = vrot.slane %v5859_v61, 4  ;;  %6391 = vmatpush1.bf16.msra.mxu1 %v7383_v14  ;;  %6182 = vst [vmem:[#allocation3 + $0x98] sm:$0xff] %v6181_v47  ;;  %6430 = vmatpush1.bf16.msra.mxu0 %v6326_v15  ;;  %v7375_v21 = vcombine.low %v10488_v39, %v10468_v51 }
 0x602   : > { %6099 = vst [vmem:[#allocation3 + $0x70] sm:$0xff] %v6098_v43  ;;  %6392 = vmatprep.subr.bf16.mxu1 %v7376_v16  ;;  %v7385_v38 = vcombine.low %v10379_v23, %v6098_v43  ;;  %v7386_v5 = vcombine.high %v10379_v23, %v6098_v43  ;;  %v6085_v29 = vsel %vm572_vm0, %v6077_v33, %v6078_v11 }
 0x603   : > { %v5871_v50 = vsel %vm572_vm0, %v5864_v41, %v5865_v58  ;;  %6451 = vmatprep.mubr.bf16.mxu0 %v10515_v34  ;;  %v6086_v13 = vsel %vm1369_vm15, %v6071_v18, %v6085_v29  ;;  %v5861_v2 = vpop.permute.xlu1 %5860  ;;  %v7396_v27 = vcombine.high %v6181_v47, %v6181_v47  ;;  %v7395_v23 = vcombine.low %v6181_v47, %v6181_v47 }
 0x604   : > { %v5939_v28 = vpop.permute.xlu0 %5938  ;;  %6431 = vmatprep.subr.bf16.mxu0 %v7386_v5  ;;  %v6101_v41 = vsel %vm8800_vm8, %v6086_v13, %v10311_v63  ;;  %v5866_v10 = vrot.slane %v5861_v2, 4  ;;  %v5872_v45 = vsel %vm3950_vm12, %v10411_v40, %v5871_v50 }
 0x605   : > { %v5945_v36 = vrot.slane %v5939_v28, 4  ;;  %6393 = vmatpush1.bf16.msra.mxu1 %v7375_v21  ;;  %6102 = vst [vmem:[#allocation3 + $0x20] sm:$0xff] %v6101_v41  ;;  %6432 = vmatpush1.bf16.msra.mxu0 %v7385_v38  ;;  %v6332_v1 = vsel %vm572_vm0, %v7395_v23, 0  ;;  %v7388_v40 = vcombine.high %v10389_v54, %v6101_v41  ;;  %v10538_v33 = vsel %vm8800_vm8, %v5872_v45, %v10296_v53 }
 0x606   : > { %7403 = vmatprep.subr.msk.bf16.mxu1 %vm572_vm0, %v7396_v27  ;;  %v5873_v57 = vsel %vm572_vm0, %v5865_v58, %v5866_v10  ;;  %v7387_v56 = vcombine.low %v10389_v54, %v6101_v41 }
 0x607   : > { %v5951_v18 = vsel %vm572_vm0, %v5944_v7, %v5945_v36  ;;  %v5941_v63 = vpop.permute.xlu1 %5940 }
 0x608   : > { %v5952_v37 = vsel %vm647_vm1, %v10430_v24, %v5951_v18  ;;  %7400 = vmatmul.mubr.msk.bf16.vlgmr.msra.gmra.mxu1 %vm5587_vm3, %v10482_v60  ;;  %v5946_v25 = vrot.slane %v5941_v63, 4  ;;  %v5874_v24 = vsel %vm3950_vm12, %v5859_v61, %v5873_v57 }
 0x609   : > { %v10543_v7 = vsel %vm8800_vm8, %v5952_v37, %v10298_v26  ;;  %6471 = vmatpush1.bf16.msra.mxu1 %v6332_v1  ;;  %6492 = vmatprep.mubr.bf16.mxu1 %v10515_v34  ;;  %v5889_v4 = vsel %vm8800_vm8, %v5874_v24, %v10319_v20 }
 0x60a   : > { %6472 = vmatprep.subr.bf16.mxu1 %v7388_v40  ;;  %v7378_v44 = vcombine.high %v10538_v33, %v10543_v7  ;;  %v7377_v48 = vcombine.low %v10538_v33, %v10543_v7  ;;  %v5953_v53 = vsel %vm572_vm0, %v5945_v36, %v5946_v25 }
 0x60b   : > { %v5954_v26 = vsel %vm647_vm1, %v5939_v28, %v5953_v53 }
 0x60c   : > { %6433 = vmatprep.subr.bf16.mxu0 %v7378_v44  ;;  %v10560_v9 = vsel %vm8800_vm8, %v5954_v26, %v10321_v30 }
 0x60d   : > { %6434 = vmatpush1.bf16.msra.mxu0 %v7377_v48  ;;  %6473 = vmatpush1.bf16.msra.mxu1 %v7387_v56  ;;  %v7380_v14 = vcombine.high %v5889_v4, %v10560_v9  ;;  %v7379_v52 = vcombine.low %v5889_v4, %v10560_v9 }
 0x60f   : > { %6474 = vmatprep.subr.bf16.mxu1 %v7380_v14 }
 0x610   : > { %7402 = vmatmul.mubr.msk.bf16.vlgmr.msra.gmra.mxu0 %vm5587_vm3, %v10482_v60 }
 0x611   : > { %v4439_v54 = vpop.permute.xlu0 %4438  ;;  %6475 = vmatpush1.bf16.msra.mxu1 %v7379_v52  ;;  %6728 = vmatprep.mubr.bf16.mxu0 %v10515_v34 }
 0x612   : > { %v4683_v20 = vadd.f32 %v10331_v32, %v4439_v54  ;;  %v4685_v22 = vadd.f32 %v10333_v62, %v4439_v54  ;;  %v4724_v30 = vadd.f32 %v10335_v19, %v4439_v54  ;;  %v4726_v61 = vadd.f32 %v10337_v55, %v4439_v54 }
 0x613   : > { %v4765_v0 = vadd.f32 %v10339_v49, %v4439_v54  ;;  %v4767_v15 = vadd.f32 %v10341_v17, %v4439_v54  ;;  %v4806_v16 = vadd.f32 %v10343_v31, %v4439_v54  ;;  %v4808_v43 = vadd.f32 %v10347_v46, %v4439_v54 }
 0x614   : > { %vm6501_vm15 = vcmp.gt.f32.partialorder %v4683_v20, 0.0  ;;  %vm6502_vm0 = vcmp.gt.f32.partialorder %v4685_v22, 0.0  ;;  %vm6503_vm1 = vcmp.gt.f32.partialorder %v4724_v30, 0.0  ;;  %vm6504_vm4 = vcmp.gt.f32.partialorder %v4726_v61, 0.0  ;;  %7404 = vmatmul.mubr.msk.bf16.vlgmr.msra.gmra.mxu1 %vm5587_vm3, %v10482_v60  ;;  %v6208_v10 = vpop.permute.xlu1 %6207 }
 0x615   : > { %vm6505_vm7 = vcmp.gt.f32.partialorder %v4765_v0, 0.0  ;;  %vm6506_vm12 = vcmp.gt.f32.partialorder %v4767_v15, 0.0  ;;  %vm6507_vm11 = vcmp.gt.f32.partialorder %v4806_v16, 0.0  ;;  %vm6508_vm13 = vcmp.gt.f32.partialorder %v4808_v43, 0.0  ;;  %6769 = vmatprep.mubr.bf16.mxu1 %v10515_v34 }
 0x616   : > { %v6509_v32 = vmul.f32 0.3, %v4683_v20  ;;  %v6510_v62 = vmul.f32 0.3, %v4685_v22  ;;  %v6511_v19 = vmul.f32 0.3, %v4724_v30 }
 0x617   : > { %v6512_v55 = vmul.f32 0.3, %v4726_v61  ;;  %v6513_v49 = vmul.f32 0.3, %v4765_v0  ;;  %v6514_v17 = vmul.f32 0.3, %v4767_v15 }
 0x618   : > { %v6515_v31 = vmul.f32 0.3, %v4806_v16  ;;  %v6516_v46 = vmul.f32 0.3, %v4808_v43  ;;  %v6517_v47 = vsel %vm6501_vm15, %v4683_v20, %v6509_v32  ;;  %v6518_v58 = vsel %vm6502_vm0, %v4685_v22, %v6510_v62 }
 0x619   : > { %v6519_v60 = vsel %vm6503_vm1, %v4724_v30, %v6511_v19  ;;  %v6520_v11 = vsel %vm6504_vm4, %v4726_v61, %v6512_v55  ;;  %v7607_v38 = vpack.c.bf16 %v6518_v58, %v6517_v47  ;;  %v6521_v5 = vsel %vm6505_vm7, %v4765_v0, %v6513_v49 }
 0x61a   : > { %v7608_v50 = vpack.c.bf16 %v6520_v11, %v6519_v60  ;;  %v6522_v29 = vsel %vm6506_vm12, %v4767_v15, %v6514_v17  ;;  %v6523_v21 = vsel %vm6507_vm11, %v4806_v16, %v6515_v31  ;;  %v6524_v13 = vsel %vm6508_vm13, %v4808_v43, %v6516_v46  ;;  %v6637_v15 = vld [vmem:[%s10657_s1 + $0x14] sm:$0x1] }
 0x61b   : > { %v6558_v28 = vsel %vm8800_vm8, %v7607_v38, %v10444_v35  ;;  %v7609_v2 = vpack.c.bf16 %v6522_v29, %v6521_v5  ;;  %v7610_v27 = vpack.c.bf16 %v6524_v13, %v6523_v21  ;;  %v6646_v35 = vld [vmem:[%s10658_s2] sm:$0x3] }
 0x61c   : > { %6559 = vst [vmem:[#allocation3 + $0xb0] sm:$0xff] %v6558_v28  ;;  %v10592_v23 = vsel %vm8800_vm8, %v7608_v50, %v10488_v39  ;;  %v7752_v39 = vmov 5  }
 0x61d   : > { %6562 = vst [vmem:[#allocation3 + $0xd0] sm:$0xff] %v10592_v23  ;;  %v10598_v41 = vsel %vm8800_vm8, %v7609_v2, %v10538_v33  ;;  %v10602_v36 = vsel %vm8800_vm8, %v7610_v27, %v5889_v4  ;;  %7651 = vset.pattern.permute.xlu1 %v7752_v39  ;;  %7652 = vset.pattern.permute.xlu0 %v7752_v39 }
 0x61e   : > { %6565 = vst [vmem:[#allocation3 + $0x10] sm:$0xff] %v10598_v41  ;;  %6568 = vst [vmem:[#allocation3 + $0x48] sm:$0xff] %v10602_v36  ;;  %6649 = vperm.xlu1 %7651, %v6646_v35  }
 0x6c0   : > { %v6371_v45 = vpop.f32.mrf.mxu0 }
 0x6c1   : > { %v6372_v18 = vadd.f32 %v6371_v45, %v6208_v10 }
 0x6c2   : > { %v6373_v57 = vpop.f32.mrf.mxu0 }
 0x6c3   : > { %v6374_v37 = vadd.f32 %v6373_v57, %v6208_v10  ;;  %vm6569_vm3 = vcmp.gt.f32.partialorder %v6372_v18, 0.0  ;;  %v6577_v63 = vmul.f32 0.3, %v6372_v18 }
 0x6c4   : > { %v6375_v1 = vpop.f32.mrf.mxu0 }
 0x6c5   : > { %vm6570_vm2 = vcmp.gt.f32.partialorder %v6374_v37, 0.0  ;;  %v6578_v40 = vmul.f32 0.3, %v6374_v37  ;;  %v6585_v33 = vsel %vm6569_vm3, %v6372_v18, %v6577_v63 }
 0x6c6   : > { %v6376_v25 = vpop.f32.mrf.mxu0 }
 0x6c7   : > { %v6586_v24 = vsel %vm6570_vm2, %v6374_v37, %v6578_v40 }
 0x6c8   : > { %v7611_v44 = vpack.c.bf16 %v6586_v24, %v6585_v33  ;;  %v6412_v48 = vpop.f32.mrf.mxu1 }
 0x6c9   : > { %v6413_v53 = vadd.f32 %v6412_v48, %v6208_v10 }
 0x6ca   : > { %v6626_v56 = vsel %vm8800_vm8, %v7611_v44, %v10455_v42  ;;  %v6414_v26 = vpop.f32.mrf.mxu1 }
 0x6cb   : > { %6627 = vst [vmem:[#allocation3 + $0x120] sm:$0xff] %v6626_v56  ;;  %v6579_v4 = vmul.f32 0.3, %v6413_v53  ;;  %v6415_v14 = vadd.f32 %v6414_v26, %v6208_v10  ;;  %v7413_v52 = vcombine.low %v6558_v28, %v6626_v56  ;;  %vm6571_vm6 = vcmp.gt.f32.partialorder %v6413_v53, 0.0 }
 0x6cc   : > { %v6416_v54 = vpop.f32.mrf.mxu1  ;;  %v7414_v20 = vcombine.high %v6558_v28, %v6626_v56  ;;  %v10731_v56 = vld [vmem:[#allocation11_spill] sm:$0xff] }
 0x6cd   : > { %vm6572_vm10 = vcmp.gt.f32.partialorder %v6415_v14, 0.0  ;;  %v6580_v22 = vmul.f32 0.3, %v6415_v14  ;;  %v6587_v61 = vsel %vm6571_vm6, %v6413_v53, %v6579_v4 }
 0x6ce   : > { %v6417_v30 = vpop.f32.mrf.mxu1  ;;  %6710 = vmatprep.subr.bf16.mxu0 %v7414_v20 }
 0x6cf   : > { %v6588_v0 = vsel %vm6572_vm10, %v6415_v14, %v6580_v22  ;;  %6711 = vmatpush1.bf16.msra.mxu0 %v7413_v52 }
 0x6d0   : > { %v7612_v42 = vpack.c.bf16 %v6588_v0, %v6587_v61  ;;  %v6453_v16 = vpop.f32.mrf.mxu0 }
 0x6d1   : > { %v6454_v43 = vadd.f32 %v6453_v16, %v6208_v10 }
 0x6d2   : > { %v6629_v32 = vsel %vm8800_vm8, %v7612_v42, %v10468_v51  ;;  %v6455_v62 = vpop.f32.mrf.mxu0  ;;  %7421 = vmatmul.mubr.msk.bf16.vlgmr.msra.gmra.mxu0 %vm6692_vm5, %v6637_v15 }
 0x6d3   : > { %6630 = vst [vmem:[#allocation3 + $0x38] sm:$0xff] %v6629_v32  ;;  %v6581_v19 = vmul.f32 0.3, %v6454_v43  ;;  %v6456_v55 = vadd.f32 %v6455_v62, %v6208_v10  ;;  %v7415_v49 = vcombine.low %v10592_v23, %v6629_v32  ;;  %6810 = vmatprep.mubr.bf16.mxu0 %v10515_v34  ;;  %vm6573_vm9 = vcmp.gt.f32.partialorder %v6454_v43, 0.0 }
 0x6d4   : > { %v6457_v17 = vpop.f32.mrf.mxu0  ;;  %v6494_v31 = vpop.f32.mrf.mxu1  ;;  %v7416_v46 = vcombine.high %v10592_v23, %v6629_v32 }
 0x6d5   : > { %vm6574_vm14 = vcmp.gt.f32.partialorder %v6456_v55, 0.0  ;;  %v6582_v47 = vmul.f32 0.3, %v6456_v55  ;;  %v6495_v58 = vadd.f32 %v6494_v31, %v6208_v10  ;;  %v6589_v11 = vsel %vm6573_vm9, %v6454_v43, %v6581_v19  ;;  %v10732_v43 = vld [vmem:[#allocation10_spill] sm:$0xff] }
 0x6d6   : > { %v6458_v60 = vpop.f32.mrf.mxu0  ;;  %v6496_v51 = vpop.f32.mrf.mxu1  ;;  %6751 = vmatprep.subr.bf16.mxu1 %v7416_v46 }
 0x6d7   : > { %v6590_v38 = vsel %vm6574_vm14, %v6456_v55, %v6582_v47  ;;  %v6583_v5 = vmul.f32 0.3, %v6495_v58  ;;  %v6497_v50 = vadd.f32 %v6496_v51, %v6208_v10  ;;  %6752 = vmatpush1.bf16.msra.mxu1 %v7415_v49  ;;  %vm6575_vm15 = vcmp.gt.f32.partialorder %v6495_v58, 0.0  ;;  %v10733_v49 = vld [vmem:[#allocation8_spill] sm:$0xff] }
 0x6d8   : > { %v7613_v29 = vpack.c.bf16 %v6590_v38, %v6589_v11  ;;  %v6498_v21 = vpop.f32.mrf.mxu1  ;;  %v10734_v11 = vld [vmem:[#allocation16_spill] sm:$0xff] }
 0x6d9   : > { %vm6576_vm0 = vcmp.gt.f32.partialorder %v6497_v50, 0.0  ;;  %v6584_v13 = vmul.f32 0.3, %v6497_v50  ;;  %v6591_v27 = vsel %vm6575_vm15, %v6495_v58, %v6583_v5 }
 0x6da   : > { %v6632_v28 = vsel %vm8800_vm8, %v7613_v29, %v10543_v7  ;;  %v6499_v2 = vpop.f32.mrf.mxu1  ;;  %7422 = vmatmul.mubr.msk.bf16.vlgmr.msra.gmra.mxu1 %vm6692_vm5, %v6637_v15 }
 0x6db   : > { %6633 = vst [vmem:[#allocation3 + $0xf8] sm:$0xff] %v6632_v28  ;;  %v6592_v23 = vsel %vm6576_vm0, %v6497_v50, %v6584_v13  ;;  %v7417_v35 = vcombine.low %v10598_v41, %v6632_v28  ;;  %v7418_v39 = vcombine.high %v10598_v41, %v6632_v28  ;;  %6851 = vmatprep.mubr.bf16.mxu1 %v10515_v34  ;;  %v6650_v41 = vpop.permute.xlu1 %6649 }
 0x6dc   : > { %v7614_v10 = vpack.c.bf16 %v6592_v23, %v6591_v27 }
 0x6dd   : > { %6792 = vmatprep.subr.bf16.mxu0 %v7418_v39 }
 0x6de   : > { %v6635_v45 = vsel %vm8800_vm8, %v7614_v10, %v10560_v9  ;;  %6793 = vmatpush1.bf16.msra.mxu0 %v7417_v35 }
 0x6df   : > { %6636 = vst [vmem:[#allocation3 + $0x100] sm:$0xff] %v6635_v45  ;;  %v7419_v7 = vcombine.low %v10602_v36, %v6635_v45  ;;  %v7420_v18 = vcombine.high %v10602_v36, %v6635_v45 }
 0x6e1   : > { %6833 = vmatprep.subr.bf16.mxu1 %v7420_v18  ;;  %7423 = vmatmul.mubr.msk.bf16.vlgmr.msra.gmra.mxu0 %vm6692_vm5, %v6637_v15 }
 0x6e2   : > { %6834 = vmatpush1.bf16.msra.mxu1 %v7419_v7 }
 0x6e5   : > { %7424 = vmatmul.mubr.msk.bf16.vlgmr.msra.gmra.mxu1 %vm6692_vm5, %v6637_v15 }
 0x792   : > { %v6730_v34 = vpop.f32.mrf.mxu0 }
 0x793   : > { %v6731_v57 = vadd.f32 %v6730_v34, %v6650_v41 }
 0x794   : > { %v6732_v37 = vpop.f32.mrf.mxu0 }
 0x795   : > { %v6733_v63 = vadd.f32 %v6732_v37, %v6650_v41  ;;  %v6860_v9 = vadd.f32 %v6731_v57, %v10730_v12 }
 0x796   : > { %v6734_v1 = vpop.f32.mrf.mxu0 }
 0x797   : > { %v6861_v40 = vadd.f32 %v6733_v63, %v10722_v3  ;;  %v6876_v24 = vmul.f32 0.3, %v6860_v9  ;;  %vm6868_vm8 = vcmp.gt.f32.partialorder %v6860_v9, 0.0 }
 0x798   : > { %v6735_v33 = vpop.f32.mrf.mxu0 }
 0x799   : > { %v6877_v36 = vmul.f32 0.3, %v6861_v40  ;;  %vm6869_vm1 = vcmp.gt.f32.partialorder %v6861_v40, 0.0  ;;  %v6884_v14 = vsel %vm6868_vm8, %v6860_v9, %v6876_v24 }
 0x79a   : > { %v6771_v25 = vpop.f32.mrf.mxu1 }
 0x79b   : > { %v6772_v44 = vadd.f32 %v6771_v25, %v6650_v41  ;;  %v6885_v52 = vsel %vm6869_vm1, %v6861_v40, %v6877_v36 }
 0x79c   : > { %v6773_v48 = vpop.f32.mrf.mxu1  ;;  %v6900_v0 = vcombine.low %v6884_v14, %v6885_v52 }
 0x79d   : > { %v6774_v53 = vadd.f32 %v6773_v48, %v6650_v41  ;;  %v6862_v26 = vadd.f32 %v6772_v44, %v10731_v56 }
 0x79e   : > { %v6775_v4 = vpop.f32.mrf.mxu1  ;;  %v6908_v17 = vrot.slane %v6900_v0, %v10733_v49 }
 0x79f   : > { %v6863_v54 = vadd.f32 %v6774_v53, %v10725_v59  ;;  %vm6870_vm4 = vcmp.gt.f32.partialorder %v6862_v26, 0.0  ;;  %v6878_v20 = vmul.f32 0.3, %v6862_v26 }
 0x7a0   : > { %v6776_v22 = vpop.f32.mrf.mxu1 }
 0x7a1   : > { %vm6871_vm7 = vcmp.gt.f32.partialorder %v6863_v54, 0.0  ;;  %v6879_v3 = vmul.f32 0.3, %v6863_v54  ;;  %v6886_v30 = vsel %vm6870_vm4, %v6862_v26, %v6878_v20  ;;  %v6812_v61 = vpop.f32.mrf.mxu0 }
 0x7a2   : > { %v6813_v15 = vadd.f32 %v6812_v61, %v6650_v41 }
 0x7a3   : > { %v6887_v42 = vsel %vm6871_vm7, %v6863_v54, %v6879_v3  ;;  %v6814_v16 = vpop.f32.mrf.mxu0 }
 0x7a4   : > { %v6864_v32 = vadd.f32 %v6813_v15, %v10732_v43  ;;  %v6815_v62 = vadd.f32 %v6814_v16, %v6650_v41  ;;  %v6901_v19 = vcombine.low %v6886_v30, %v6887_v42 }
 0x7a5   : > { %v6853_v55 = vpop.f32.mrf.mxu1  ;;  %v6816_v59 = vpop.f32.mrf.mxu0 }
 0x7a6   : > { %v6854_v31 = vadd.f32 %v6853_v55, %v6650_v41  ;;  %v6865_v46 = vadd.f32 %v6815_v62, %v10727_v6  ;;  %v6880_v47 = vmul.f32 0.3, %v6864_v32  ;;  %v6915_v60 = vrot.slane %v6901_v19, %v10733_v49 }
 0x7a7   : > { %v6855_v58 = vpop.f32.mrf.mxu1  ;;  %v6817_v51 = vpop.f32.mrf.mxu0  ;;  %vm6872_vm12 = vcmp.gt.f32.partialorder %v6864_v32, 0.0 }
 0x7a8   : > { %v6866_v38 = vadd.f32 %v6854_v31, %v10734_v11  ;;  %vm6873_vm11 = vcmp.gt.f32.partialorder %v6865_v46, 0.0  ;;  %v6881_v5 = vmul.f32 0.3, %v6865_v46  ;;  %v6856_v50 = vadd.f32 %v6855_v58, %v6650_v41 }
 0x7a9   : > { %v6916_v29 = vcombine.low %v6908_v17, %v6915_v60  ;;  %v6857_v21 = vpop.f32.mrf.mxu1  ;;  %v6888_v6 = vsel %vm6872_vm12, %v6864_v32, %v6880_v47 }
 0x7aa   : > { %v6889_v13 = vsel %vm6873_vm11, %v6865_v46, %v6881_v5  ;;  %v6882_v28 = vmul.f32 0.3, %v6866_v38  ;;  %v6867_v2 = vadd.f32 %v6856_v50, %v10726_v8  ;;  %vm6874_vm13 = vcmp.gt.f32.partialorder %v6866_v38, 0.0 }
 0x7ab   : > { %6936 = vst [vmem:[%s170_s8] sm:$0xff] %v6916_v29  ;;  %v6858_v27 = vpop.f32.mrf.mxu1  ;;  %v6917_v23 = vcombine.low %v6888_v6, %v6889_v13 }
 0x7ac   : > { %vm6875_vm3 = vcmp.gt.f32.partialorder %v6867_v2, 0.0  ;;  %v6883_v35 = vmul.f32 0.3, %v6867_v2  ;;  %v6890_v39 = vsel %vm6874_vm13, %v6866_v38, %v6882_v28 }
 0x7ad   : > { %v6925_v45 = vrot.slane %v6917_v23, %v10733_v49 }
 0x7ae   : > { %v6891_v10 = vsel %vm6875_vm3, %v6867_v2, %v6883_v35 }
 0x7af   : > { %v6918_v7 = vcombine.low %v6890_v39, %v6891_v10 }
 0x7b1   : > { %v6932_v18 = vrot.slane %v6918_v7, %v10733_v49 }
 0x7b3   : > { %v6933_v41 = vcombine.low %v6925_v45, %v6932_v18 }
 0x7b5   : > { %6937 = vst [vmem:[%s170_s8 + $0x8] sm:$0xff] %v6933_v41 }
 0x7b6 PF: > { %s13_s12 = sadd.s32 1, %s7728_s12  }
 0x7b7   : > { %p10_p4 = scmp.ge.s32.totalorder %s13_s12, 4  }
 0x7b9   :  { %12 = sbr.rel (!%p10_p4) target bundleno = 1 (0x1), region = 69 }

</bundles_post_ra>
